<compile_context>
chip_gen: v6e
topology: v6e:2x2x1
jax: 0.10.0
libtpu: 0.0.40
codegen_flags: <defaults>
</compile_context>

<pallas_src>
import functools

import jax
import jax.numpy as jnp
import numpy as np
from jax.experimental import pallas as pl
from jax.experimental.pallas import tpu as pltpu


_C1 = 0.01 ** 2
_C2 = 0.03 ** 2
_MSSSIM_WEIGHTS = np.array([0.0448, 0.2856, 0.3001, 0.2363, 0.1333],
                           dtype=np.float32)
_NCORES = 2  # v7x has 2 TensorCores; a size-2 'parallel' axis costs nothing on v5e/v6e.


def _cdiv(a, b):
    return -(-a // b)


# ---------------------------------------------------------------------------
# Host-side constant matrices: separable filters as Toeplitz / band matrices
# ---------------------------------------------------------------------------
def _gaussian_1d(window_size, sigma=1.5):
    xs = np.arange(window_size, dtype=np.float64)
    g = np.exp(-((xs - window_size // 2) ** 2) / (2.0 * sigma ** 2))
    return (g / g.sum()).astype(np.float32)


def _toeplitz_same(n, g):
    # zero-padded "same" correlation (pytorch_ssim: padding = window//2); left-mult form (n, n)
    k = len(g)
    p = k // 2
    a = np.zeros((n, n), dtype=np.float32)
    for i in range(n):
        for u in range(k):
            j = i + u - p
            if 0 <= j < n:
                a[i, j] = g[u]
    return a


def _toeplitz_valid(n, g):
    # "valid" correlation (pytorch_msssim: padding = 0); left-mult form (n-k+1, n)
    k = len(g)
    no = n - k + 1
    a = np.zeros((no, n), dtype=np.float32)
    for i in range(no):
        a[i, i:i + k] = g
    return a


def _clamped_band(n, taps):
    # correlation with replicate (clamp) padding; left-mult form (n, n)
    a = np.zeros((n, n), dtype=np.float32)
    for i in range(n):
        for off, w in taps:
            j = min(max(i + off, 0), n - 1)
            a[i, j] += w
    return a


def _diff_band(n):
    # forward difference out[i] = x[i+1] - x[i]; left-mult form (n-1, n)
    a = np.zeros((n - 1, n), dtype=np.float32)
    for i in range(n - 1):
        a[i, i] = -1.0
        a[i, i + 1] = 1.0
    return a


def _block_diag(m, p):
    r, c = m.shape
    out = np.zeros((p * r, p * c), dtype=np.float32)
    for i in range(p):
        out[i * r:(i + 1) * r, i * c:(i + 1) * c] = m
    return out


# ---------------------------------------------------------------------------
# Fused kernel: all full-resolution partial sums in one pass over (o, t)
# ---------------------------------------------------------------------------
def _fused_loss_kernel(o_ref, t_ref,
                       rw_gs_ref, rw_gv_ref, rw_dx_ref, rw_sx_ref, rw_tv_ref,
                       lh_gs_ref, lh_gv_ref, lh_sy_ref, lh_dy_ref, lh_tv_ref,
                       out_ref, *, P, H, Ho, BC, NB, padded):
    c = pl.program_id(0)
    j = pl.program_id(1)

    @pl.when(j == 0)
    def _():
        out_ref[...] = jnp.zeros_like(out_ref)

    def mm(a, b):
        return jnp.dot(a, b, preferred_element_type=jnp.float32)

    x = o_ref[...].astype(jnp.float32)          # (P*H, W): P planes stacked on sublanes
    y = t_ref[...].astype(jnp.float32)
    d = x - y

    # ---- MSE / L1 ----
    sum_sq = jnp.sum(d * d)
    sum_abs = jnp.sum(jnp.abs(d))

    # ---- gradient_loss: kornia.spatial_gradient (normalized Sobel, replicate pad) of (o - t) ----
    gx = mm(lh_sy_ref[...], mm(d, rw_dx_ref[...])) * 0.125
    gy = mm(lh_dy_ref[...], mm(d, rw_sx_ref[...])) * 0.125
    sum_grad = jnp.sum(jnp.abs(gx) + jnp.abs(gy))

    # ---- TVLoss of `output` only ----
    wdiff = mm(x, rw_tv_ref[...])               # (P*H, W-1)
    hdiff = mm(lh_tv_ref[...], x)               # (P*(H-1), W)
    w_tv = jnp.sum(wdiff * wdiff)
    h_tv = jnp.sum(hdiff * hdiff)

    # ---- per-plane validity mask (only needed when planes were zero-padded:
    #      zero planes contribute 0 to the d/TV terms but +1/pixel to SSIM maps) ----
    nvalid = BC - (c * NB + j) * P

    def mask_rows(m, rows_per_plane):
        if not padded:
            return m
        rows = jax.lax.broadcasted_iota(jnp.int32, m.shape, 0)
        return jnp.where(rows < nvalid * rows_per_plane, m, 0.0)

    xx = x * x
    yy = y * y
    xy = x * y

    # ---- SSIM (pytorch_ssim: 11x11 gaussian, zero 'same' padding) ----
    rw_gs = rw_gs_ref[...]
    lh_gs = lh_gs_ref[...]

    def blur_s(z):
        return mm(lh_gs, mm(z, rw_gs))          # (P*H, W)

    mu1 = blur_s(x)
    mu2 = blur_s(y)
    mu1_sq = mu1 * mu1
    mu2_sq = mu2 * mu2
    mu12 = mu1 * mu2
    s1 = blur_s(xx) - mu1_sq
    s2 = blur_s(yy) - mu2_sq
    s12 = blur_s(xy) - mu12
    ssim_map = ((2.0 * mu12 + _C1) * (2.0 * s12 + _C2)) / \
               ((mu1_sq + mu2_sq + _C1) * (s1 + s2 + _C2))
    ssim_same_sum = jnp.sum(mask_rows(ssim_map, H))

    # ---- MS-SSIM level 0 (pytorch_msssim: 'valid' gaussian conv) ----
    rw_gv = rw_gv_ref[...]
    lh_gv = lh_gv_ref[...]

    def blur_v(z):
        return mm(lh_gv, mm(z, rw_gv))          # (P*Ho, Wo)

    m1 = blur_v(x)
    m2 = blur_v(y)
    m1_sq = m1 * m1
    m2_sq = m2 * m2
    m12 = m1 * m2
    vs1 = blur_v(xx) - m1_sq
    vs2 = blur_v(yy) - m2_sq
    vs12 = blur_v(xy) - m12
    v1 = 2.0 * vs12 + _C2
    v2 = vs1 + vs2 + _C2
    cs_map = v1 / v2
    ssim_map_v = cs_map * ((2.0 * m12 + _C1) / (m1_sq + m2_sq + _C1))
    l0_ssim_sum = jnp.sum(mask_rows(ssim_map_v, Ho))
    l0_cs_sum = jnp.sum(mask_rows(cs_map, Ho))

    # ---- accumulate the 8 partial sums into the lane-dense accumulator ----
    lane = jax.lax.broadcasted_iota(jnp.int32, out_ref.shape, 1)
    vals = (sum_sq, sum_abs, sum_grad, h_tv, w_tv,
            ssim_same_sum, l0_ssim_sum, l0_cs_sum)
    upd = jnp.zeros(out_ref.shape, jnp.float32)
    for k, v in enumerate(vals):
        upd = upd + jnp.where(lane == k, v, 0.0)
    out_ref[...] += upd


def fused_loss_sums(o_flat, t_flat):
    """One pallas_call over the (B*C, H, W) planes.  Returns (128,) f32:
       [0] sum((o-t)^2)  [1] sum|o-t|  [2] sum(|gx|+|gy|) of sobel(o-t)
       [3] h_tv  [4] w_tv  [5] sum(ssim_map 'same')  [6] sum(ssim_map L0)  [7] sum(cs_map L0)
    """
    BC, H, W = o_flat.shape
    ws0 = min(11, H, W)
    Ho, Wo = H - ws0 + 1, W - ws0 + 1

    # ---- partition: ncores (parallel) x NB grid steps x P planes per step ----
    ncores = _NCORES
    p_cap = max(1, min(16, 512 // H))          # cap block-diag H-pass matrices (VMEM budget)
    P = min(p_cap, max(1, _cdiv(BC, ncores)))
    if (P * H) % 8 != 0:                       # BlockSpec sublane rule; fall back to one block
        ncores, P = 1, BC
    NB = _cdiv(BC, ncores * P)
    BCpad = ncores * NB * P
    padded = BCpad != BC

    if padded:
        pad = ((0, BCpad - BC), (0, 0), (0, 0))
        o_flat = jnp.pad(o_flat, pad)
        t_flat = jnp.pad(t_flat, pad)
    o2 = o_flat.reshape(BCpad * H, W)
    t2 = t_flat.reshape(BCpad * H, W)

    # ---- constant filter matrices ----
    g11 = _gaussian_1d(11)                     # pytorch_ssim window
    gv = _gaussian_1d(ws0)                     # pytorch_msssim level-0 window
    smooth = ((-1, 1.0), (0, 2.0), (1, 1.0))   # sobel [1, 2, 1]
    diff = ((-1, -1.0), (1, 1.0))              # sobel [-1, 0, 1]

    rw_gs = jnp.asarray(_toeplitz_same(W, g11).T)        # (W, W)
    rw_gv = jnp.asarray(_toeplitz_valid(W, gv).T)        # (W, Wo)
    rw_dx = jnp.asarray(_clamped_band(W, diff).T)        # (W, W)
    rw_sx = jnp.asarray(_clamped_band(W, smooth).T)      # (W, W)
    rw_tv = jnp.asarray(_diff_band(W).T)                 # (W, W-1)

    lh_gs = jnp.asarray(_block_diag(_toeplitz_same(H, g11), P))   # (P*H,  P*H)
    lh_gv = jnp.asarray(_block_diag(_toeplitz_valid(H, gv), P))   # (P*Ho, P*H)
    lh_sy = jnp.asarray(_block_diag(_clamped_band(H, smooth), P))
    lh_dy = jnp.asarray(_block_diag(_clamped_band(H, diff), P))
    lh_tv = jnp.asarray(_block_diag(_diff_band(H), P))            # (P*(H-1), P*H)

    consts = (rw_gs, rw_gv, rw_dx, rw_sx, rw_tv, lh_gs, lh_gv, lh_sy, lh_dy, lh_tv)
    const_specs = [pl.BlockSpec(m.shape, lambda c, j: (0, 0)) for m in consts]

    kernel = functools.partial(_fused_loss_kernel, P=P, H=H, Ho=Ho,
                               BC=BC, NB=NB, padded=padded)
    out = pl.pallas_call(
        kernel,
        out_shape=jax.ShapeDtypeStruct((ncores * 8, 128), jnp.float32),
        grid=(ncores, NB),
        in_specs=[pl.BlockSpec((P * H, W), lambda c, j: (c * NB + j, 0)),
                  pl.BlockSpec((P * H, W), lambda c, j: (c * NB + j, 0))] + const_specs,
        out_specs=pl.BlockSpec((8, 128), lambda c, j: (c, 0)),
        compiler_params=pltpu.CompilerParams(
            dimension_semantics=("parallel", "arbitrary"),
            vmem_limit_bytes=32 * 1024 * 1024),
    )(o2, t2, *consts)

    # per-core partial sums -> total
    return out.reshape(ncores, 8, 128)[:, 0, :].sum(axis=0)


# ---------------------------------------------------------------------------
# MS-SSIM levels 1..4 on pooled (<=16x16) planes: plain JAX (launch overhead
# would dominate a Pallas kernel here, per the performance review).
# ---------------------------------------------------------------------------
def _ssim_valid_mean(x, y, ws):
    _, H, W = x.shape
    g = _gaussian_1d(ws)
    ah = jnp.asarray(_toeplitz_valid(H, g))          # (Ho, H)
    awt = jnp.asarray(_toeplitz_valid(W, g).T)       # (W, Wo)

    def blur(z):
        return jnp.einsum('oh,phw->pow', ah, jnp.einsum('phw,wo->pho', z, awt))

    mu1 = blur(x)
    mu2 = blur(y)
    mu1_sq, mu2_sq, mu12 = mu1 * mu1, mu2 * mu2, mu1 * mu2
    s1 = blur(x * x) - mu1_sq
    s2 = blur(y * y) - mu2_sq
    s12 = blur(x * y) - mu12
    v1 = 2.0 * s12 + _C2
    v2 = s1 + s2 + _C2
    ssim = jnp.mean(((2.0 * mu12 + _C1) * v1) / ((mu1_sq + mu2_sq + _C1) * v2))
    cs = jnp.mean(v1 / v2)
    return ssim, cs


def _avg_pool2(x):
    BC, H, W = x.shape
    return x.reshape(BC, H // 2, 2, W // 2, 2).mean(axis=(2, 4))


def _msssim(o_flat, t_flat, l0_ssim, l0_cs, normalize=True):
    # pytorch_msssim.MSSSIM: 5 levels, valid conv, window min(11,H,W), avg_pool2d(2) between levels
    sims, css = [l0_ssim], [l0_cs]
    x, y = o_flat, t_flat
    for _ in range(len(_MSSSIM_WEIGHTS) - 1):
        x = _avg_pool2(x)
        y = _avg_pool2(y)
        _, H, W = x.shape
        s, cs = _ssim_valid_mean(x, y, min(11, H, W))
        sims.append(s)
        css.append(cs)
    mssim = jnp.stack(sims)
    mcs = jnp.stack(css)
    if normalize:
        mssim = (mssim + 1.0) / 2.0
        mcs = (mcs + 1.0) / 2.0
    w = jnp.asarray(_MSSSIM_WEIGHTS)
    pow1 = mcs ** w
    pow2 = mssim ** w
    return jnp.prod(pow1[:-1] * pow2[-1])            # reference repo's combination rule


# ---------------------------------------------------------------------------
# GeneratorLoss.forward
# ---------------------------------------------------------------------------
@jax.jit
def generator_loss(output, target):
    # output, target: (B, C, H, W) float32 in [0, 1]
    B, C, H, W = output.shape
    BC = B * C
    o_flat = output.reshape(BC, H, W)
    t_flat = target.reshape(BC, H, W)

    sums = fused_loss_sums(o_flat, t_flat)

    n = BC * H * W
    mse_loss = sums[0] / n
    l1_loss = sums[1] / n
    grad_loss = sums[2] / n                          # torch.mean over (B, C, H, W)

    count_h = C * (H - 1) * W
    count_w = C * H * (W - 1)
    tv_loss = 2.0 * (sums[3] / count_h + sums[4] / count_w) / B   # tv_loss_weight = 1

    ws0 = min(11, H, W)
    Ho, Wo = H - ws0 + 1, W - ws0 + 1
    ssim_val = sums[5] / n
    l0_ssim = sums[6] / (BC * Ho * Wo)
    l0_cs = sums[7] / (BC * Ho * Wo)
    msssim_val = _msssim(o_flat, t_flat, l0_ssim, l0_cs, normalize=True)

    s_loss = 0.7 * (1.0 - msssim_val) / 2.0 + 0.3 * (1.0 - ssim_val) / 2.0
    return mse_loss, l1_loss, s_loss, grad_loss, tv_loss


if __name__ == "__main__":
    key = jax.random.PRNGKey(0)
    k1, k2 = jax.random.split(key)
    B, C, H, W = 2, 3, 32, 32
    output = jax.random.uniform(k1, (B, C, H, W), dtype=jnp.float32)
    target = jax.random.uniform(k2, (B, C, H, W), dtype=jnp.float32)

    losses = generator_loss(output, target)
    losses = jax.block_until_ready(losses)
    print("KERNEL_OK")
</pallas_src>

<mosaic_0001>
module attributes {stable_mosaic.version = 11 : i64} {
  func.func @_fused_loss_kernel(%arg0: i32, %arg1: i32, %arg2: memref<96x32xf32, #tpu.memory_space<vmem>>, %arg3: memref<96x32xf32, #tpu.memory_space<vmem>>, %arg4: memref<32x32xf32, #tpu.memory_space<vmem>>, %arg5: memref<32x22xf32, #tpu.memory_space<vmem>>, %arg6: memref<32x32xf32, #tpu.memory_space<vmem>>, %arg7: memref<32x32xf32, #tpu.memory_space<vmem>>, %arg8: memref<32x31xf32, #tpu.memory_space<vmem>>, %arg9: memref<96x96xf32, #tpu.memory_space<vmem>>, %arg10: memref<66x96xf32, #tpu.memory_space<vmem>>, %arg11: memref<96x96xf32, #tpu.memory_space<vmem>>, %arg12: memref<96x96xf32, #tpu.memory_space<vmem>>, %arg13: memref<93x96xf32, #tpu.memory_space<vmem>>, %arg14: memref<8x128xf32, #tpu.memory_space<vmem>>) attributes {dimension_semantics = [#tpu.dimension_semantics<parallel>, #tpu.dimension_semantics<arbitrary>], iteration_bounds = array<i64: 2, 1>, scalar_prefetch = 0 : i64, scratch_operands = 0 : i64, tpu.core_type = #tpu.core_type<tc>, window_params = [{transform_indices = @transform_0, window_bounds = array<i64: 96, 32>}, {transform_indices = @transform_1, window_bounds = array<i64: 96, 32>}, {pipeline_mode = #tpu.pipeline_mode<synchronous>, transform_indices = @transform_2, window_bounds = array<i64: 32, 32>}, {pipeline_mode = #tpu.pipeline_mode<synchronous>, transform_indices = @transform_3, window_bounds = array<i64: 32, 22>}, {pipeline_mode = #tpu.pipeline_mode<synchronous>, transform_indices = @transform_4, window_bounds = array<i64: 32, 32>}, {pipeline_mode = #tpu.pipeline_mode<synchronous>, transform_indices = @transform_5, window_bounds = array<i64: 32, 32>}, {pipeline_mode = #tpu.pipeline_mode<synchronous>, transform_indices = @transform_6, window_bounds = array<i64: 32, 31>}, {pipeline_mode = #tpu.pipeline_mode<synchronous>, transform_indices = @transform_7, window_bounds = array<i64: 96, 96>}, {pipeline_mode = #tpu.pipeline_mode<synchronous>, transform_indices = @transform_8, window_bounds = array<i64: 66, 96>}, {pipeline_mode = #tpu.pipeline_mode<synchronous>, transform_indices = @transform_9, window_bounds = array<i64: 96, 96>}, {pipeline_mode = #tpu.pipeline_mode<synchronous>, transform_indices = @transform_10, window_bounds = array<i64: 96, 96>}, {pipeline_mode = #tpu.pipeline_mode<synchronous>, transform_indices = @transform_11, window_bounds = array<i64: 93, 96>}, {transform_indices = @transform_12, window_bounds = array<i64: 8, 128>}]} {
    %c0_i32 = arith.constant 0 : i32
    %0 = arith.cmpi eq, %arg1, %c0_i32 : i32
    %1 = arith.extui %0 : i1 to i32
    %c0_i32_0 = arith.constant 0 : i32
    %2 = arith.cmpi ne, %1, %c0_i32_0 : i32
    scf.if %2 {
      %cst_85 = arith.constant 0.000000e+00 : f32
      %187 = vector.broadcast %cst_85 : f32 to vector<8x128xf32>
      %c0_86 = arith.constant 0 : index
      %c0_87 = arith.constant 0 : index
      %188 = vector.load %arg14[%c0_86, %c0_87] : memref<8x128xf32, #tpu.memory_space<vmem>>, vector<8x128xf32>
      tpu.vector_store %arg14[%c0_86, %c0_87], %187 {strides = array<i32>} : memref<8x128xf32, #tpu.memory_space<vmem>>, vector<8x128xf32>,
    } else {
    }
    %c0 = arith.constant 0 : index
    %c0_1 = arith.constant 0 : index
    %3 = vector.load %arg2[%c0, %c0_1] : memref<96x32xf32, #tpu.memory_space<vmem>>, vector<96x32xf32>
    %c0_2 = arith.constant 0 : index
    %c0_3 = arith.constant 0 : index
    %4 = vector.load %arg3[%c0_2, %c0_3] : memref<96x32xf32, #tpu.memory_space<vmem>>, vector<96x32xf32>
    %5 = arith.subf %3, %4 : vector<96x32xf32>
    %6 = arith.mulf %5, %5 : vector<96x32xf32>
    %7 = vector.shape_cast %6 : vector<96x32xf32> to vector<1x96x32xf32>
    %cst = arith.constant dense<0.000000e+00> : vector<1xf32>
    %8 = vector.multi_reduction <add>, %7, %cst [1, 2] : vector<1x96x32xf32> to vector<1xf32>
    %9 = vector.shape_cast %8 : vector<1xf32> to vector<1x1x1xf32>
    %10 = vector.extract %9[0, 0, 0] : f32 from vector<1x1x1xf32>
    %11 = math.absf %5 : vector<96x32xf32>
    %12 = vector.shape_cast %11 : vector<96x32xf32> to vector<1x96x32xf32>
    %cst_4 = arith.constant dense<0.000000e+00> : vector<1xf32>
    %13 = vector.multi_reduction <add>, %12, %cst_4 [1, 2] : vector<1x96x32xf32> to vector<1xf32>
    %14 = vector.shape_cast %13 : vector<1xf32> to vector<1x1x1xf32>
    %15 = vector.extract %14[0, 0, 0] : f32 from vector<1x1x1xf32>
    %c0_5 = arith.constant 0 : index
    %c0_6 = arith.constant 0 : index
    %16 = vector.load %arg11[%c0_5, %c0_6] : memref<96x96xf32, #tpu.memory_space<vmem>>, vector<96x96xf32>
    %c0_7 = arith.constant 0 : index
    %c0_8 = arith.constant 0 : index
    %17 = vector.load %arg6[%c0_7, %c0_8] : memref<32x32xf32, #tpu.memory_space<vmem>>, vector<32x32xf32>
    %cst_9 = arith.constant dense<0.000000e+00> : vector<96x32xf32>
    %18 = tpu.matmul %5, %17, %cst_9 {dimension_numbers = #tpu.dot_dimension_numbers<[1], [0], [0], [1], [0, 0, 1, 1], [], []>} : vector<96x32xf32>, vector<32x32xf32>, vector<96x32xf32> -> vector<96x32xf32>
    %cst_10 = arith.constant dense<0.000000e+00> : vector<96x32xf32>
    %19 = tpu.matmul %16, %18, %cst_10 {dimension_numbers = #tpu.dot_dimension_numbers<[1], [0], [0], [1], [0, 0, 1, 1], [], []>} : vector<96x96xf32>, vector<96x32xf32>, vector<96x32xf32> -> vector<96x32xf32>
    %cst_11 = arith.constant 1.250000e-01 : f32
    %20 = vector.broadcast %cst_11 : f32 to vector<96x32xf32>
    %21 = arith.mulf %19, %20 : vector<96x32xf32>
    %c0_12 = arith.constant 0 : index
    %c0_13 = arith.constant 0 : index
    %22 = vector.load %arg12[%c0_12, %c0_13] : memref<96x96xf32, #tpu.memory_space<vmem>>, vector<96x96xf32>
    %c0_14 = arith.constant 0 : index
    %c0_15 = arith.constant 0 : index
    %23 = vector.load %arg7[%c0_14, %c0_15] : memref<32x32xf32, #tpu.memory_space<vmem>>, vector<32x32xf32>
    %cst_16 = arith.constant dense<0.000000e+00> : vector<96x32xf32>
    %24 = tpu.matmul %5, %23, %cst_16 {dimension_numbers = #tpu.dot_dimension_numbers<[1], [0], [0], [1], [0, 0, 1, 1], [], []>} : vector<96x32xf32>, vector<32x32xf32>, vector<96x32xf32> -> vector<96x32xf32>
    %cst_17 = arith.constant dense<0.000000e+00> : vector<96x32xf32>
    %25 = tpu.matmul %22, %24, %cst_17 {dimension_numbers = #tpu.dot_dimension_numbers<[1], [0], [0], [1], [0, 0, 1, 1], [], []>} : vector<96x96xf32>, vector<96x32xf32>, vector<96x32xf32> -> vector<96x32xf32>
    %cst_18 = arith.constant 1.250000e-01 : f32
    %26 = vector.broadcast %cst_18 : f32 to vector<96x32xf32>
    %27 = arith.mulf %25, %26 : vector<96x32xf32>
    %28 = math.absf %21 : vector<96x32xf32>
    %29 = math.absf %27 : vector<96x32xf32>
    %30 = arith.addf %28, %29 : vector<96x32xf32>
    %31 = vector.shape_cast %30 : vector<96x32xf32> to vector<1x96x32xf32>
    %cst_19 = arith.constant dense<0.000000e+00> : vector<1xf32>
    %32 = vector.multi_reduction <add>, %31, %cst_19 [1, 2] : vector<1x96x32xf32> to vector<1xf32>
    %33 = vector.shape_cast %32 : vector<1xf32> to vector<1x1x1xf32>
    %34 = vector.extract %33[0, 0, 0] : f32 from vector<1x1x1xf32>
    %c0_20 = arith.constant 0 : index
    %c0_21 = arith.constant 0 : index
    %35 = vector.load %arg8[%c0_20, %c0_21] : memref<32x31xf32, #tpu.memory_space<vmem>>, vector<32x31xf32>
    %cst_22 = arith.constant dense<0.000000e+00> : vector<96x31xf32>
    %36 = tpu.matmul %3, %35, %cst_22 {dimension_numbers = #tpu.dot_dimension_numbers<[1], [0], [0], [1], [0, 0, 1, 1], [], []>} : vector<96x32xf32>, vector<32x31xf32>, vector<96x31xf32> -> vector<96x31xf32>
    %c0_23 = arith.constant 0 : index
    %c0_24 = arith.constant 0 : index
    %37 = vector.load %arg13[%c0_23, %c0_24] : memref<93x96xf32, #tpu.memory_space<vmem>>, vector<93x96xf32>
    %cst_25 = arith.constant dense<0.000000e+00> : vector<93x32xf32>
    %38 = tpu.matmul %37, %3, %cst_25 {dimension_numbers = #tpu.dot_dimension_numbers<[1], [0], [0], [1], [0, 0, 1, 1], [], []>} : vector<93x96xf32>, vector<96x32xf32>, vector<93x32xf32> -> vector<93x32xf32>
    %39 = arith.mulf %36, %36 : vector<96x31xf32>
    %40 = vector.shape_cast %39 : vector<96x31xf32> to vector<1x96x31xf32>
    %cst_26 = arith.constant dense<0.000000e+00> : vector<1xf32>
    %41 = vector.multi_reduction <add>, %40, %cst_26 [1, 2] : vector<1x96x31xf32> to vector<1xf32>
    %42 = vector.shape_cast %41 : vector<1xf32> to vector<1x1x1xf32>
    %43 = vector.extract %42[0, 0, 0] : f32 from vector<1x1x1xf32>
    %44 = arith.mulf %38, %38 : vector<93x32xf32>
    %45 = vector.shape_cast %44 : vector<93x32xf32> to vector<1x93x32xf32>
    %cst_27 = arith.constant dense<0.000000e+00> : vector<1xf32>
    %46 = vector.multi_reduction <add>, %45, %cst_27 [1, 2] : vector<1x93x32xf32> to vector<1xf32>
    %47 = vector.shape_cast %46 : vector<1xf32> to vector<1x1x1xf32>
    %48 = vector.extract %47[0, 0, 0] : f32 from vector<1x1x1xf32>
    %49 = arith.mulf %3, %3 : vector<96x32xf32>
    %50 = arith.mulf %4, %4 : vector<96x32xf32>
    %51 = arith.mulf %3, %4 : vector<96x32xf32>
    %c0_28 = arith.constant 0 : index
    %c0_29 = arith.constant 0 : index
    %52 = vector.load %arg4[%c0_28, %c0_29] : memref<32x32xf32, #tpu.memory_space<vmem>>, vector<32x32xf32>
    %c0_30 = arith.constant 0 : index
    %c0_31 = arith.constant 0 : index
    %53 = vector.load %arg9[%c0_30, %c0_31] : memref<96x96xf32, #tpu.memory_space<vmem>>, vector<96x96xf32>
    %cst_32 = arith.constant dense<0.000000e+00> : vector<96x32xf32>
    %54 = tpu.matmul %3, %52, %cst_32 {dimension_numbers = #tpu.dot_dimension_numbers<[1], [0], [0], [1], [0, 0, 1, 1], [], []>} : vector<96x32xf32>, vector<32x32xf32>, vector<96x32xf32> -> vector<96x32xf32>
    %cst_33 = arith.constant dense<0.000000e+00> : vector<96x32xf32>
    %55 = tpu.matmul %53, %54, %cst_33 {dimension_numbers = #tpu.dot_dimension_numbers<[1], [0], [0], [1], [0, 0, 1, 1], [], []>} : vector<96x96xf32>, vector<96x32xf32>, vector<96x32xf32> -> vector<96x32xf32>
    %cst_34 = arith.constant dense<0.000000e+00> : vector<96x32xf32>
    %56 = tpu.matmul %4, %52, %cst_34 {dimension_numbers = #tpu.dot_dimension_numbers<[1], [0], [0], [1], [0, 0, 1, 1], [], []>} : vector<96x32xf32>, vector<32x32xf32>, vector<96x32xf32> -> vector<96x32xf32>
    %cst_35 = arith.constant dense<0.000000e+00> : vector<96x32xf32>
    %57 = tpu.matmul %53, %56, %cst_35 {dimension_numbers = #tpu.dot_dimension_numbers<[1], [0], [0], [1], [0, 0, 1, 1], [], []>} : vector<96x96xf32>, vector<96x32xf32>, vector<96x32xf32> -> vector<96x32xf32>
    %58 = arith.mulf %55, %55 : vector<96x32xf32>
    %59 = arith.mulf %57, %57 : vector<96x32xf32>
    %60 = arith.mulf %55, %57 : vector<96x32xf32>
    %cst_36 = arith.constant dense<0.000000e+00> : vector<96x32xf32>
    %61 = tpu.matmul %49, %52, %cst_36 {dimension_numbers = #tpu.dot_dimension_numbers<[1], [0], [0], [1], [0, 0, 1, 1], [], []>} : vector<96x32xf32>, vector<32x32xf32>, vector<96x32xf32> -> vector<96x32xf32>
    %cst_37 = arith.constant dense<0.000000e+00> : vector<96x32xf32>
    %62 = tpu.matmul %53, %61, %cst_37 {dimension_numbers = #tpu.dot_dimension_numbers<[1], [0], [0], [1], [0, 0, 1, 1], [], []>} : vector<96x96xf32>, vector<96x32xf32>, vector<96x32xf32> -> vector<96x32xf32>
    %63 = arith.subf %62, %58 : vector<96x32xf32>
    %cst_38 = arith.constant dense<0.000000e+00> : vector<96x32xf32>
    %64 = tpu.matmul %50, %52, %cst_38 {dimension_numbers = #tpu.dot_dimension_numbers<[1], [0], [0], [1], [0, 0, 1, 1], [], []>} : vector<96x32xf32>, vector<32x32xf32>, vector<96x32xf32> -> vector<96x32xf32>
    %cst_39 = arith.constant dense<0.000000e+00> : vector<96x32xf32>
    %65 = tpu.matmul %53, %64, %cst_39 {dimension_numbers = #tpu.dot_dimension_numbers<[1], [0], [0], [1], [0, 0, 1, 1], [], []>} : vector<96x96xf32>, vector<96x32xf32>, vector<96x32xf32> -> vector<96x32xf32>
    %66 = arith.subf %65, %59 : vector<96x32xf32>
    %cst_40 = arith.constant dense<0.000000e+00> : vector<96x32xf32>
    %67 = tpu.matmul %51, %52, %cst_40 {dimension_numbers = #tpu.dot_dimension_numbers<[1], [0], [0], [1], [0, 0, 1, 1], [], []>} : vector<96x32xf32>, vector<32x32xf32>, vector<96x32xf32> -> vector<96x32xf32>
    %cst_41 = arith.constant dense<0.000000e+00> : vector<96x32xf32>
    %68 = tpu.matmul %53, %67, %cst_41 {dimension_numbers = #tpu.dot_dimension_numbers<[1], [0], [0], [1], [0, 0, 1, 1], [], []>} : vector<96x96xf32>, vector<96x32xf32>, vector<96x32xf32> -> vector<96x32xf32>
    %69 = arith.subf %68, %60 : vector<96x32xf32>
    %cst_42 = arith.constant 2.000000e+00 : f32
    %70 = vector.broadcast %cst_42 : f32 to vector<96x32xf32>
    %71 = arith.mulf %70, %60 : vector<96x32xf32>
    %cst_43 = arith.constant 9.99999974E-5 : f32
    %72 = vector.broadcast %cst_43 : f32 to vector<96x32xf32>
    %73 = arith.addf %71, %72 : vector<96x32xf32>
    %cst_44 = arith.constant 2.000000e+00 : f32
    %74 = vector.broadcast %cst_44 : f32 to vector<96x32xf32>
    %75 = arith.mulf %74, %69 : vector<96x32xf32>
    %cst_45 = arith.constant 8.99999984E-4 : f32
    %76 = vector.broadcast %cst_45 : f32 to vector<96x32xf32>
    %77 = arith.addf %75, %76 : vector<96x32xf32>
    %78 = arith.mulf %73, %77 : vector<96x32xf32>
    %79 = arith.addf %58, %59 : vector<96x32xf32>
    %cst_46 = arith.constant 9.99999974E-5 : f32
    %80 = vector.broadcast %cst_46 : f32 to vector<96x32xf32>
    %81 = arith.addf %79, %80 : vector<96x32xf32>
    %82 = arith.addf %63, %66 : vector<96x32xf32>
    %cst_47 = arith.constant 8.99999984E-4 : f32
    %83 = vector.broadcast %cst_47 : f32 to vector<96x32xf32>
    %84 = arith.addf %82, %83 : vector<96x32xf32>
    %85 = arith.mulf %81, %84 : vector<96x32xf32>
    %86 = arith.divf %78, %85 : vector<96x32xf32>
    %87 = vector.shape_cast %86 : vector<96x32xf32> to vector<1x96x32xf32>
    %cst_48 = arith.constant dense<0.000000e+00> : vector<1xf32>
    %88 = vector.multi_reduction <add>, %87, %cst_48 [1, 2] : vector<1x96x32xf32> to vector<1xf32>
    %89 = vector.shape_cast %88 : vector<1xf32> to vector<1x1x1xf32>
    %90 = vector.extract %89[0, 0, 0] : f32 from vector<1x1x1xf32>
    %c0_49 = arith.constant 0 : index
    %c0_50 = arith.constant 0 : index
    %91 = vector.load %arg5[%c0_49, %c0_50] : memref<32x22xf32, #tpu.memory_space<vmem>>, vector<32x22xf32>
    %c0_51 = arith.constant 0 : index
    %c0_52 = arith.constant 0 : index
    %92 = vector.load %arg10[%c0_51, %c0_52] : memref<66x96xf32, #tpu.memory_space<vmem>>, vector<66x96xf32>
    %cst_53 = arith.constant dense<0.000000e+00> : vector<96x22xf32>
    %93 = tpu.matmul %3, %91, %cst_53 {dimension_numbers = #tpu.dot_dimension_numbers<[1], [0], [0], [1], [0, 0, 1, 1], [], []>} : vector<96x32xf32>, vector<32x22xf32>, vector<96x22xf32> -> vector<96x22xf32>
    %cst_54 = arith.constant dense<0.000000e+00> : vector<66x22xf32>
    %94 = tpu.matmul %92, %93, %cst_54 {dimension_numbers = #tpu.dot_dimension_numbers<[1], [0], [0], [1], [0, 0, 1, 1], [], []>} : vector<66x96xf32>, vector<96x22xf32>, vector<66x22xf32> -> vector<66x22xf32>
    %cst_55 = arith.constant dense<0.000000e+00> : vector<96x22xf32>
    %95 = tpu.matmul %4, %91, %cst_55 {dimension_numbers = #tpu.dot_dimension_numbers<[1], [0], [0], [1], [0, 0, 1, 1], [], []>} : vector<96x32xf32>, vector<32x22xf32>, vector<96x22xf32> -> vector<96x22xf32>
    %cst_56 = arith.constant dense<0.000000e+00> : vector<66x22xf32>
    %96 = tpu.matmul %92, %95, %cst_56 {dimension_numbers = #tpu.dot_dimension_numbers<[1], [0], [0], [1], [0, 0, 1, 1], [], []>} : vector<66x96xf32>, vector<96x22xf32>, vector<66x22xf32> -> vector<66x22xf32>
    %97 = arith.mulf %94, %94 : vector<66x22xf32>
    %98 = arith.mulf %96, %96 : vector<66x22xf32>
    %99 = arith.mulf %94, %96 : vector<66x22xf32>
    %cst_57 = arith.constant dense<0.000000e+00> : vector<96x22xf32>
    %100 = tpu.matmul %49, %91, %cst_57 {dimension_numbers = #tpu.dot_dimension_numbers<[1], [0], [0], [1], [0, 0, 1, 1], [], []>} : vector<96x32xf32>, vector<32x22xf32>, vector<96x22xf32> -> vector<96x22xf32>
    %cst_58 = arith.constant dense<0.000000e+00> : vector<66x22xf32>
    %101 = tpu.matmul %92, %100, %cst_58 {dimension_numbers = #tpu.dot_dimension_numbers<[1], [0], [0], [1], [0, 0, 1, 1], [], []>} : vector<66x96xf32>, vector<96x22xf32>, vector<66x22xf32> -> vector<66x22xf32>
    %102 = arith.subf %101, %97 : vector<66x22xf32>
    %cst_59 = arith.constant dense<0.000000e+00> : vector<96x22xf32>
    %103 = tpu.matmul %50, %91, %cst_59 {dimension_numbers = #tpu.dot_dimension_numbers<[1], [0], [0], [1], [0, 0, 1, 1], [], []>} : vector<96x32xf32>, vector<32x22xf32>, vector<96x22xf32> -> vector<96x22xf32>
    %cst_60 = arith.constant dense<0.000000e+00> : vector<66x22xf32>
    %104 = tpu.matmul %92, %103, %cst_60 {dimension_numbers = #tpu.dot_dimension_numbers<[1], [0], [0], [1], [0, 0, 1, 1], [], []>} : vector<66x96xf32>, vector<96x22xf32>, vector<66x22xf32> -> vector<66x22xf32>
    %105 = arith.subf %104, %98 : vector<66x22xf32>
    %cst_61 = arith.constant dense<0.000000e+00> : vector<96x22xf32>
    %106 = tpu.matmul %51, %91, %cst_61 {dimension_numbers = #tpu.dot_dimension_numbers<[1], [0], [0], [1], [0, 0, 1, 1], [], []>} : vector<96x32xf32>, vector<32x22xf32>, vector<96x22xf32> -> vector<96x22xf32>
    %cst_62 = arith.constant dense<0.000000e+00> : vector<66x22xf32>
    %107 = tpu.matmul %92, %106, %cst_62 {dimension_numbers = #tpu.dot_dimension_numbers<[1], [0], [0], [1], [0, 0, 1, 1], [], []>} : vector<66x96xf32>, vector<96x22xf32>, vector<66x22xf32> -> vector<66x22xf32>
    %108 = arith.subf %107, %99 : vector<66x22xf32>
    %cst_63 = arith.constant 2.000000e+00 : f32
    %109 = vector.broadcast %cst_63 : f32 to vector<66x22xf32>
    %110 = arith.mulf %109, %108 : vector<66x22xf32>
    %cst_64 = arith.constant 8.99999984E-4 : f32
    %111 = vector.broadcast %cst_64 : f32 to vector<66x22xf32>
    %112 = arith.addf %110, %111 : vector<66x22xf32>
    %113 = arith.addf %102, %105 : vector<66x22xf32>
    %cst_65 = arith.constant 8.99999984E-4 : f32
    %114 = vector.broadcast %cst_65 : f32 to vector<66x22xf32>
    %115 = arith.addf %113, %114 : vector<66x22xf32>
    %116 = arith.divf %112, %115 : vector<66x22xf32>
    %cst_66 = arith.constant 2.000000e+00 : f32
    %117 = vector.broadcast %cst_66 : f32 to vector<66x22xf32>
    %118 = arith.mulf %117, %99 : vector<66x22xf32>
    %cst_67 = arith.constant 9.99999974E-5 : f32
    %119 = vector.broadcast %cst_67 : f32 to vector<66x22xf32>
    %120 = arith.addf %118, %119 : vector<66x22xf32>
    %121 = arith.addf %97, %98 : vector<66x22xf32>
    %cst_68 = arith.constant 9.99999974E-5 : f32
    %122 = vector.broadcast %cst_68 : f32 to vector<66x22xf32>
    %123 = arith.addf %121, %122 : vector<66x22xf32>
    %124 = arith.divf %120, %123 : vector<66x22xf32>
    %125 = arith.mulf %116, %124 : vector<66x22xf32>
    %126 = vector.shape_cast %125 : vector<66x22xf32> to vector<1x66x22xf32>
    %cst_69 = arith.constant dense<0.000000e+00> : vector<1xf32>
    %127 = vector.multi_reduction <add>, %126, %cst_69 [1, 2] : vector<1x66x22xf32> to vector<1xf32>
    %128 = vector.shape_cast %127 : vector<1xf32> to vector<1x1x1xf32>
    %129 = vector.extract %128[0, 0, 0] : f32 from vector<1x1x1xf32>
    %130 = vector.shape_cast %116 : vector<66x22xf32> to vector<1x66x22xf32>
    %cst_70 = arith.constant dense<0.000000e+00> : vector<1xf32>
    %131 = vector.multi_reduction <add>, %130, %cst_70 [1, 2] : vector<1x66x22xf32> to vector<1xf32>
    %132 = vector.shape_cast %131 : vector<1xf32> to vector<1x1x1xf32>
    %133 = vector.extract %132[0, 0, 0] : f32 from vector<1x1x1xf32>
    %134 = tpu.iota {dimensions = array<i32: 1>} : vector<8x128xi32>
    %cst_71 = arith.constant 0.000000e+00 : f32
    %135 = vector.broadcast %cst_71 : f32 to vector<8x128xf32>
    %c0_i32_72 = arith.constant 0 : i32
    %136 = vector.broadcast %c0_i32_72 : i32 to vector<8x128xi32>
    %137 = arith.cmpi eq, %134, %136 : vector<8x128xi32>
    %cst_73 = arith.constant 0.000000e+00 : f32
    %138 = vector.broadcast %10 : f32 to vector<8x128xf32>
    %139 = vector.broadcast %cst_73 : f32 to vector<8x128xf32>
    %140 = arith.select %137, %138, %139 : vector<8x128xi1>, vector<8x128xf32>
    %141 = arith.addf %135, %140 : vector<8x128xf32>
    %c1_i32 = arith.constant 1 : i32
    %142 = vector.broadcast %c1_i32 : i32 to vector<8x128xi32>
    %143 = arith.cmpi eq, %134, %142 : vector<8x128xi32>
    %cst_74 = arith.constant 0.000000e+00 : f32
    %144 = vector.broadcast %15 : f32 to vector<8x128xf32>
    %145 = vector.broadcast %cst_74 : f32 to vector<8x128xf32>
    %146 = arith.select %143, %144, %145 : vector<8x128xi1>, vector<8x128xf32>
    %147 = arith.addf %141, %146 : vector<8x128xf32>
    %c2_i32 = arith.constant 2 : i32
    %148 = vector.broadcast %c2_i32 : i32 to vector<8x128xi32>
    %149 = arith.cmpi eq, %134, %148 : vector<8x128xi32>
    %cst_75 = arith.constant 0.000000e+00 : f32
    %150 = vector.broadcast %34 : f32 to vector<8x128xf32>
    %151 = vector.broadcast %cst_75 : f32 to vector<8x128xf32>
    %152 = arith.select %149, %150, %151 : vector<8x128xi1>, vector<8x128xf32>
    %153 = arith.addf %147, %152 : vector<8x128xf32>
    %c3_i32 = arith.constant 3 : i32
    %154 = vector.broadcast %c3_i32 : i32 to vector<8x128xi32>
    %155 = arith.cmpi eq, %134, %154 : vector<8x128xi32>
    %cst_76 = arith.constant 0.000000e+00 : f32
    %156 = vector.broadcast %48 : f32 to vector<8x128xf32>
    %157 = vector.broadcast %cst_76 : f32 to vector<8x128xf32>
    %158 = arith.select %155, %156, %157 : vector<8x128xi1>, vector<8x128xf32>
    %159 = arith.addf %153, %158 : vector<8x128xf32>
    %c4_i32 = arith.constant 4 : i32
    %160 = vector.broadcast %c4_i32 : i32 to vector<8x128xi32>
    %161 = arith.cmpi eq, %134, %160 : vector<8x128xi32>
    %cst_77 = arith.constant 0.000000e+00 : f32
    %162 = vector.broadcast %43 : f32 to vector<8x128xf32>
    %163 = vector.broadcast %cst_77 : f32 to vector<8x128xf32>
    %164 = arith.select %161, %162, %163 : vector<8x128xi1>, vector<8x128xf32>
    %165 = arith.addf %159, %164 : vector<8x128xf32>
    %c5_i32 = arith.constant 5 : i32
    %166 = vector.broadcast %c5_i32 : i32 to vector<8x128xi32>
    %167 = arith.cmpi eq, %134, %166 : vector<8x128xi32>
    %cst_78 = arith.constant 0.000000e+00 : f32
    %168 = vector.broadcast %90 : f32 to vector<8x128xf32>
    %169 = vector.broadcast %cst_78 : f32 to vector<8x128xf32>
    %170 = arith.select %167, %168, %169 : vector<8x128xi1>, vector<8x128xf32>
    %171 = arith.addf %165, %170 : vector<8x128xf32>
    %c6_i32 = arith.constant 6 : i32
    %172 = vector.broadcast %c6_i32 : i32 to vector<8x128xi32>
    %173 = arith.cmpi eq, %134, %172 : vector<8x128xi32>
    %cst_79 = arith.constant 0.000000e+00 : f32
    %174 = vector.broadcast %129 : f32 to vector<8x128xf32>
    %175 = vector.broadcast %cst_79 : f32 to vector<8x128xf32>
    %176 = arith.select %173, %174, %175 : vector<8x128xi1>, vector<8x128xf32>
    %177 = arith.addf %171, %176 : vector<8x128xf32>
    %c7_i32 = arith.constant 7 : i32
    %178 = vector.broadcast %c7_i32 : i32 to vector<8x128xi32>
    %179 = arith.cmpi eq, %134, %178 : vector<8x128xi32>
    %cst_80 = arith.constant 0.000000e+00 : f32
    %180 = vector.broadcast %133 : f32 to vector<8x128xf32>
    %181 = vector.broadcast %cst_80 : f32 to vector<8x128xf32>
    %182 = arith.select %179, %180, %181 : vector<8x128xi1>, vector<8x128xf32>
    %183 = arith.addf %177, %182 : vector<8x128xf32>
    %c0_81 = arith.constant 0 : index
    %c0_82 = arith.constant 0 : index
    %184 = vector.load %arg14[%c0_81, %c0_82] : memref<8x128xf32, #tpu.memory_space<vmem>>, vector<8x128xf32>
    %185 = arith.addf %184, %183 : vector<8x128xf32>
    %c0_83 = arith.constant 0 : index
    %c0_84 = arith.constant 0 : index
    %186 = vector.load %arg14[%c0_83, %c0_84] : memref<8x128xf32, #tpu.memory_space<vmem>>, vector<8x128xf32>
    tpu.vector_store %arg14[%c0_83, %c0_84], %185 {strides = array<i32>} : memref<8x128xf32, #tpu.memory_space<vmem>>, vector<8x128xf32>,
    return
  }
  func.func @transform_0(%arg0: i32, %arg1: i32) -> (i32, i32) {
    %c1_i32 = arith.constant 1 : i32
    %0 = arith.muli %arg0, %c1_i32 : i32
    %1 = arith.addi %0, %arg1 : i32
    %c0_i32 = arith.constant 0 : i32
    %c0_i32_0 = arith.constant 0 : i32
    return %1, %c0_i32 : i32, i32
  }
  func.func @transform_1(%arg0: i32, %arg1: i32) -> (i32, i32) {
    %c1_i32 = arith.constant 1 : i32
    %0 = arith.muli %arg0, %c1_i32 : i32
    %1 = arith.addi %0, %arg1 : i32
    %c0_i32 = arith.constant 0 : i32
    %c0_i32_0 = arith.constant 0 : i32
    return %1, %c0_i32 : i32, i32
  }
  func.func @transform_2(%arg0: i32, %arg1: i32) -> (i32, i32) {
    %c0_i32 = arith.constant 0 : i32
    %c0_i32_0 = arith.constant 0 : i32
    %c0_i32_1 = arith.constant 0 : i32
    return %c0_i32, %c0_i32_0 : i32, i32
  }
  func.func @transform_3(%arg0: i32, %arg1: i32) -> (i32, i32) {
    %c0_i32 = arith.constant 0 : i32
    %c0_i32_0 = arith.constant 0 : i32
    %c0_i32_1 = arith.constant 0 : i32
    return %c0_i32, %c0_i32_0 : i32, i32
  }
  func.func @transform_4(%arg0: i32, %arg1: i32) -> (i32, i32) {
    %c0_i32 = arith.constant 0 : i32
    %c0_i32_0 = arith.constant 0 : i32
    %c0_i32_1 = arith.constant 0 : i32
    return %c0_i32, %c0_i32_0 : i32, i32
  }
  func.func @transform_5(%arg0: i32, %arg1: i32) -> (i32, i32) {
    %c0_i32 = arith.constant 0 : i32
    %c0_i32_0 = arith.constant 0 : i32
    %c0_i32_1 = arith.constant 0 : i32
    return %c0_i32, %c0_i32_0 : i32, i32
  }
  func.func @transform_6(%arg0: i32, %arg1: i32) -> (i32, i32) {
    %c0_i32 = arith.constant 0 : i32
    %c0_i32_0 = arith.constant 0 : i32
    %c0_i32_1 = arith.constant 0 : i32
    return %c0_i32, %c0_i32_0 : i32, i32
  }
  func.func @transform_7(%arg0: i32, %arg1: i32) -> (i32, i32) {
    %c0_i32 = arith.constant 0 : i32
    %c0_i32_0 = arith.constant 0 : i32
    %c0_i32_1 = arith.constant 0 : i32
    return %c0_i32, %c0_i32_0 : i32, i32
  }
  func.func @transform_8(%arg0: i32, %arg1: i32) -> (i32, i32) {
    %c0_i32 = arith.constant 0 : i32
    %c0_i32_0 = arith.constant 0 : i32
    %c0_i32_1 = arith.constant 0 : i32
    return %c0_i32, %c0_i32_0 : i32, i32
  }
  func.func @transform_9(%arg0: i32, %arg1: i32) -> (i32, i32) {
    %c0_i32 = arith.constant 0 : i32
    %c0_i32_0 = arith.constant 0 : i32
    %c0_i32_1 = arith.constant 0 : i32
    return %c0_i32, %c0_i32_0 : i32, i32
  }
  func.func @transform_10(%arg0: i32, %arg1: i32) -> (i32, i32) {
    %c0_i32 = arith.constant 0 : i32
    %c0_i32_0 = arith.constant 0 : i32
    %c0_i32_1 = arith.constant 0 : i32
    return %c0_i32, %c0_i32_0 : i32, i32
  }
  func.func @transform_11(%arg0: i32, %arg1: i32) -> (i32, i32) {
    %c0_i32 = arith.constant 0 : i32
    %c0_i32_0 = arith.constant 0 : i32
    %c0_i32_1 = arith.constant 0 : i32
    return %c0_i32, %c0_i32_0 : i32, i32
  }
  func.func @transform_12(%arg0: i32, %arg1: i32) -> (i32, i32) {
    %c0_i32 = arith.constant 0 : i32
    %c0_i32_0 = arith.constant 0 : i32
    return %arg0, %c0_i32 : i32, i32
  }
}

</mosaic_0001>

<bundles_post_ra>
// kernel: generator_loss.1
= control target key start
LH: loop header
LB: loop body
LE: loop exit
PB: predicated region body
PF: predicated region fallthrough
CT: control target
= control target key end

     0   :  { %s9900_s0 = inlined_call_operand.hbm [shape: f32[192,32], index: 0, kind: input, shape index: {}]   ;;  %s9901_s1 = inlined_call_operand.hbm [shape: f32[192,32], index: 1, kind: input, shape index: {}]   ;;  %s9902_s2 = inlined_call_operand.vmem [shape: f32[32,32], index: 2, kind: input, shape index: {}]   ;;  %s9903_s3 = inlined_call_operand.hbm [shape: f32[32,22], index: 3, kind: input, shape index: {}]   ;;  %s9904_s4 = inlined_call_operand.hbm [shape: f32[32,32], index: 4, kind: input, shape index: {}]   ;;  %s9905_s5 = inlined_call_operand.hbm [shape: f32[32,32], index: 5, kind: input, shape index: {}]   ;;  %s9906_s6 = inlined_call_operand.hbm [shape: f32[32,31], index: 6, kind: input, shape index: {}]   ;;  %s9907_s7 = inlined_call_operand.hbm [shape: f32[96,96], index: 7, kind: input, shape index: {}]   ;;  %s9908_s8 = inlined_call_operand.hbm [shape: f32[66,96], index: 8, kind: input, shape index: {}]   ;;  %s9909_s9 = inlined_call_operand.hbm [shape: f32[96,96], index: 9, kind: input, shape index: {}]   ;;  %s9910_s10 = inlined_call_operand.hbm [shape: f32[96,96], index: 10, kind: input, shape index: {}]   ;;  %s9911_s11 = inlined_call_operand.hbm [shape: f32[93,96], index: 11, kind: input, shape index: {}]   ;;  %s9912_s12 = inlined_call_operand.vmem [shape: f32[16,128], index: 12, kind: output, shape index: {}]  }
   0x1   :  { %9950 = sst [smem:[#allocation57_spill]] %s9900_s0 }
   0x2   :  { %9951 = sst [smem:[#allocation58_spill]] %s9903_s3 }
   0x3   :  { %9952 = sst [smem:[#allocation59_spill]] %s9904_s4 }
   0x4   :  { %9953 = sst [smem:[#allocation60_spill]] %s9905_s5 }
   0x5   :  { %9954 = sst [smem:[#allocation61_spill]] %s9906_s6 }
   0x6   :  { %9955 = sst [smem:[#allocation62_spill]] %s9907_s7 }
   0x7   :  { %9956 = sst [smem:[#allocation63_spill]] %s9908_s8 }
   0x8   :  { %9957 = sst [smem:[#allocation64_spill]] %s9909_s9 }
   0x9   :  { %9958 = sst [smem:[#allocation65_spill]] %s9910_s10 }
   0xa   :  { %9959 = sst [smem:[#allocation66_spill]] %s9912_s12 }
   0xb   :  { %17 = vsyncpa [#allocation3], 0 }
   0xc   :  { %19 = vsyncpa [#allocation3 + $0x1], 0 }
   0xd   :  { %20 = vsyncpa [#allocation5], 0 }
   0xe   :  { %22 = vsyncpa [#allocation5 + $0x1], 0 }
   0xf   :  { %23 = vsyncpa [#allocation8], 0 }
  0x10   :  { %24 = vsyncpa [#allocation11], 0 }
  0x11   :  { %25 = vsyncpa [#allocation14], 0 }
  0x12   :  { %26 = vsyncpa [#allocation17], 0  ;;  %s7799_s21 = smov 0   ;;  %s7801_s22 = smov 0  }
  0x13   :  { %s7803_s23 = smov 0   ;;  %s7805_s24 = smov 0  }
  0x14   :  { %s7807_s25 = smov 0   ;;  %s7809_s26 = smov 0  }
  0x15 LB: > { %9960 = sst [smem:[#allocation26_spill]] %s7709_s24  ;;  %s9913_s27 = sadd.s32 4294967295, %s7717_s26   ;;  %s7717_s26 = sphi %s7809_s26, %s32_s26   ;;  %s7713_s25 = sphi %s7807_s25, %s10047_s25   ;;  %s7709_s24 = sphi %s7805_s24, %s10046_s24   ;;  %s7705_s23 = sphi %s7803_s23, %s10045_s23   ;;  %s7701_s22 = sphi %s7801_s22, %s10044_s22   ;;  %s7697_s21 = sphi %s7799_s21, %s10043_s21  }
  0x16   : > { %p5307_p0 = scmp.ge.s32.totalorder %s7717_s26, 1  ;;  %p7833_p1 = scmp.eq.s32.totalorder %s9913_s27, 0 }
  0x17   : > { %p341_p2 = scmp.lt.s32.totalorder %s7717_s26, 3  ;;  %s7719_s30 = smov [#allocation6]  }
  0x18   : > { %s356_s13 = sshll.u32 %s7719_s30, 4  ;;  %s7720_s15 = smov [#allocation7]   ;;  %s357_s13 = int_to_ptr.vmem [resolvable:$true] %s356_s13 }
  0x19   : > { %p7838_p3 = pnand %p5307_p0, %p341_p2  ;;  %s369_s16 = sshll.u32 %s7720_s15, 4  ;;  %s370_s16 = int_to_ptr.vmem [resolvable:$true] %s369_s16 }
  0x1a   : > { %s7721_s17 = smov [#allocation10]   ;;  %s7364_s20 = scalar_lea.vmem %s357_s13, 512 }
  0x1b   : > { %p7149_p4 = pneg %p7838_p3  ;;  %s395_s18 = sshll.u32 %s7721_s17, 4  ;;  %s396_s18 = int_to_ptr.vmem [resolvable:$true] %s395_s18 }
  0x1c   : > { %p7365_p7 = scmp.ne.s32.totalorder %s357_s13, %s7364_s20  ;;  %p7372_p10 = scmp.lt.s32.totalorder %s357_s13, %s357_s13 }
  0x1d   : > { %p7846_p5 = pnand %p7149_p4, %p7833_p1  ;;  %p7373_p11 = scmp.lt.s32.totalorder %s7364_s20, %s7364_s20 }
  0x1f   : > { %p7852_p6 = pneg %p7846_p5  ;;  %p7374_p12 = por %p7373_p11, %p7372_p10 }
  0x21   : > { %p7367_p8 = pnand %p7365_p7, %p7852_p6 }
  0x23   : > { %p7368_p9 = pneg %p7367_p8 }
  0x25   : > { %p7375_p13 = pnand %p7374_p12, %p7368_p9 }
  0x27   : > { %7378 = shalt.err (!%p7375_p13)
}
  0x28   : > { %s9915_s30 = smov 128   ;;  %s9917_s15 = smov 8  }
  0x29   : > { %s9965_s3 = sld [smem:[#allocation58_spill]]  ;;  %s7390_s12 = scalar_lea.vmem %s370_s16, 512 }
  0x2a   : > { %p7391_p0 = scmp.ne.s32.totalorder %s370_s16, %s7390_s12  ;;  %p7398_p7 = scmp.lt.s32.totalorder %s370_s16, %s370_s16 }
  0x2b   : > { %p7399_p8 = scmp.lt.s32.totalorder %s7390_s12, %s7390_s12 }
  0x2c   : > { %p7393_p2 = pnand %p7391_p0, %p7852_p6 }
  0x2d   : > { %p7400_p9 = por %p7399_p8, %p7398_p7 }
  0x2e   : > { %p7394_p4 = pneg %p7393_p2 }
  0x2f   : > { %7152 = dma.hbm_to_vmem [thread:$0]  (!%p7846_p5), %s9965_s3, 512, %s357_s13, [#allocation5], %s9915_s30, %s9915_s30, %s9917_s15  }
  0x30   : > { %p7401_p10 = pnand %p7400_p9, %p7394_p4 }
  0x32   : > { %7404 = shalt.err (!%p7401_p10)
}
  0x33   : > { %s9966_s4 = sld [smem:[#allocation59_spill]]  ;;  %s7416_s27 = scalar_lea.vmem %s396_s18, 512 }
  0x34   : > { %p7417_p11 = scmp.ne.s32.totalorder %s396_s18, %s7416_s27  ;;  %p7424_p0 = scmp.lt.s32.totalorder %s396_s18, %s396_s18 }
  0x35   : > { %p7425_p2 = scmp.lt.s32.totalorder %s7416_s27, %s7416_s27 }
  0x36   : > { %p7419_p12 = pnand %p7417_p11, %p7852_p6 }
  0x37   : > { %p7426_p4 = por %p7425_p2, %p7424_p0 }
  0x38   : > { %p7420_p13 = pneg %p7419_p12 }
  0x39   : > { %7155 = dma.hbm_to_vmem [thread:$0]  (!%p7846_p5), %s9966_s4, 512, %s370_s16, [#allocation8], %s9915_s30, %s9915_s30, %s9917_s15  }
  0x3a   : > { %p7427_p7 = pnand %p7426_p4, %p7420_p13 }
  0x3c   : > { %7430 = shalt.err (!%p7427_p7)
}
  0x3d   : > { %s9967_s6 = sld [smem:[#allocation61_spill]]  ;;  %s7724_s13 = smov [#allocation13]  }
  0x3e   : > { %s421_s16 = sshll.u32 %s7724_s13, 4  ;;  %s7725_s17 = smov [#allocation16]   ;;  %s422_s16 = int_to_ptr.vmem [resolvable:$true] %s421_s16 }
  0x3f   : > { %s447_s20 = sshll.u32 %s7725_s17, 4  ;;  %s7442_s3 = scalar_lea.vmem %s422_s16, 1152  ;;  %s448_s20 = int_to_ptr.vmem [resolvable:$true] %s447_s20 }
  0x40   : > { %p7443_p8 = scmp.ne.s32.totalorder %s422_s16, %s7442_s3  ;;  %p7450_p11 = scmp.lt.s32.totalorder %s422_s16, %s422_s16 }
  0x41   : > { %p7451_p12 = scmp.lt.s32.totalorder %s7442_s3, %s7442_s3 }
  0x42   : > { %p7445_p9 = pnand %p7443_p8, %p7852_p6 }
  0x43   : > { %7161 = dma.hbm_to_vmem [thread:$0]  (!%p7846_p5), %s9967_s6, 512, %s396_s18, [#allocation11], %s9915_s30, %s9915_s30, %s9917_s15  }
  0x44   : > { %p7446_p10 = pneg %p7445_p9  ;;  %p7452_p13 = por %p7451_p12, %p7450_p11 }
  0x46   : > { %p7453_p0 = pnand %p7452_p13, %p7446_p10 }
  0x48   : > { %7456 = shalt.err (!%p7453_p0)
}
  0x49   : > { %s9968_s8 = sld [smem:[#allocation63_spill]]  ;;  %s7468_s12 = scalar_lea.vmem %s448_s20, 1536 }
  0x4a   : > { %p7469_p2 = scmp.ne.s32.totalorder %s448_s20, %s7468_s12  ;;  %p7476_p8 = scmp.lt.s32.totalorder %s448_s20, %s448_s20 }
  0x4b   : > { %p7477_p9 = scmp.lt.s32.totalorder %s7468_s12, %s7468_s12 }
  0x4c   : > { %p7471_p4 = pnand %p7469_p2, %p7852_p6 }
  0x4d   : > { %p7478_p10 = por %p7477_p9, %p7476_p8 }
  0x4e   : > { %p7472_p7 = pneg %p7471_p4 }
  0x4f   : > { %7167 = dma.hbm_to_vmem [thread:$0]  (!%p7846_p5), %s9968_s8, 1152, %s422_s16, [#allocation14], %s9915_s30, %s9915_s30, %s9917_s15  }
  0x50   : > { %p7479_p11 = pnand %p7478_p10, %p7472_p7 }
  0x52   : > { %7482 = shalt.err (!%p7479_p11)
}
  0x53   : > { %s9969_s10 = sld [smem:[#allocation65_spill]]  ;;  %s7726_s13 = smov [#allocation9]  }
  0x54   : > { %s382_s16 = sshll.u32 %s7726_s13, 4  ;;  %s7727_s17 = smov [#allocation12]   ;;  %s383_s16 = int_to_ptr.vmem [resolvable:$true] %s382_s16 }
  0x55   : > { %s408_s18 = sshll.u32 %s7727_s17, 4  ;;  %s7494_s27 = scalar_lea.vmem %s383_s16, 512  ;;  %s409_s18 = int_to_ptr.vmem [resolvable:$true] %s408_s18 }
  0x56   : > { %p7495_p12 = scmp.ne.s32.totalorder %s383_s16, %s7494_s27  ;;  %p7502_p2 = scmp.lt.s32.totalorder %s383_s16, %s383_s16 }
  0x57   : > { %p7503_p4 = scmp.lt.s32.totalorder %s7494_s27, %s7494_s27 }
  0x58   : > { %p7497_p13 = pnand %p7495_p12, %p7852_p6 }
  0x59   : > { %7173 = dma.hbm_to_vmem [thread:$0]  (!%p7846_p5), %s9969_s10, 1536, %s448_s20, [#allocation17], %s9915_s30, %s9915_s30, %s9917_s15  }
  0x5a   : > { %p7498_p0 = pneg %p7497_p13  ;;  %p7504_p7 = por %p7503_p4, %p7502_p2 }
  0x5c   : > { %p7505_p8 = pnand %p7504_p7, %p7498_p0 }
  0x5e   : > { %7508 = shalt.err (!%p7505_p8)
}
  0x5f   : > { %s9970_s5 = sld [smem:[#allocation60_spill]]  ;;  %s7520_s3 = scalar_lea.vmem %s409_s18, 1536 }
  0x60   : > { %p7521_p9 = scmp.ne.s32.totalorder %s409_s18, %s7520_s3  ;;  %p7528_p12 = scmp.lt.s32.totalorder %s409_s18, %s409_s18 }
  0x61   : > { %p7529_p13 = scmp.lt.s32.totalorder %s7520_s3, %s7520_s3 }
  0x62   : > { %p7523_p10 = pnand %p7521_p9, %p7852_p6 }
  0x63   : > { %p7530_p0 = por %p7529_p13, %p7528_p12 }
  0x64   : > { %p7524_p11 = pneg %p7523_p10 }
  0x65   : > { %7158 = dma.hbm_to_vmem [thread:$0]  (!%p7846_p5), %s9970_s5, 512, %s383_s16, [#allocation8], %s9915_s30, %s9915_s30, %s9917_s15  }
  0x66   : > { %p7531_p2 = pnand %p7530_p0, %p7524_p11 }
  0x68   : > { %7534 = shalt.err (!%p7531_p2)
}
  0x69   : > { %s9971_s7 = sld [smem:[#allocation62_spill]]  ;;  %s7728_s16 = smov [#allocation15]  }
  0x6a   : > { %s434_s17 = sshll.u32 %s7728_s16, 4  ;;  %s7729_s27 = smov [#allocation18]   ;;  %s435_s17 = int_to_ptr.vmem [resolvable:$true] %s434_s17 }
  0x6b   : > { %s460_s20 = sshll.u32 %s7729_s27, 4  ;;  %s7546_s12 = scalar_lea.vmem %s435_s17, 1536  ;;  %s461_s20 = int_to_ptr.vmem [resolvable:$true] %s460_s20 }
  0x6c   : > { %p7547_p4 = scmp.ne.s32.totalorder %s435_s17, %s7546_s12  ;;  %p7554_p9 = scmp.lt.s32.totalorder %s435_s17, %s435_s17 }
  0x6d   : > { %p7555_p10 = scmp.lt.s32.totalorder %s7546_s12, %s7546_s12 }
  0x6e   : > { %p7549_p7 = pnand %p7547_p4, %p7852_p6 }
  0x6f   : > { %7164 = dma.hbm_to_vmem [thread:$0]  (!%p7846_p5), %s9971_s7, 1536, %s409_s18, [#allocation11], %s9915_s30, %s9915_s30, %s9917_s15  }
  0x70   : > { %p7550_p8 = pneg %p7549_p7  ;;  %p7556_p11 = por %p7555_p10, %p7554_p9 }
  0x72   : > { %p7557_p12 = pnand %p7556_p11, %p7550_p8 }
  0x74   : > { %7560 = shalt.err (!%p7557_p12)
}
  0x75   : > { %s9972_s9 = sld [smem:[#allocation64_spill]]  ;;  %s7572_s24 = scalar_lea.vmem %s461_s20, 1536 }
  0x76   : > { %p7573_p13 = scmp.ne.s32.totalorder %s461_s20, %s7572_s24  ;;  %p7580_p4 = scmp.lt.s32.totalorder %s461_s20, %s461_s20 }
  0x77   : > { %p7581_p7 = scmp.lt.s32.totalorder %s7572_s24, %s7572_s24 }
  0x78   : > { %p7575_p0 = pnand %p7573_p13, %p7852_p6 }
  0x79   : > { %p7582_p8 = por %p7581_p7, %p7580_p4 }
  0x7a   : > { %p7576_p2 = pneg %p7575_p0 }
  0x7b   : > { %7170 = dma.hbm_to_vmem [thread:$0]  (!%p7846_p5), %s9972_s9, 1536, %s435_s17, [#allocation14], %s9915_s30, %s9915_s30, %s9917_s15  }
  0x7c   : > { %p7583_p9 = pnand %p7582_p8, %p7576_p2 }
  0x7e   : > { %7586 = shalt.err (!%p7583_p9)
}
  0x7f   : > { %7176 = dma.hbm_to_vmem [thread:$0]  (!%p7846_p5), %s9911_s11, 1536, %s461_s20, [#allocation17], %s9915_s30, %s9915_s30, %s9917_s15  }
  0x80   : > { %s44_s14 = sadd.s32 1, %s7713_s25  ;;  %s53_s19 = sadd.s32 1, %s7705_s23 }
  0x81   : > { %p46_p6 = scmp.ge.s32.totalorder %s44_s14, 2  ;;  %p60_p10 = scmp.ne.s32.totalorder %s7705_s23, %s7701_s22 }
  0x82   : > { %p61_p11 = scmp.eq.s32.totalorder %s7717_s26, 0  ;;  %p66_p13 = scmp.ne.s32.totalorder %s7701_s22, %s7697_s21 }
  0x83   : > { %s10049_s14 = smov (%p46_p6, %s44_s14), 0  ;;  %p7193_p0 = scmp.lt.s32.totalorder %s7717_s26, 2 }
  0x84   : > { %p62_p12 = por %p61_p11, %p60_p10  ;;  %s50_s17 = ssub.s32 %s7713_s25, %s10049_s14 }
  0x85   : > { %p51_p2 = scmp.eq.s32.totalorder %s50_s17, 0  ;;  %p7960_p4 = por %p7833_p1, %p66_p13 }
  0x86   : > { %s474_s20 = sand.u32 1, %s7705_s23   ;;  %s9919_s12 = smul.u32 1536, %s7713_s25 }
  0x87   : > { %s7967_s18 = scalar_select %p51_p2, %s7705_s23, %s53_s19  }
  0x88   : > { %s7090_s3 = smul.u32 96, %s474_s20  ;;  %s9974_s0 = sld [smem:[#allocation57_spill]] }
  0x89   : > { %p7974_p5 = pnand %p7193_p0, %p62_p12  ;;  %s496_s17 = sand.u32 1, %s7717_s26  }
  0x8a   : > { %s478_s30 = scalar_lea.vmem [#allocation2], %s7090_s3  ;;  %s475_s4 = scalar_lea.sflag [#allocation3], %s474_s20 }
  0x8b   : > { %s486_s15 = sshll.u32 %s478_s30, 4  ;;  %p7589_p7 = pneg %p7974_p5  ;;  %s487_s15 = int_to_ptr.vmem [resolvable:$true] %s486_s15 }
  0x8c   : > { %s7600_s19 = scalar_lea.vmem %s487_s15, 1536  ;;  %s7730_s24 = smov [#allocation2]  }
  0x8d   : > { %p7601_p8 = scmp.ne.s32.totalorder %s487_s15, %s7600_s19  ;;  %s7605_s13 = sshll.u32 %s7730_s24, 4  ;;  %s7606_s13 = int_to_ptr.vmem [resolvable:$false] %s7605_s13 }
  0x8e   : > { %s485_s16 = scalar_lea.hbm %s9974_s0, %s9919_s12  ;;  %s7607_s12 = scalar_lea.vmem %s7606_s13, 3072 }
  0x8f   : > { %p7603_p9 = pnand %p7601_p8, %p7589_p7  ;;  %p7608_p10 = scmp.lt.s32.totalorder %s487_s15, %s7606_s13 }
  0x90   : > { %p7609_p11 = scmp.lt.s32.totalorder %s7607_s12, %s7600_s19 }
  0x91   : > { %p7604_p6 = pneg %p7603_p9 }
  0x92   : > { %p7610_p12 = por %p7609_p11, %p7608_p10 }
  0x94   : > { %p7611_p13 = pnand %p7610_p12, %p7604_p6 }
  0x96   : > { %7614 = shalt.err (!%p7611_p13)
}
  0x97   : > { %s9976_s30 = smov 8   ;;  %s9977_s20 = smov 128  }
  0x98   : > { %7180 = dma.hbm_to_vmem [thread:$0]  (!%p7974_p5), %s485_s16, 1536, %s487_s15, %s475_s4, %s9977_s20, %s9977_s20, %s9976_s30  }
  0x99   : > { %s9978_s0 = smul.u32 1536, %s7713_s25  ;;  %s500_s7 = scalar_lea.vmem [#allocation4], %s7090_s3 }
  0x9a   : > { %s508_s8 = sshll.u32 %s500_s7, 4  ;;  %s497_s12 = scalar_lea.sflag [#allocation5], %s496_s17  ;;  %s509_s8 = int_to_ptr.vmem [resolvable:$true] %s508_s8 }
  0x9b   : > { %s507_s24 = scalar_lea.hbm %s9901_s1, %s9978_s0  ;;  %s7628_s19 = scalar_lea.vmem %s509_s8, 1536 }
  0x9c   : > { %p7629_p0 = scmp.ne.s32.totalorder %s509_s8, %s7628_s19  ;;  %s7731_s13 = smov [#allocation4]  }
  0x9d   : > { %s7633_s9 = sshll.u32 %s7731_s13, 4  ;;  %s7634_s9 = int_to_ptr.vmem [resolvable:$false] %s7633_s9 }
  0x9e   : > { %p7631_p2 = pnand %p7629_p0, %p7589_p7  ;;  %s7635_s10 = scalar_lea.vmem %s7634_s9, 3072 }
  0x9f   : > { %p7636_p9 = scmp.lt.s32.totalorder %s509_s8, %s7634_s9  ;;  %p7637_p6 = scmp.lt.s32.totalorder %s7635_s10, %s7628_s19 }
  0xa0   : > { %p7632_p8 = pneg %p7631_p2 }
  0xa1   : > { %p7638_p10 = por %p7637_p6, %p7636_p9 }
  0xa3   : > { %p7639_p11 = pnand %p7638_p10, %p7632_p8 }
  0xa5   : > { %7642 = shalt.err (!%p7639_p11)
}
  0xa6   : > { %7183 = dma.hbm_to_vmem [thread:$0]  (!%p7974_p5), %s507_s24, 1536, %s509_s8, %s497_s12, %s9977_s20, %s9977_s20, %s9976_s30  }
  0xa7   : > { %520 = sbr.rel (%p7838_p3) target bundleno = 1614 (0x64e), region = 68 }
  0xac   : > { %s522_s0 = sand.u32 1, %s7701_s22  }
  0xad   : > { %s7092_s4 = smul.u32 96, %s522_s0  ;;  %s523_s5 = scalar_lea.sflag [#allocation3], %s522_s0 }
  0xaf   : > { %s8005_s6 = scalar_lea.vmem [#allocation2], %s7092_s4 }
  0xb0   : > { %7668 = dma.done.wait (%p7960_p4), %s523_s5, 1536  }
  0xb1   : > { %7670 = vsyncadd (%p7960_p4), %s523_s5, 4294965760  ;;  %s9979_s7 = sadd.s32 4294967295, %s7717_s26   ;;  %s8013_s10 = scalar_lea.vmem [#allocation4], %s7092_s4 }
  0xb2   : > { %s531_s9 = sand.u32 1, %s9979_s7  }
  0xb3   : > { %s532_s8 = scalar_lea.sflag [#allocation5], %s531_s9 }
  0xb4   : > { %7672 = dma.done.wait (%p7960_p4), %s532_s8, 1536  }
  0xb5   : > { %7674 = vsyncadd (%p7960_p4), %s532_s8, 4294965760 }
  0xb6   : > { %7676 = dma.done.wait (%p7833_p1), [#allocation5], 512  }
  0xb7   : > { %7678 = vsyncadd (%p7833_p1), [#allocation5], 4294966784 }
  0xb8   : > { %7680 = dma.done.wait (%p7833_p1), [#allocation8], 1024  }
  0xb9   : > { %7682 = vsyncadd (%p7833_p1), [#allocation8], 4294966272 }
  0xba   : > { %7684 = dma.done.wait (%p7833_p1), [#allocation11], 2048  }
  0xbb   : > { %7686 = vsyncadd (%p7833_p1), [#allocation11], 4294965248 }
  0xbc   : > { %7688 = dma.done.wait (%p7833_p1), [#allocation14], 2688  }
  0xbd   : > { %7690 = vsyncadd (%p7833_p1), [#allocation14], 4294964608 }
  0xbe   : > { %7692 = dma.done.wait (%p7833_p1), [#allocation17], 3072  }
  0xbf   : > { %7694 = vsyncadd (%p7833_p1), [#allocation17], 4294964224  ;;  %v769_v0 = vld [vmem:[#allocation7 + $0x18] sm:$0xff]  ;;  %v768_v1 = vld [vmem:[#allocation7 + $0x10] sm:$0xff]  ;;  %vm677_vm0 = vcmask 261120   ;;  %vm931_vm1 = vcmask 785408  }
  0xc0   : > { %6137 = vmatprep.subr.mxu0 %v769_v0  ;;  %v8040_v2 = vld [vmem:[%s8005_s6] sm:$0xff]  ;;  %v767_v4 = vld [vmem:[#allocation7 + $0x8] sm:$0xff]  ;;  %v8060_v9 = vld [vmem:[%s8005_s6 + $0x10] sm:$0xff]  ;;  %vm1837_vm2 = vcmask 252928   ;;  %vm7733_vm3 = vmmov 0   ;;  %vm1903_vm4 = vcmask 258048  }
  0xc1   : > { %v8043_v3 = vld [vmem:[%s8013_s10] sm:$0xff]  ;;  %6138 = vmatpush3.msra.mxu0 %v769_v0  ;;  %v8050_v6 = vld [vmem:[%s8005_s6 + $0x8] sm:$0xff]  ;;  %v8063_v10 = vld [vmem:[%s8013_s10 + $0x10] sm:$0xff]  ;;  %vm5031_vm5 = vcmask 179200   ;;  %vm5047_vm6 = vcmask 173056   ;;  %s10041_s19 = sld [smem:[#allocation26_spill]] }
  0xc2   : > { %v8047_v5 = vsub.f32 %v8040_v2, %v8043_v3  ;;  %v8053_v7 = vld [vmem:[%s8013_s10 + $0x8] sm:$0xff]  ;;  %6139 = vmatprep.subr.mxu0 %v768_v1  ;;  %v766_v11 = vld [vmem:[#allocation7] sm:$0xff]  ;;  %v8072_v14 = vsub.f32 %v8060_v9, %v8063_v10  ;;  %v1120_v17 = vld [vmem:[#allocation9 + $0x18] sm:$0xff]  ;;  %s10042_s8 = sld [smem:[#allocation66_spill]] }
  0xc3   : > { %v8057_v8 = vsub.f32 %v8050_v6, %v8053_v7  ;;  %6140 = vmatpush3.msra.mxu0 %v768_v1  ;;  %v8081_v21 = vld [vmem:[%s8005_s6 + $0x18] sm:$0xff]  ;;  %v8089_v25 = vld [vmem:[%s8005_s6 + $0x20] sm:$0xff]  ;;  %v1119_v30 = vld [vmem:[#allocation9 + $0x10] sm:$0xff] }
  0xc4   : > { %v665_v12 = vmul.f32 %v8047_v5, %v8047_v5  ;;  %v710_v13 = vand.u32 2147483647, %v8047_v5  ;;  %6145 = vmatprep.mubr.msk.f32.mxu0 %vm677_vm0, %v8047_v5  ;;  %6141 = vmatprep.subr.mxu0 %v767_v4  ;;  %v712_v20 = vand.u32 2147483647, %v8072_v14  ;;  %v8084_v22 = vld [vmem:[%s8013_s10 + $0x18] sm:$0xff]  ;;  %v8092_v26 = vld [vmem:[%s8013_s10 + $0x20] sm:$0xff] }
  0xc5   : > { %v666_v15 = vmul.f32 %v8057_v8, %v8057_v8  ;;  %v711_v16 = vand.u32 2147483647, %v8057_v8  ;;  %6142 = vmatpush3.msra.mxu0 %v767_v4  ;;  %v8101_v31 = vsub.f32 %v8081_v21, %v8084_v22  ;;  %v8109_v33 = vsub.f32 %v8089_v25, %v8092_v26  ;;  %v8112_v34 = vld [vmem:[%s8005_s6 + $0x28] sm:$0xff]  ;;  %v8118_v37 = vld [vmem:[%s8005_s6 + $0x30] sm:$0xff]  ;;  %v1117_v39 = vld [vmem:[#allocation9] sm:$0xff] }
  0xc6   : > { %v678_v18 = vsel %vm677_vm0, %v665_v12, 0.0  ;;  %v722_v19 = vsel %vm677_vm0, %v710_v13, 0.0  ;;  %6143 = vmatprep.subr.mxu0 %v766_v11  ;;  %v725_v29 = vsel %vm677_vm0, %v712_v20, 0.0  ;;  %v8115_v35 = vld [vmem:[%s8013_s10 + $0x28] sm:$0xff]  ;;  %v8121_v38 = vld [vmem:[%s8013_s10 + $0x30] sm:$0xff]  ;;  %v8136_v42 = vld [vmem:[%s8005_s6 + $0x38] sm:$0xff]  ;;  %v8341_v4 = vmul.f32 %v8040_v2, %v8040_v2 }
  0xc7   : > { %v679_v23 = vsel %vm677_vm0, %v666_v15, 0.0  ;;  %v723_v24 = vsel %vm677_vm0, %v711_v16, 0.0  ;;  %6144 = vmatpush3.msra.mxu0 %v766_v11  ;;  %v1118_v36 = vld [vmem:[#allocation9 + $0x8] sm:$0xff]  ;;  %v8127_v40 = vsub.f32 %v8112_v34, %v8115_v35  ;;  %v8133_v41 = vsub.f32 %v8118_v37, %v8121_v38  ;;  %v8139_v43 = vld [vmem:[%s8013_s10 + $0x38] sm:$0xff]  ;;  %v8142_v45 = vld [vmem:[%s8005_s6 + $0x40] sm:$0xff]  ;;  %p620_p1 = scmp.lt.s32.totalorder %s10041_s19, 1 }
  0xc8   : > { %v8094_v27 = vadd.f32 %v679_v23, %v678_v18  ;;  %v724_v28 = vadd.f32 %v723_v24, %v722_v19  ;;  %6146 = vmatmul.mubr.msk.f32.vlgmr.msra.gmra.mxu0 %vm677_vm0, %v8057_v8  ;;  %6205 = vmatprep.subr.mxu0 %v1120_v17  ;;  %v1490_v44 = vld [vmem:[#allocation10 + $0x18] sm:$0xff]  ;;  %v8145_v46 = vld [vmem:[%s8013_s10 + $0x40] sm:$0xff]  ;;  %v8151_v47 = vsub.f32 %v8136_v42, %v8139_v43  ;;  %v8160_v49 = vld [vmem:[%s8005_s6 + $0x48] sm:$0xff] }
  0xc9   : > { %6206 = vmatpush3.msra.mxu0 %v1120_v17  ;;  %6148 = vmatprep.mubr.msk.f32.mxu0 %vm677_vm0, %v8072_v14  ;;  %v8157_v48 = vsub.f32 %v8142_v45, %v8145_v46  ;;  %v8163_v50 = vld [vmem:[%s8013_s10 + $0x48] sm:$0xff]  ;;  %v8166_v51 = vld [vmem:[%s8005_s6 + $0x50] sm:$0xff]  ;;  %v8184_v55 = vld [vmem:[%s8005_s6 + $0x58] sm:$0xff]  ;;  %v8359_v11 = vmul.f32 %v8081_v21, %v8081_v21  ;;  %v8366_v12 = vmul.f32 %v8089_v25, %v8089_v25  ;;  %s10051_s19 = smov (!%p620_p1, %s10041_s19), 1 }
  0xca   : > { %v8103_v32 = vadd.f32 %v725_v29, %v724_v28  ;;  %6207 = vmatprep.subr.mxu0 %v1119_v30  ;;  %v8169_v52 = vld [vmem:[%s8013_s10 + $0x50] sm:$0xff]  ;;  %v8175_v53 = vsub.f32 %v8160_v49, %v8163_v50  ;;  %v8187_v56 = vld [vmem:[%s8013_s10 + $0x58] sm:$0xff]  ;;  %v1488_v59 = vld [vmem:[#allocation10 + $0x8] sm:$0xff]  ;;  %v8374_v13 = vmul.f32 %v8112_v34, %v8112_v34  ;;  %v8381_v15 = vmul.f32 %v8118_v37, %v8118_v37  ;;  %s5330_s6 = sshll.u32 %s10051_s19, 3 }
  0xcb   : > { %6208 = vmatpush3.msra.mxu0 %v1119_v30  ;;  %v8181_v54 = vsub.f32 %v8166_v51, %v8169_v52  ;;  %v8193_v57 = vsub.f32 %v8184_v55, %v8187_v56  ;;  %v1489_v58 = vld [vmem:[#allocation10 + $0x10] sm:$0xff]  ;;  %v1487_v60 = vld [vmem:[#allocation10] sm:$0xff]  ;;  %v8212_v61 = vld [vmem:[%s9902_s2 + $0x18] sm:$0xff]  ;;  %v8390_v16 = vmul.f32 %v8136_v42, %v8136_v42  ;;  %v8397_v17 = vmul.f32 %v8142_v45, %v8142_v45 }
  0xcc   : > { %6149 = vmatmul.mubr.msk.f32.gmra.mxu0 %vm677_vm0, %v8101_v31  ;;  %6209 = vmatprep.subr.mxu0 %v1118_v36  ;;  %v8234_v62 = vld [vmem:[%s9902_s2 + $0x10] sm:$0xff]  ;;  %v8244_v63 = vld [vmem:[%s9902_s2 + $0x8] sm:$0xff]  ;;  %v8251_v0 = vld [vmem:[%s9902_s2] sm:$0xff]  ;;  %v8403_v18 = vmul.f32 %v8160_v49, %v8160_v49  ;;  %v8409_v19 = vmul.f32 %v8166_v51, %v8166_v51  ;;  %v8415_v20 = vmul.f32 %v8184_v55, %v8184_v55 }
  0xcd   : > { %6151 = vmatprep.mubr.msk.f32.mxu0 %vm677_vm0, %v8109_v33  ;;  %6210 = vmatpush3.msra.mxu0 %v1118_v36  ;;  %v754_v1 = vld [vmem:[#allocation15] sm:$0xff]  ;;  %v8421_v23 = vmul.f32 %v8043_v3, %v8043_v3  ;;  %v8427_v24 = vmul.f32 %v8053_v7, %v8053_v7  ;;  %v8433_v28 = vmul.f32 %v8063_v10, %v8063_v10 }
  0xce   : > { %6211 = vmatprep.subr.mxu0 %v1117_v39  ;;  %6187 = vmatprep.mubr.msk.f32.mxu1 %vm931_vm1, %v754_v1  ;;  %v8439_v29 = vmul.f32 %v8084_v22, %v8084_v22  ;;  %v8446_v30 = vmul.f32 %v8092_v26, %v8092_v26  ;;  %v8454_v36 = vmul.f32 %v8115_v35, %v8115_v35 }
  0xcf   : > { %6212 = vmatpush3.msra.mxu0 %v1117_v39  ;;  %9980 = vst [vmem:[#allocation27_spill] sm:$0xff] %v8421_v23  ;;  %9981 = vst [vmem:[#allocation28_spill] sm:$0xff] %v8427_v24  ;;  %v8461_v39 = vmul.f32 %v8121_v38, %v8121_v38  ;;  %v8512_v1 = vmul.f32 %v8063_v10, %v8060_v9 }
  0xd0   : > { %6152 = vmatmul.mubr.msk.f32.gmra.mxu0 %vm677_vm0, %v8127_v40  ;;  %6273 = vmatprep.subr.mxu0 %v1490_v44  ;;  %9982 = vst [vmem:[#allocation29_spill] sm:$0xff] %v8433_v28  ;;  %9983 = vst [vmem:[#allocation30_spill] sm:$0xff] %v8439_v29 }
  0xd1   : > { %6154 = vmatprep.mubr.msk.f32.mxu0 %vm677_vm0, %v8133_v41  ;;  %9984 = vst [vmem:[#allocation31_spill] sm:$0xff] %v8446_v30  ;;  %9985 = vst [vmem:[#allocation32_spill] sm:$0xff] %v8454_v36 }
  0xd2   : > { %9986 = vst [vmem:[#allocation33_spill] sm:$0xff] %v8461_v39  ;;  %9994 = vst [vmem:[#allocation41_spill] sm:$0xff] %v8512_v1 }
  0xd4   : > { %6155 = vmatmul.mubr.msk.f32.gmra.mxu0 %vm677_vm0, %v8151_v47 }
  0xd5   : > { %6157 = vmatprep.mubr.msk.f32.mxu0 %vm677_vm0, %v8157_v48 }
  0xd8   : > { %6158 = vmatmul.mubr.msk.f32.gmra.mxu0 %vm677_vm0, %v8175_v53 }
  0xd9   : > { %6160 = vmatprep.mubr.msk.f32.mxu0 %vm677_vm0, %v8181_v54 }
  0xdc   : > { %6161 = vmatmul.mubr.msk.f32.gmra.mxu0 %vm677_vm0, %v8193_v57 }
  0xdd   : > { %6213 = vmatprep.mubr.msk.f32.mxu0 %vm677_vm0, %v8047_v5  ;;  %v8347_v5 = vmul.f32 %v8050_v6, %v8050_v6 }
  0xe0   : > { %6214 = vmatmul.mubr.msk.f32.vlgmr.msra.gmra.mxu0 %vm677_vm0, %v8057_v8  ;;  %v8353_v8 = vmul.f32 %v8060_v9, %v8060_v9 }
  0xe1   : > { %6274 = vmatpush3.msra.mxu0 %v1490_v44  ;;  %6216 = vmatprep.mubr.msk.f32.mxu0 %vm677_vm0, %v8072_v14  ;;  %v3648_v44 = vld [vmem:[#allocation6 + $0x18] sm:$0xff] }
  0xe2   : > { %6275 = vmatprep.subr.mxu0 %v1489_v58 }
  0xe3   : > { %6276 = vmatpush3.msra.mxu0 %v1489_v58  ;;  %v8470_v58 = vmul.f32 %v8139_v43, %v8139_v43 }
  0xe4   : > { %6217 = vmatmul.mubr.msk.f32.gmra.mxu0 %vm677_vm0, %v8101_v31  ;;  %6277 = vmatprep.subr.mxu0 %v1488_v59 }
  0xe5   : > { %6219 = vmatprep.mubr.msk.f32.mxu0 %vm677_vm0, %v8109_v33  ;;  %6278 = vmatpush3.msra.mxu0 %v1488_v59  ;;  %9987 = vst [vmem:[#allocation34_spill] sm:$0xff] %v8470_v58  ;;  %v8476_v59 = vmul.f32 %v8145_v46, %v8145_v46 }
  0xe6   : > { %6279 = vmatprep.subr.mxu0 %v1487_v60 }
  0xe7   : > { %6280 = vmatpush3.msra.mxu0 %v1487_v60  ;;  %9988 = vst [vmem:[#allocation35_spill] sm:$0xff] %v8476_v59  ;;  %v8482_v60 = vmul.f32 %v8163_v50, %v8163_v50 }
  0xe8   : > { %6220 = vmatmul.mubr.msk.f32.gmra.mxu0 %vm677_vm0, %v8127_v40  ;;  %6341 = vmatprep.subr.mxu0 %v8212_v61 }
  0xe9   : > { %6222 = vmatprep.mubr.msk.f32.mxu0 %vm677_vm0, %v8133_v41  ;;  %9989 = vst [vmem:[#allocation36_spill] sm:$0xff] %v8482_v60 }
  0xec   : > { %6223 = vmatmul.mubr.msk.f32.gmra.mxu0 %vm677_vm0, %v8151_v47 }
  0xed   : > { %6225 = vmatprep.mubr.msk.f32.mxu0 %vm677_vm0, %v8157_v48 }
  0xf0   : > { %6226 = vmatmul.mubr.msk.f32.gmra.mxu0 %vm677_vm0, %v8175_v53 }
  0xf1   : > { %6228 = vmatprep.mubr.msk.f32.mxu0 %vm677_vm0, %v8181_v54 }
  0xf4   : > { %6229 = vmatmul.mubr.msk.f32.gmra.mxu0 %vm677_vm0, %v8193_v57 }
  0xf5   : > { %6281 = vmatprep.mubr.msk.f32.mxu0 %vm677_vm0, %v8040_v2 }
  0xf8   : > { %6282 = vmatmul.mubr.msk.f32.vlgmr.msra.gmra.mxu0 %vm677_vm0, %v8050_v6 }
  0xf9   : > { %6342 = vmatpush3.msra.mxu0 %v8212_v61  ;;  %6284 = vmatprep.mubr.msk.f32.mxu0 %vm677_vm0, %v8060_v9 }
  0xfa   : > { %6343 = vmatprep.subr.mxu0 %v8234_v62 }
  0xfb   : > { %6344 = vmatpush3.msra.mxu0 %v8234_v62 }
  0xfc   : > { %6285 = vmatmul.mubr.msk.f32.gmra.mxu0 %vm677_vm0, %v8081_v21  ;;  %6345 = vmatprep.subr.mxu0 %v8244_v63 }
  0xfd   : > { %6287 = vmatprep.mubr.msk.f32.mxu0 %vm677_vm0, %v8089_v25  ;;  %6346 = vmatpush3.msra.mxu0 %v8244_v63 }
  0xfe   : > { %6347 = vmatprep.subr.mxu0 %v8251_v0 }
  0xff   : > { %6348 = vmatpush3.msra.mxu0 %v8251_v0 }
 0x100   : > { %6288 = vmatmul.mubr.msk.f32.gmra.mxu0 %vm677_vm0, %v8112_v34  ;;  %6409 = vmatprep.subr.mxu0 %v8212_v61 }
 0x101   : > { %6290 = vmatprep.mubr.msk.f32.mxu0 %vm677_vm0, %v8118_v37 }
 0x104   : > { %6291 = vmatmul.mubr.msk.f32.gmra.mxu0 %vm677_vm0, %v8136_v42 }
 0x105   : > { %6293 = vmatprep.mubr.msk.f32.mxu0 %vm677_vm0, %v8142_v45 }
 0x108   : > { %6294 = vmatmul.mubr.msk.f32.gmra.mxu0 %vm677_vm0, %v8160_v49 }
 0x109   : > { %6296 = vmatprep.mubr.msk.f32.mxu0 %vm677_vm0, %v8166_v51 }
 0x10c   : > { %6297 = vmatmul.mubr.msk.f32.gmra.mxu0 %vm677_vm0, %v8184_v55 }
 0x10d   : > { %6349 = vmatprep.mubr.msk.f32.mxu0 %vm677_vm0, %v8040_v2 }
 0x110   : > { %6350 = vmatmul.mubr.msk.f32.vlgmr.msra.gmra.mxu0 %vm677_vm0, %v8050_v6 }
 0x111   : > { %6410 = vmatpush3.msra.mxu0 %v8212_v61  ;;  %6352 = vmatprep.mubr.msk.f32.mxu0 %vm677_vm0, %v8060_v9 }
 0x112   : > { %6411 = vmatprep.subr.mxu0 %v8234_v62 }
 0x113   : > { %6412 = vmatpush3.msra.mxu0 %v8234_v62 }
 0x114   : > { %6353 = vmatmul.mubr.msk.f32.gmra.mxu0 %vm677_vm0, %v8081_v21  ;;  %6413 = vmatprep.subr.mxu0 %v8244_v63 }
 0x115   : > { %6355 = vmatprep.mubr.msk.f32.mxu0 %vm677_vm0, %v8089_v25  ;;  %6414 = vmatpush3.msra.mxu0 %v8244_v63 }
 0x116   : > { %6415 = vmatprep.subr.mxu0 %v8251_v0 }
 0x117   : > { %6416 = vmatpush3.msra.mxu0 %v8251_v0 }
 0x118   : > { %6356 = vmatmul.mubr.msk.f32.gmra.mxu0 %vm677_vm0, %v8112_v34  ;;  %6477 = vmatprep.subr.mxu0 %v8212_v61 }
 0x119   : > { %6358 = vmatprep.mubr.msk.f32.mxu0 %vm677_vm0, %v8118_v37 }
 0x11c   : > { %6359 = vmatmul.mubr.msk.f32.gmra.mxu0 %vm677_vm0, %v8136_v42 }
 0x11d   : > { %6361 = vmatprep.mubr.msk.f32.mxu0 %vm677_vm0, %v8142_v45 }
 0x120   : > { %6362 = vmatmul.mubr.msk.f32.gmra.mxu0 %vm677_vm0, %v8160_v49 }
 0x121   : > { %6364 = vmatprep.mubr.msk.f32.mxu0 %vm677_vm0, %v8166_v51 }
 0x124   : > { %6365 = vmatmul.mubr.msk.f32.gmra.mxu0 %vm677_vm0, %v8184_v55 }
 0x125   : > { %6417 = vmatprep.mubr.msk.f32.mxu0 %vm677_vm0, %v8043_v3 }
 0x128   : > { %6418 = vmatmul.mubr.msk.f32.vlgmr.msra.gmra.mxu0 %vm677_vm0, %v8053_v7 }
 0x129   : > { %6478 = vmatpush3.msra.mxu0 %v8212_v61  ;;  %6420 = vmatprep.mubr.msk.f32.mxu0 %vm677_vm0, %v8063_v10  ;;  %v3645_v10 = vld [vmem:[#allocation6] sm:$0xff] }
 0x12a   : > { %6479 = vmatprep.subr.mxu0 %v8234_v62 }
 0x12b   : > { %6480 = vmatpush3.msra.mxu0 %v8234_v62 }
 0x12c   : > { %6421 = vmatmul.mubr.msk.f32.gmra.mxu0 %vm677_vm0, %v8084_v22  ;;  %6481 = vmatprep.subr.mxu0 %v8244_v63 }
 0x12d   : > { %6423 = vmatprep.mubr.msk.f32.mxu0 %vm677_vm0, %v8092_v26  ;;  %6482 = vmatpush3.msra.mxu0 %v8244_v63 }
 0x12e   : > { %6483 = vmatprep.subr.mxu0 %v8251_v0 }
 0x12f   : > { %6484 = vmatpush3.msra.mxu0 %v8251_v0 }
 0x130   : > { %6424 = vmatmul.mubr.msk.f32.gmra.mxu0 %vm677_vm0, %v8115_v35  ;;  %6545 = vmatprep.subr.mxu0 %v8212_v61 }
 0x131   : > { %6426 = vmatprep.mubr.msk.f32.mxu0 %vm677_vm0, %v8121_v38 }
 0x134   : > { %6427 = vmatmul.mubr.msk.f32.gmra.mxu0 %vm677_vm0, %v8139_v43 }
 0x135   : > { %6429 = vmatprep.mubr.msk.f32.mxu0 %vm677_vm0, %v8145_v46 }
 0x138   : > { %6430 = vmatmul.mubr.msk.f32.gmra.mxu0 %vm677_vm0, %v8163_v50 }
 0x139   : > { %6432 = vmatprep.mubr.msk.f32.mxu0 %vm677_vm0, %v8169_v52 }
 0x13c   : > { %6433 = vmatmul.mubr.msk.f32.gmra.mxu0 %vm677_vm0, %v8187_v56 }
 0x13d   : > { %6485 = vmatprep.mubr.msk.f32.mxu0 %vm677_vm0, %v8341_v4 }
 0x140   : > { %6486 = vmatmul.mubr.msk.f32.vlgmr.msra.gmra.mxu0 %vm677_vm0, %v8347_v5 }
 0x141   : > { %6546 = vmatpush3.msra.mxu0 %v8212_v61  ;;  %6488 = vmatprep.mubr.msk.f32.mxu0 %vm677_vm0, %v8353_v8 }
 0x142   : > { %6547 = vmatprep.subr.mxu0 %v8234_v62 }
 0x143   : > { %6548 = vmatpush3.msra.mxu0 %v8234_v62 }
 0x144   : > { %6489 = vmatmul.mubr.msk.f32.gmra.mxu0 %vm677_vm0, %v8359_v11  ;;  %6549 = vmatprep.subr.mxu0 %v8244_v63 }
 0x145   : > { %6491 = vmatprep.mubr.msk.f32.mxu0 %vm677_vm0, %v8366_v12  ;;  %6550 = vmatpush3.msra.mxu0 %v8244_v63 }
 0x146   : > { %6551 = vmatprep.subr.mxu0 %v8251_v0 }
 0x147   : > { %6552 = vmatpush3.msra.mxu0 %v8251_v0 }
 0x148   : > { %6492 = vmatmul.mubr.msk.f32.gmra.mxu0 %vm677_vm0, %v8374_v13  ;;  %6613 = vmatprep.subr.mxu0 %v8212_v61 }
 0x149   : > { %6494 = vmatprep.mubr.msk.f32.mxu0 %vm677_vm0, %v8381_v15 }
 0x14c   : > { %6495 = vmatmul.mubr.msk.f32.gmra.mxu0 %vm677_vm0, %v8390_v16 }
 0x14d   : > { %6497 = vmatprep.mubr.msk.f32.mxu0 %vm677_vm0, %v8397_v17 }
 0x150   : > { %6498 = vmatmul.mubr.msk.f32.gmra.mxu0 %vm677_vm0, %v8403_v18 }
 0x151   : > { %6500 = vmatprep.mubr.msk.f32.mxu0 %vm677_vm0, %v8409_v19 }
 0x154   : > { %6501 = vmatmul.mubr.msk.f32.gmra.mxu0 %vm677_vm0, %v8415_v20 }
 0x155   : > { %6553 = vmatprep.mubr.msk.f32.mxu0 %vm677_vm0, %v8421_v23 }
 0x158   : > { %6554 = vmatmul.mubr.msk.f32.vlgmr.msra.gmra.mxu0 %vm677_vm0, %v8427_v24 }
 0x159   : > { %6614 = vmatpush3.msra.mxu0 %v8212_v61  ;;  %6556 = vmatprep.mubr.msk.f32.mxu0 %vm677_vm0, %v8433_v28  ;;  %v8488_v61 = vmul.f32 %v8169_v52, %v8169_v52 }
 0x15a   : > { %6615 = vmatprep.subr.mxu0 %v8234_v62 }
 0x15b   : > { %6616 = vmatpush3.msra.mxu0 %v8234_v62  ;;  %9990 = vst [vmem:[#allocation37_spill] sm:$0xff] %v8488_v61  ;;  %v8494_v62 = vmul.f32 %v8187_v56, %v8187_v56 }
 0x15c   : > { %6557 = vmatmul.mubr.msk.f32.gmra.mxu0 %vm677_vm0, %v8439_v29  ;;  %6617 = vmatprep.subr.mxu0 %v8244_v63 }
 0x15d   : > { %6559 = vmatprep.mubr.msk.f32.mxu0 %vm677_vm0, %v8446_v30  ;;  %6618 = vmatpush3.msra.mxu0 %v8244_v63  ;;  %9991 = vst [vmem:[#allocation38_spill] sm:$0xff] %v8494_v62  ;;  %v8500_v63 = vmul.f32 %v8043_v3, %v8040_v2  ;;  %v8518_v3 = vmul.f32 %v8084_v22, %v8081_v21 }
 0x15e   : > { %6619 = vmatprep.subr.mxu0 %v8251_v0  ;;  %v8536_v22 = vmul.f32 %v8121_v38, %v8118_v37  ;;  %v8554_v38 = vmul.f32 %v8163_v50, %v8160_v49 }
 0x15f   : > { %6620 = vmatpush3.msra.mxu0 %v8251_v0  ;;  %9992 = vst [vmem:[#allocation39_spill] sm:$0xff] %v8500_v63  ;;  %v8506_v0 = vmul.f32 %v8053_v7, %v8050_v6  ;;  %9995 = vst [vmem:[#allocation42_spill] sm:$0xff] %v8518_v3  ;;  %v8524_v7 = vmul.f32 %v8092_v26, %v8089_v25  ;;  %v8542_v26 = vmul.f32 %v8139_v43, %v8136_v42 }
 0x160   : > { %6560 = vmatmul.mubr.msk.f32.gmra.mxu0 %vm677_vm0, %v8454_v36  ;;  %6681 = vmatprep.subr.mxu0 %v3648_v44  ;;  %9998 = vst [vmem:[#allocation45_spill] sm:$0xff] %v8536_v22  ;;  %10001 = vst [vmem:[#allocation48_spill] sm:$0xff] %v8554_v38  ;;  %v8560_v43 = vmul.f32 %v8169_v52, %v8166_v51 }
 0x161   : > { %6562 = vmatprep.mubr.msk.f32.mxu0 %vm677_vm0, %v8461_v39  ;;  %9993 = vst [vmem:[#allocation40_spill] sm:$0xff] %v8506_v0  ;;  %9996 = vst [vmem:[#allocation43_spill] sm:$0xff] %v8524_v7 }
 0x162   : > { %9999 = vst [vmem:[#allocation46_spill] sm:$0xff] %v8542_v26  ;;  %10002 = vst [vmem:[#allocation49_spill] sm:$0xff] %v8560_v43 }
 0x164   : > { %6563 = vmatmul.mubr.msk.f32.gmra.mxu0 %vm677_vm0, %v8470_v58 }
 0x165   : > { %6565 = vmatprep.mubr.msk.f32.mxu0 %vm677_vm0, %v8476_v59 }
 0x168   : > { %6566 = vmatmul.mubr.msk.f32.gmra.mxu0 %vm677_vm0, %v8482_v60  ;;  %v3647_v60 = vld [vmem:[#allocation6 + $0x10] sm:$0xff] }
 0x169   : > { %6568 = vmatprep.mubr.msk.f32.mxu0 %vm677_vm0, %v8488_v61  ;;  %v8530_v61 = vmul.f32 %v8115_v35, %v8112_v34  ;;  %v8548_v35 = vmul.f32 %v8145_v46, %v8142_v45  ;;  %v8566_v46 = vmul.f32 %v8187_v56, %v8184_v55 }
 0x16b   : > { %9997 = vst [vmem:[#allocation44_spill] sm:$0xff] %v8530_v61  ;;  %10000 = vst [vmem:[#allocation47_spill] sm:$0xff] %v8548_v35 }
 0x16c   : > { %6569 = vmatmul.mubr.msk.f32.gmra.mxu0 %vm677_vm0, %v8494_v62  ;;  %v3646_v62 = vld [vmem:[#allocation6 + $0x8] sm:$0xff]  ;;  %10003 = vst [vmem:[#allocation50_spill] sm:$0xff] %v8566_v46 }
 0x16d   : > { %6621 = vmatprep.mubr.msk.f32.mxu0 %vm677_vm0, %v8500_v63  ;;  %v760_v63 = vld [vmem:[#allocation15 + $0x30] sm:$0xff] }
 0x170   : > { %6622 = vmatmul.mubr.msk.f32.vlgmr.msra.gmra.mxu0 %vm677_vm0, %v8506_v0  ;;  %v755_v0 = vld [vmem:[#allocation15 + $0x8] sm:$0xff] }
 0x171   : > { %6682 = vmatpush3.msra.mxu0 %v3648_v44  ;;  %6624 = vmatprep.mubr.msk.f32.mxu0 %vm677_vm0, %v8512_v1 }
 0x172   : > { %6683 = vmatprep.subr.mxu0 %v3647_v60 }
 0x173   : > { %6684 = vmatpush3.msra.mxu0 %v3647_v60 }
 0x174   : > { %6625 = vmatmul.mubr.msk.f32.gmra.mxu0 %vm677_vm0, %v8518_v3  ;;  %6685 = vmatprep.subr.mxu0 %v3646_v62 }
 0x175   : > { %6627 = vmatprep.mubr.msk.f32.mxu0 %vm677_vm0, %v8524_v7  ;;  %6686 = vmatpush3.msra.mxu0 %v3646_v62 }
 0x176   : > { %6687 = vmatprep.subr.mxu0 %v3645_v10 }
 0x177   : > { %6688 = vmatpush3.msra.mxu0 %v3645_v10 }
 0x178   : > { %6628 = vmatmul.mubr.msk.f32.gmra.mxu0 %vm677_vm0, %v8530_v61 }
 0x179   : > { %6630 = vmatprep.mubr.msk.f32.mxu0 %vm677_vm0, %v8536_v22 }
 0x17c   : > { %6631 = vmatmul.mubr.msk.f32.gmra.mxu0 %vm677_vm0, %v8542_v26 }
 0x17d   : > { %6633 = vmatprep.mubr.msk.f32.mxu0 %vm677_vm0, %v8548_v35 }
 0x180   : > { %6634 = vmatmul.mubr.msk.f32.gmra.mxu0 %vm677_vm0, %v8554_v38 }
 0x181   : > { %6636 = vmatprep.mubr.msk.f32.mxu0 %vm677_vm0, %v8560_v43 }
 0x184   : > { %6637 = vmatmul.mubr.msk.f32.gmra.mxu0 %vm677_vm0, %v8566_v46 }
 0x185   : > { %6689 = vmatprep.mubr.msk.f32.mxu0 %vm677_vm0, %v8040_v2 }
 0x188   : > { %v6147_v50 = vpop.f32.mrf.mxu0  ;;  %6690 = vmatmul.mubr.msk.f32.vlgmr.msra.gmra.mxu0 %vm677_vm0, %v8050_v6 }
 0x189   : > { %6692 = vmatprep.mubr.msk.f32.mxu0 %vm677_vm0, %v8060_v9 }
 0x18a   : > { %v872_v52 = vpop.f32.mrf.mxu0 }
 0x18c   : > { %v6150_v44 = vpop.f32.mrf.mxu0  ;;  %6693 = vmatmul.mubr.msk.f32.gmra.mxu0 %vm677_vm0, %v8081_v21 }
 0x18d   : > { %6695 = vmatprep.mubr.msk.f32.mxu0 %vm677_vm0, %v8089_v25 }
 0x18e   : > { %v882_v56 = vpop.f32.mrf.mxu0 }
 0x190   : > { %v6153_v60 = vpop.f32.mrf.mxu0  ;;  %6696 = vmatmul.mubr.msk.f32.gmra.mxu0 %vm677_vm0, %v8112_v34 }
 0x191   : > { %6698 = vmatprep.mubr.msk.f32.mxu0 %vm677_vm0, %v8118_v37 }
 0x192   : > { %v892_v62 = vpop.f32.mrf.mxu0 }
 0x194   : > { %v6156_v10 = vpop.f32.mrf.mxu0  ;;  %6699 = vmatmul.mubr.msk.f32.gmra.mxu0 %vm677_vm0, %v8136_v42 }
 0x195   : > { %6701 = vmatprep.mubr.msk.f32.mxu0 %vm677_vm0, %v8142_v45 }
 0x196   : > { %v902_v46 = vpop.f32.mrf.mxu0 }
 0x198   : > { %v6159_v43 = vpop.f32.mrf.mxu0  ;;  %6702 = vmatmul.mubr.msk.f32.gmra.mxu0 %vm677_vm0, %v8160_v49 }
 0x199   : > { %6704 = vmatprep.mubr.msk.f32.mxu0 %vm677_vm0, %v8166_v51 }
 0x19a   : > { %v912_v38 = vpop.f32.mrf.mxu0 }
 0x19c   : > { %v6162_v35 = vpop.f32.mrf.mxu0  ;;  %6705 = vmatmul.mubr.msk.f32.gmra.mxu0 %vm677_vm0, %v8184_v55 }
 0x19d   : > { %6163 = vmatprep.subr.mxu1 %v6162_v35 }
 0x19e   : > { %v922_v26 = vpop.f32.mrf.mxu0  ;;  %6164 = vmatpush3.msra.mxu1 %v6162_v35 }
 0x19f   : > { %6165 = vmatprep.subr.mxu1 %v922_v26 }
 0x1a0   : > { %6166 = vmatpush3.msra.mxu1 %v922_v26  ;;  %v8596_v22 = vpop.f32.mrf.mxu0 }
 0x1a1   : > { %6167 = vmatprep.subr.mxu1 %v6159_v43 }
 0x1a2   : > { %6168 = vmatpush3.msra.mxu1 %v6159_v43  ;;  %v8598_v61 = vpop.f32.mrf.mxu0 }
 0x1a3   : > { %6169 = vmatprep.subr.mxu1 %v912_v38 }
 0x1a4   : > { %6170 = vmatpush3.msra.mxu1 %v912_v38  ;;  %v8600_v7 = vpop.f32.mrf.mxu0 }
 0x1a5   : > { %6171 = vmatprep.subr.mxu1 %v6156_v10 }
 0x1a6   : > { %6172 = vmatpush3.msra.mxu1 %v6156_v10  ;;  %v8602_v3 = vpop.f32.mrf.mxu0 }
 0x1a7   : > { %6173 = vmatprep.subr.mxu1 %v902_v46 }
 0x1a8   : > { %6174 = vmatpush3.msra.mxu1 %v902_v46  ;;  %v8604_v1 = vpop.f32.mrf.mxu0  ;;  %v756_v46 = vld [vmem:[#allocation15 + $0x10] sm:$0xff] }
 0x1a9   : > { %6175 = vmatprep.subr.mxu1 %v6153_v60 }
 0x1aa   : > { %6176 = vmatpush3.msra.mxu1 %v6153_v60  ;;  %v8606_v26 = vpop.f32.mrf.mxu0 }
 0x1ab   : > { %6177 = vmatprep.subr.mxu1 %v892_v62 }
 0x1ac   : > { %6178 = vmatpush3.msra.mxu1 %v892_v62  ;;  %v6224_v35 = vpop.f32.mrf.mxu0  ;;  %v758_v62 = vld [vmem:[#allocation15 + $0x20] sm:$0xff] }
 0x1ad   : > { %6179 = vmatprep.subr.mxu1 %v6150_v44 }
 0x1ae   : > { %6180 = vmatpush3.msra.mxu1 %v6150_v44  ;;  %v1217_v38 = vpop.f32.mrf.mxu0  ;;  %v757_v44 = vld [vmem:[#allocation15 + $0x18] sm:$0xff] }
 0x1af   : > { %6181 = vmatprep.subr.mxu1 %v882_v56 }
 0x1b0   : > { %6182 = vmatpush3.msra.mxu1 %v882_v56  ;;  %v6227_v43 = vpop.f32.mrf.mxu0 }
 0x1b1   : > { %6183 = vmatprep.subr.mxu1 %v6147_v50 }
 0x1b2   : > { %6184 = vmatpush3.msra.mxu1 %v6147_v50  ;;  %v1227_v10 = vpop.f32.mrf.mxu0 }
 0x1b3   : > { %6185 = vmatprep.subr.mxu1 %v872_v52 }
 0x1b4   : > { %6186 = vmatpush3.msra.mxu1 %v872_v52  ;;  %v6230_v59 = vpop.f32.mrf.mxu0  ;;  %v759_v52 = vld [vmem:[#allocation15 + $0x28] sm:$0xff] }
 0x1b5   : > { %6188 = vmatmul.mubr.msk.f32.vlgmr.msra.gmra.mxu1 %vm931_vm1, %v755_v0  ;;  %6231 = vmatprep.subr.mxu1 %v6230_v59 }
 0x1b6   : > { %v1237_v60 = vpop.f32.mrf.mxu0  ;;  %6232 = vmatpush3.msra.mxu1 %v6230_v59  ;;  %6190 = vmatprep.mubr.msk.f32.mxu1 %vm931_vm1, %v756_v46 }
 0x1b7   : > { %6233 = vmatprep.subr.mxu1 %v1237_v60 }
 0x1b8   : > { %6234 = vmatpush3.msra.mxu1 %v1237_v60  ;;  %v6283_v56 = vpop.f32.mrf.mxu0 }
 0x1b9   : > { %6191 = vmatmul.mubr.msk.f32.gmra.mxu1 %vm931_vm1, %v757_v44  ;;  %6235 = vmatprep.subr.mxu1 %v6227_v43  ;;  %v1826_v58 = vmul.f32 %v6283_v56, %v6283_v56 }
 0x1ba   : > { %6236 = vmatpush3.msra.mxu1 %v6227_v43  ;;  %v1593_v50 = vpop.f32.mrf.mxu0  ;;  %6193 = vmatprep.mubr.msk.f32.mxu1 %vm931_vm1, %v758_v62  ;;  %v761_v43 = vld [vmem:[#allocation15 + $0x38] sm:$0xff] }
 0x1bb   : > { %v1825_v0 = vmul.f32 %v1593_v50, %v1593_v50  ;;  %6237 = vmatprep.subr.mxu1 %v1227_v10  ;;  %v1839_v44 = vsel %vm1837_vm2, %v1826_v58, 0.0  ;;  %v762_v50 = vld [vmem:[#allocation15 + $0x40] sm:$0xff]  ;;  %v763_v58 = vld [vmem:[#allocation15 + $0x48] sm:$0xff] }
 0x1bc   : > { %6238 = vmatpush3.msra.mxu1 %v1227_v10  ;;  %v6286_v59 = vpop.f32.mrf.mxu0 }
 0x1bd   : > { %v1838_v46 = vsel %vm1837_vm2, %v1825_v0, 0.0  ;;  %6194 = vmatmul.mubr.msk.f32.gmra.mxu1 %vm931_vm1, %v759_v52  ;;  %6239 = vmatprep.subr.mxu1 %v6224_v35  ;;  %v1828_v62 = vmul.f32 %v6286_v59, %v6286_v59 }
 0x1be   : > { %6240 = vmatpush3.msra.mxu1 %v6224_v35  ;;  %v1603_v60 = vpop.f32.mrf.mxu0  ;;  %6196 = vmatprep.mubr.msk.f32.mxu1 %vm931_vm1, %v760_v63  ;;  %v1840_v39 = vadd.f32 %v1839_v44, %v1838_v46 }
 0x1bf   : > { %v1827_v56 = vmul.f32 %v1603_v60, %v1603_v60  ;;  %6241 = vmatprep.subr.mxu1 %v1217_v38  ;;  %v1843_v52 = vsel %vm1837_vm2, %v1828_v62, 0.0 }
 0x1c0   : > { %6242 = vmatpush3.msra.mxu1 %v1217_v38  ;;  %v6289_v10 = vpop.f32.mrf.mxu0  ;;  %v764_v38 = vld [vmem:[#allocation15 + $0x50] sm:$0xff] }
 0x1c1   : > { %v1841_v36 = vsel %vm1837_vm2, %v1827_v56, 0.0  ;;  %6197 = vmatmul.mubr.msk.f32.gmra.mxu1 %vm931_vm1, %v761_v43  ;;  %6243 = vmatprep.subr.mxu1 %v8604_v1  ;;  %v1830_v0 = vmul.f32 %v6289_v10, %v6289_v10 }
 0x1c2   : > { %v1842_v35 = vadd.f32 %v1841_v36, %v1840_v39  ;;  %6244 = vmatpush3.msra.mxu1 %v8604_v1  ;;  %v1613_v63 = vpop.f32.mrf.mxu0  ;;  %6199 = vmatprep.mubr.msk.f32.mxu1 %vm931_vm1, %v762_v50  ;;  %v765_v1 = vld [vmem:[#allocation15 + $0x58] sm:$0xff] }
 0x1c3   : > { %v1829_v59 = vmul.f32 %v1613_v63, %v1613_v63  ;;  %6245 = vmatprep.subr.mxu1 %v8606_v26  ;;  %v1847_v44 = vsel %vm1837_vm2, %v1830_v0, 0.0 }
 0x1c4   : > { %v1844_v46 = vadd.f32 %v1843_v52, %v1842_v35  ;;  %6246 = vmatpush3.msra.mxu1 %v8606_v26  ;;  %v6292_v60 = vpop.f32.mrf.mxu0  ;;  %v1105_v26 = vld [vmem:[#allocation16] sm:$0xff] }
 0x1c5   : > { %v1845_v43 = vsel %vm1837_vm2, %v1829_v59, 0.0  ;;  %6200 = vmatmul.mubr.msk.f32.gmra.mxu1 %vm931_vm1, %v763_v58  ;;  %6247 = vmatprep.subr.mxu1 %v8600_v7  ;;  %v1832_v62 = vmul.f32 %v6292_v60, %v6292_v60  ;;  %v1106_v58 = vld [vmem:[#allocation16 + $0x8] sm:$0xff] }
 0x1c6   : > { %v1846_v36 = vadd.f32 %v1845_v43, %v1844_v46  ;;  %6248 = vmatpush3.msra.mxu1 %v8600_v7  ;;  %v1623_v39 = vpop.f32.mrf.mxu0  ;;  %6202 = vmatprep.mubr.msk.f32.mxu1 %vm931_vm1, %v764_v38 }
 0x1c7   : > { %v1831_v56 = vmul.f32 %v1623_v39, %v1623_v39  ;;  %6249 = vmatprep.subr.mxu1 %v8602_v3  ;;  %v1851_v52 = vsel %vm1837_vm2, %v1832_v62, 0.0 }
 0x1c8   : > { %v1848_v50 = vadd.f32 %v1847_v44, %v1846_v36  ;;  %6250 = vmatpush3.msra.mxu1 %v8602_v3  ;;  %v6295_v10 = vpop.f32.mrf.mxu0  ;;  %v1107_v3 = vld [vmem:[#allocation16 + $0x10] sm:$0xff]  ;;  %v1108_v36 = vld [vmem:[#allocation16 + $0x18] sm:$0xff] }
 0x1c9   : > { %v1849_v35 = vsel %vm1837_vm2, %v1831_v56, 0.0  ;;  %6203 = vmatmul.mubr.msk.f32.gmra.mxu1 %vm931_vm1, %v765_v1  ;;  %6251 = vmatprep.subr.mxu1 %v8596_v22  ;;  %v1834_v0 = vmul.f32 %v6295_v10, %v6295_v10 }
 0x1ca   : > { %v1850_v7 = vadd.f32 %v1849_v35, %v1848_v50  ;;  %6252 = vmatpush3.msra.mxu1 %v8596_v22  ;;  %v1633_v63 = vpop.f32.mrf.mxu0  ;;  %6255 = vmatprep.mubr.msk.f32.mxu1 %vm931_vm1, %v1105_v26  ;;  %v1110_v50 = vld [vmem:[#allocation16 + $0x28] sm:$0xff] }
 0x1cb   : > { %v1833_v59 = vmul.f32 %v1633_v63, %v1633_v63  ;;  %6253 = vmatprep.subr.mxu1 %v8598_v61  ;;  %v1855_v39 = vsel %vm1837_vm2, %v1834_v0, 0.0 }
 0x1cc   : > { %v1852_v38 = vadd.f32 %v1851_v52, %v1850_v7  ;;  %6254 = vmatpush3.msra.mxu1 %v8598_v61  ;;  %v6298_v46 = vpop.f32.mrf.mxu0  ;;  %v1109_v61 = vld [vmem:[#allocation16 + $0x20] sm:$0xff] }
 0x1cd   : > { %v1853_v60 = vsel %vm1837_vm2, %v1833_v59, 0.0  ;;  %6256 = vmatmul.mubr.msk.f32.vlgmr.msra.gmra.mxu1 %vm931_vm1, %v1106_v58  ;;  %6299 = vmatprep.subr.mxu1 %v8184_v55  ;;  %v1836_v1 = vmul.f32 %v6298_v46, %v6298_v46  ;;  %v1112_v58 = vld [vmem:[#allocation16 + $0x38] sm:$0xff]  ;;  %v1113_v52 = vld [vmem:[#allocation16 + $0x40] sm:$0xff]  ;;  %v1115_v59 = vld [vmem:[#allocation16 + $0x50] sm:$0xff] }
 0x1ce   : > { %v1854_v22 = vadd.f32 %v1853_v60, %v1852_v38  ;;  %v1643_v43 = vpop.f32.mrf.mxu0  ;;  %6300 = vmatpush3.msra.mxu1 %v8184_v55  ;;  %6258 = vmatprep.mubr.msk.f32.mxu1 %vm931_vm1, %v1107_v3  ;;  %v1116_v38 = vld [vmem:[#allocation16 + $0x58] sm:$0xff]  ;;  %v1652_v46 = vld [vmem:[#allocation18] sm:$0xff] }
 0x1cf   : > { %v1835_v44 = vmul.f32 %v1643_v43, %v1643_v43  ;;  %6301 = vmatprep.subr.mxu1 %v8166_v51  ;;  %v1859_v35 = vsel %vm1837_vm2, %v1836_v1, 0.0 }
 0x1d0   : > { %6302 = vmatpush3.msra.mxu1 %v8166_v51  ;;  %v8648_v62 = vpop.f32.mrf.mxu0  ;;  %v1856_v56 = vadd.f32 %v1855_v39, %v1854_v22  ;;  %v1111_v51 = vld [vmem:[#allocation16 + $0x30] sm:$0xff] }
 0x1d1   : > { %v1857_v26 = vsel %vm1837_vm2, %v1835_v44, 0.0  ;;  %6259 = vmatmul.mubr.msk.f32.gmra.mxu1 %vm931_vm1, %v1108_v36  ;;  %6303 = vmatprep.subr.mxu1 %v8160_v49  ;;  %v1654_v22 = vld [vmem:[#allocation18 + $0x10] sm:$0xff]  ;;  %v1655_v36 = vld [vmem:[#allocation18 + $0x18] sm:$0xff] }
 0x1d2   : > { %6304 = vmatpush3.msra.mxu1 %v8160_v49  ;;  %v8654_v55 = vpop.f32.mrf.mxu0  ;;  %6261 = vmatprep.mubr.msk.f32.mxu1 %vm931_vm1, %v1109_v61  ;;  %v1858_v10 = vadd.f32 %v1857_v26, %v1856_v56  ;;  %v1658_v44 = vld [vmem:[#allocation18 + $0x30] sm:$0xff]  ;;  %v1659_v26 = vld [vmem:[#allocation18 + $0x38] sm:$0xff] }
 0x1d3   : > { %6305 = vmatprep.subr.mxu1 %v8142_v45 }
 0x1d4   : > { %6306 = vmatpush3.msra.mxu1 %v8142_v45  ;;  %v8660_v7 = vpop.f32.mrf.mxu0  ;;  %v8662_v63 = vadd.f32 %v1859_v35, %v1858_v10  ;;  %v1661_v35 = vld [vmem:[#allocation18 + $0x48] sm:$0xff] }
 0x1d5   : > { %6262 = vmatmul.mubr.msk.f32.gmra.mxu1 %vm931_vm1, %v1110_v50  ;;  %6307 = vmatprep.subr.mxu1 %v8136_v42  ;;  %v1660_v50 = vld [vmem:[#allocation18 + $0x40] sm:$0xff] }
 0x1d6   : > { %6308 = vmatpush3.msra.mxu1 %v8136_v42  ;;  %v8667_v49 = vpop.f32.mrf.mxu0  ;;  %6264 = vmatprep.mubr.msk.f32.mxu1 %vm931_vm1, %v1111_v51  ;;  %v1114_v42 = vld [vmem:[#allocation16 + $0x48] sm:$0xff] }
 0x1d7   : > { %6309 = vmatprep.subr.mxu1 %v8118_v37 }
 0x1d8   : > { %6310 = vmatpush3.msra.mxu1 %v8118_v37  ;;  %v8672_v45 = vpop.f32.mrf.mxu0  ;;  %v9939_v37 = vmov 0.0  }
 0x1d9   : > { %6265 = vmatmul.mubr.msk.f32.gmra.mxu1 %vm931_vm1, %v1112_v58  ;;  %6311 = vmatprep.subr.mxu1 %v8112_v34  ;;  %v1662_v58 = vld [vmem:[#allocation18 + $0x50] sm:$0xff] }
 0x1da   : > { %6312 = vmatpush3.msra.mxu1 %v8112_v34  ;;  %v8677_v0 = vpop.f32.mrf.mxu0  ;;  %6267 = vmatprep.mubr.msk.f32.mxu1 %vm931_vm1, %v1113_v52 }
 0x1db   : > { %6313 = vmatprep.subr.mxu1 %v8089_v25  ;;  %6707 = vmatprep.subr.mxu0 %v9939_v37 }
 0x1dc   : > { %6314 = vmatpush3.msra.mxu1 %v8089_v25  ;;  %v6360_v3 = vpop.f32.mrf.mxu0  ;;  %6731 = vmatprep.mubr.msk.f32.mxu0 %vm7733_vm3, %v9939_v37 }
 0x1dd   : > { %6268 = vmatmul.mubr.msk.f32.gmra.mxu1 %vm931_vm1, %v1114_v42  ;;  %6315 = vmatprep.subr.mxu1 %v8081_v21 }
 0x1de   : > { %6316 = vmatpush3.msra.mxu1 %v8081_v21  ;;  %v2063_v34 = vpop.f32.mrf.mxu0  ;;  %6270 = vmatprep.mubr.msk.f32.mxu1 %vm931_vm1, %v1115_v59  ;;  %v1653_v21 = vld [vmem:[#allocation18 + $0x8] sm:$0xff]  ;;  %v8724_v59 = vld [vmem:[#allocation12] sm:$0xff] }
 0x1df   : > { %6317 = vmatprep.subr.mxu1 %v8060_v9 }
 0x1e0   : > { %6318 = vmatpush3.msra.mxu1 %v8060_v9  ;;  %v6363_v25 = vpop.f32.mrf.mxu0 }
 0x1e1   : > { %6271 = vmatmul.mubr.msk.f32.gmra.mxu1 %vm931_vm1, %v1116_v38  ;;  %6319 = vmatprep.subr.mxu1 %v8050_v6  ;;  %v8744_v38 = vld [vmem:[#allocation12 + $0x18] sm:$0xff] }
 0x1e2   : > { %6320 = vmatpush3.msra.mxu1 %v8050_v6  ;;  %v2073_v60 = vpop.f32.mrf.mxu0  ;;  %6323 = vmatprep.mubr.msk.f32.mxu1 %vm931_vm1, %v1652_v46  ;;  %v1656_v6 = vld [vmem:[#allocation18 + $0x20] sm:$0xff]  ;;  %v8746_v46 = vld [vmem:[#allocation12 + $0x20] sm:$0xff] }
 0x1e3   : > { %6321 = vmatprep.subr.mxu1 %v8040_v2 }
 0x1e4   : > { %6322 = vmatpush3.msra.mxu1 %v8040_v2  ;;  %v6366_v43 = vpop.f32.mrf.mxu0  ;;  %v1657_v2 = vld [vmem:[#allocation18 + $0x28] sm:$0xff] }
 0x1e5   : > { %6324 = vmatmul.mubr.msk.f32.vlgmr.msra.gmra.mxu1 %vm931_vm1, %v1653_v21  ;;  %6367 = vmatprep.subr.mxu1 %v6366_v43  ;;  %v8758_v21 = vld [vmem:[#allocation12 + $0x30] sm:$0xff] }
 0x1e6   : > { %v2083_v9 = vpop.f32.mrf.mxu0  ;;  %6368 = vmatpush3.msra.mxu1 %v6366_v43  ;;  %6326 = vmatprep.mubr.msk.f32.mxu1 %vm931_vm1, %v1654_v22 }
 0x1e7   : > { %6369 = vmatprep.subr.mxu1 %v2083_v9 }
 0x1e8   : > { %6370 = vmatpush3.msra.mxu1 %v2083_v9  ;;  %v8697_v39 = vpop.f32.mrf.mxu0  ;;  %v8768_v9 = vld [vmem:[#allocation12 + $0x38] sm:$0xff] }
 0x1e9   : > { %6327 = vmatmul.mubr.msk.f32.gmra.mxu1 %vm931_vm1, %v1655_v36  ;;  %6371 = vmatprep.subr.mxu1 %v6363_v25  ;;  %v8770_v36 = vld [vmem:[#allocation12 + $0x40] sm:$0xff] }
 0x1ea   : > { %6372 = vmatpush3.msra.mxu1 %v6363_v25  ;;  %v8700_v1 = vpop.f32.mrf.mxu0  ;;  %6329 = vmatprep.mubr.msk.f32.mxu1 %vm931_vm1, %v1656_v6 }
 0x1eb   : > { %6373 = vmatprep.subr.mxu1 %v2073_v60 }
 0x1ec   : > { %6374 = vmatpush3.msra.mxu1 %v2073_v60  ;;  %v8703_v61 = vpop.f32.mrf.mxu0  ;;  %v8756_v60 = vld [vmem:[#allocation12 + $0x28] sm:$0xff] }
 0x1ed   : > { %6330 = vmatmul.mubr.msk.f32.gmra.mxu1 %vm931_vm1, %v1657_v2  ;;  %6375 = vmatprep.subr.mxu1 %v6360_v3 }
 0x1ee   : > { %6376 = vmatpush3.msra.mxu1 %v6360_v3  ;;  %v8706_v56 = vpop.f32.mrf.mxu0  ;;  %6332 = vmatprep.mubr.msk.f32.mxu1 %vm931_vm1, %v1658_v44  ;;  %v8782_v44 = vld [vmem:[#allocation12 + $0x48] sm:$0xff] }
 0x1ef   : > { %6377 = vmatprep.subr.mxu1 %v2063_v34 }
 0x1f0   : > { %6378 = vmatpush3.msra.mxu1 %v2063_v34  ;;  %v8709_v10 = vpop.f32.mrf.mxu0  ;;  %v8735_v34 = vld [vmem:[#allocation12 + $0x10] sm:$0xff] }
 0x1f1   : > { %6333 = vmatmul.mubr.msk.f32.gmra.mxu1 %vm931_vm1, %v1659_v26  ;;  %6379 = vmatprep.subr.mxu1 %v8672_v45  ;;  %v8785_v26 = vld [vmem:[#allocation12 + $0x50] sm:$0xff] }
 0x1f2   : > { %6380 = vmatpush3.msra.mxu1 %v8672_v45  ;;  %v8714_v51 = vpop.f32.mrf.mxu0  ;;  %6335 = vmatprep.mubr.msk.f32.mxu1 %vm931_vm1, %v1660_v50  ;;  %v1663_v45 = vld [vmem:[#allocation18 + $0x58] sm:$0x1f] }
 0x1f3   : > { %6381 = vmatprep.subr.mxu1 %v8677_v0 }
 0x1f4   : > { %6382 = vmatpush3.msra.mxu1 %v8677_v0  ;;  %v6428_v52 = vpop.f32.mrf.mxu0 }
 0x1f5   : > { %6336 = vmatmul.mubr.msk.f32.gmra.mxu1 %vm931_vm1, %v1661_v35  ;;  %6383 = vmatprep.subr.mxu1 %v8660_v7  ;;  %v8794_v35 = vld [vmem:[#allocation12 + $0x58] sm:$0xff] }
 0x1f6   : > { %6384 = vmatpush3.msra.mxu1 %v8660_v7  ;;  %v2385_v42 = vpop.f32.mrf.mxu0  ;;  %6338 = vmatprep.mubr.msk.f32.mxu1 %vm931_vm1, %v1662_v58  ;;  %v8732_v7 = vld [vmem:[#allocation12 + $0x8] sm:$0xff] }
 0x1f7   : > { %6385 = vmatprep.subr.mxu1 %v8667_v49 }
 0x1f8   : > { %6386 = vmatpush3.msra.mxu1 %v8667_v49  ;;  %v6431_v3 = vpop.f32.mrf.mxu0 }
 0x1f9   : > { %6339 = vmatmul.mubr.msk.f32.gmra.mxu1 %vm931_vm1, %v1663_v45  ;;  %6387 = vmatprep.subr.mxu1 %v8648_v62  ;;  %v713_v45 = vand.u32 2147483647, %v8101_v31 }
 0x1fa   : > { %6388 = vmatpush3.msra.mxu1 %v8648_v62  ;;  %v2395_v0 = vpop.f32.mrf.mxu0  ;;  %6391 = vmatprep.mubr.msk.f32.mxu1 %vm931_vm1, %v8724_v59 }
 0x1fb   : > { %6389 = vmatprep.subr.mxu1 %v8654_v55 }
 0x1fc   : > { %6390 = vmatpush3.msra.mxu1 %v8654_v55  ;;  %v6434_v49 = vpop.f32.mrf.mxu0 }
 0x1fd   : > { %6392 = vmatmul.mubr.msk.f32.vlgmr.msra.gmra.mxu1 %vm931_vm1, %v8732_v7  ;;  %6435 = vmatprep.subr.mxu1 %v6434_v49 }
 0x1fe   : > { %v2405_v62 = vpop.f32.mrf.mxu0  ;;  %6436 = vmatpush3.msra.mxu1 %v6434_v49  ;;  %6394 = vmatprep.mubr.msk.f32.mxu1 %vm931_vm1, %v8735_v34 }
 0x1ff   : > { %6437 = vmatprep.subr.mxu1 %v2405_v62 }
 0x200   : > { %6438 = vmatpush3.msra.mxu1 %v2405_v62  ;;  %v8748_v25 = vpop.f32.mrf.mxu0 }
 0x201   : > { %6395 = vmatmul.mubr.msk.f32.gmra.mxu1 %vm931_vm1, %v8744_v38  ;;  %6439 = vmatprep.subr.mxu1 %v6431_v3 }
 0x202   : > { %6440 = vmatpush3.msra.mxu1 %v6431_v3  ;;  %v8752_v55 = vpop.f32.mrf.mxu0  ;;  %6397 = vmatprep.mubr.msk.f32.mxu1 %vm931_vm1, %v8746_v46  ;;  %v669_v3 = vmul.f32 %v8109_v33, %v8109_v33 }
 0x203   : > { %6441 = vmatprep.subr.mxu1 %v2395_v0 }
 0x204   : > { %6442 = vmatpush3.msra.mxu1 %v2395_v0  ;;  %v8760_v22 = vpop.f32.mrf.mxu0 }
 0x205   : > { %6398 = vmatmul.mubr.msk.f32.gmra.mxu1 %vm931_vm1, %v8756_v60  ;;  %6443 = vmatprep.subr.mxu1 %v6428_v52 }
 0x206   : > { %6444 = vmatpush3.msra.mxu1 %v6428_v52  ;;  %v8764_v43 = vpop.f32.mrf.mxu0  ;;  %6400 = vmatprep.mubr.msk.f32.mxu1 %vm931_vm1, %v8758_v21 }
 0x207   : > { %6445 = vmatprep.subr.mxu1 %v2385_v42 }
 0x208   : > { %6446 = vmatpush3.msra.mxu1 %v2385_v42  ;;  %v8772_v6 = vpop.f32.mrf.mxu0 }
 0x209   : > { %6401 = vmatmul.mubr.msk.f32.gmra.mxu1 %vm931_vm1, %v8768_v9  ;;  %6447 = vmatprep.subr.mxu1 %v8709_v10 }
 0x20a   : > { %6448 = vmatpush3.msra.mxu1 %v8709_v10  ;;  %v8778_v2 = vpop.f32.mrf.mxu0  ;;  %6403 = vmatprep.mubr.msk.f32.mxu1 %vm931_vm1, %v8770_v36 }
 0x20b   : > { %6449 = vmatprep.subr.mxu1 %v8714_v51 }
 0x20c   : > { %6450 = vmatpush3.msra.mxu1 %v8714_v51  ;;  %v6496_v50 = vpop.f32.mrf.mxu0 }
 0x20d   : > { %6404 = vmatmul.mubr.msk.f32.gmra.mxu1 %vm931_vm1, %v8782_v44  ;;  %6451 = vmatprep.subr.mxu1 %v8703_v61 }
 0x20e   : > { %6452 = vmatpush3.msra.mxu1 %v8703_v61  ;;  %v2707_v10 = vpop.f32.mrf.mxu0  ;;  %6406 = vmatprep.mubr.msk.f32.mxu1 %vm931_vm1, %v8785_v26 }
 0x20f   : > { %6453 = vmatprep.subr.mxu1 %v8706_v56 }
 0x210   : > { %6454 = vmatpush3.msra.mxu1 %v8706_v56  ;;  %v6499_v58 = vpop.f32.mrf.mxu0  ;;  %v667_v56 = vmul.f32 %v8072_v14, %v8072_v14 }
 0x211   : > { %6407 = vmatmul.mubr.msk.f32.gmra.mxu1 %vm931_vm1, %v8794_v35  ;;  %6455 = vmatprep.subr.mxu1 %v8697_v39 }
 0x212   : > { %6456 = vmatpush3.msra.mxu1 %v8697_v39  ;;  %v2717_v51 = vpop.f32.mrf.mxu0  ;;  %6459 = vmatprep.mubr.msk.f32.mxu1 %vm931_vm1, %v8724_v59  ;;  %v681_v42 = vsel %vm677_vm0, %v667_v56, 0.0  ;;  %v685_v56 = vsel %vm677_vm0, %v669_v3, 0.0  ;;  %v672_v3 = vmul.f32 %v8151_v47, %v8151_v47 }
 0x213   : > { %6457 = vmatprep.subr.mxu1 %v8700_v1  ;;  %v682_v49 = vadd.f32 %v681_v42, %v8094_v27  ;;  %v670_v27 = vmul.f32 %v8127_v40, %v8127_v40  ;;  %v715_v42 = vand.u32 2147483647, %v8127_v40 }
 0x214   : > { %6458 = vmatpush3.msra.mxu1 %v8700_v1  ;;  %v6502_v61 = vpop.f32.mrf.mxu0  ;;  %v668_v1 = vmul.f32 %v8101_v31, %v8101_v31 }
 0x215   : > { %6460 = vmatmul.mubr.msk.f32.vlgmr.msra.gmra.mxu1 %vm931_vm1, %v8732_v7  ;;  %6503 = vmatprep.subr.mxu1 %v6502_v61 }
 0x216   : > { %v2727_v52 = vpop.f32.mrf.mxu0  ;;  %6504 = vmatpush3.msra.mxu1 %v6502_v61  ;;  %6462 = vmatprep.mubr.msk.f32.mxu1 %vm931_vm1, %v8735_v34  ;;  %v683_v62 = vsel %vm677_vm0, %v668_v1, 0.0  ;;  %v727_v61 = vsel %vm677_vm0, %v713_v45, 0.0  ;;  %v687_v1 = vsel %vm677_vm0, %v670_v27, 0.0 }
 0x217   : > { %6505 = vmatprep.subr.mxu1 %v2727_v52  ;;  %v684_v31 = vadd.f32 %v683_v62, %v682_v49  ;;  %v728_v40 = vadd.f32 %v727_v61, %v8103_v32  ;;  %v673_v32 = vmul.f32 %v8157_v48, %v8157_v48  ;;  %v691_v61 = vsel %vm677_vm0, %v672_v3, 0.0 }
 0x218   : > { %6506 = vmatpush3.msra.mxu1 %v2727_v52  ;;  %v8812_v39 = vpop.f32.mrf.mxu0 }
 0x219   : > { %6463 = vmatmul.mubr.msk.f32.gmra.mxu1 %vm931_vm1, %v8744_v38  ;;  %6507 = vmatprep.subr.mxu1 %v6499_v58 }
 0x21a   : > { %6508 = vmatpush3.msra.mxu1 %v6499_v58  ;;  %v8819_v14 = vpop.f32.mrf.mxu0  ;;  %6465 = vmatprep.mubr.msk.f32.mxu1 %vm931_vm1, %v8746_v46 }
 0x21b   : > { %6509 = vmatprep.subr.mxu1 %v2717_v51 }
 0x21c   : > { %6510 = vmatpush3.msra.mxu1 %v2717_v51  ;;  %v8826_v0 = vpop.f32.mrf.mxu0  ;;  %v714_v51 = vand.u32 2147483647, %v8109_v33  ;;  %v671_v33 = vmul.f32 %v8133_v41, %v8133_v41 }
 0x21d   : > { %6466 = vmatmul.mubr.msk.f32.gmra.mxu1 %vm931_vm1, %v8756_v60  ;;  %6511 = vmatprep.subr.mxu1 %v6496_v50 }
 0x21e   : > { %6512 = vmatpush3.msra.mxu1 %v6496_v50  ;;  %v8832_v58 = vpop.f32.mrf.mxu0  ;;  %6468 = vmatprep.mubr.msk.f32.mxu1 %vm931_vm1, %v8758_v21  ;;  %v686_v50 = vadd.f32 %v685_v56, %v684_v31  ;;  %v689_v49 = vsel %vm677_vm0, %v671_v33, 0.0  ;;  %v729_v62 = vsel %vm677_vm0, %v714_v51, 0.0  ;;  %v716_v56 = vand.u32 2147483647, %v8133_v41 }
 0x21f   : > { %6513 = vmatprep.subr.mxu1 %v2707_v10  ;;  %v730_v27 = vadd.f32 %v729_v62, %v728_v40  ;;  %v731_v51 = vsel %vm677_vm0, %v715_v42, 0.0  ;;  %v717_v41 = vand.u32 2147483647, %v8151_v47 }
 0x220   : > { %6514 = vmatpush3.msra.mxu1 %v2707_v10  ;;  %v8841_v52 = vpop.f32.mrf.mxu0  ;;  %v688_v10 = vadd.f32 %v687_v1, %v686_v50  ;;  %v674_v1 = vmul.f32 %v8175_v53, %v8175_v53  ;;  %v733_v42 = vsel %vm677_vm0, %v716_v56, 0.0 }
 0x221   : > { %6469 = vmatmul.mubr.msk.f32.gmra.mxu1 %vm931_vm1, %v8768_v9  ;;  %6515 = vmatprep.subr.mxu1 %v8772_v6  ;;  %v732_v33 = vadd.f32 %v731_v51, %v730_v27  ;;  %v735_v47 = vsel %vm677_vm0, %v717_v41, 0.0  ;;  %v719_v51 = vand.u32 2147483647, %v8175_v53 }
 0x222   : > { %6516 = vmatpush3.msra.mxu1 %v8772_v6  ;;  %v8851_v45 = vpop.f32.mrf.mxu0  ;;  %6471 = vmatprep.mubr.msk.f32.mxu1 %vm931_vm1, %v8770_v36  ;;  %v690_v31 = vadd.f32 %v689_v49, %v688_v10  ;;  %v693_v10 = vsel %vm677_vm0, %v673_v32, 0.0  ;;  %v675_v49 = vmul.f32 %v8181_v54, %v8181_v54  ;;  %v695_v62 = vsel %vm677_vm0, %v674_v1, 0.0 }
 0x223   : > { %6517 = vmatprep.subr.mxu1 %v8778_v2  ;;  %v734_v3 = vadd.f32 %v733_v42, %v732_v33  ;;  %v739_v41 = vsel %vm677_vm0, %v719_v51, 0.0 }
 0x224   : > { %6518 = vmatpush3.msra.mxu1 %v8778_v2  ;;  %v8862_v6 = vpop.f32.mrf.mxu0  ;;  %v692_v50 = vadd.f32 %v691_v61, %v690_v31  ;;  %v718_v31 = vand.u32 2147483647, %v8157_v48  ;;  %v676_v61 = vmul.f32 %v8193_v57, %v8193_v57  ;;  %v697_v56 = vsel %vm677_vm0, %v675_v49, 0.0 }
 0x225   : > { %6472 = vmatmul.mubr.msk.f32.gmra.mxu1 %vm931_vm1, %v8782_v44  ;;  %6519 = vmatprep.subr.mxu1 %v8760_v22  ;;  %v736_v32 = vadd.f32 %v735_v47, %v734_v3 }
 0x226   : > { %6520 = vmatpush3.msra.mxu1 %v8760_v22  ;;  %v8873_v2 = vpop.f32.mrf.mxu0  ;;  %6474 = vmatprep.mubr.msk.f32.mxu1 %vm931_vm1, %v8785_v26  ;;  %v694_v40 = vadd.f32 %v693_v10, %v692_v50  ;;  %v737_v48 = vsel %vm677_vm0, %v718_v31, 0.0  ;;  %v699_v1 = vsel %vm677_vm0, %v676_v61, 0.0  ;;  %v720_v10 = vand.u32 2147483647, %v8181_v54 }
 0x227   : > { %6521 = vmatprep.subr.mxu1 %v8764_v43  ;;  %v738_v33 = vadd.f32 %v737_v48, %v736_v32 }
 0x228   : > { %6522 = vmatpush3.msra.mxu1 %v8764_v43  ;;  %v6567_v22 = vpop.f32.mrf.mxu0  ;;  %v696_v27 = vadd.f32 %v695_v62, %v694_v40  ;;  %v721_v40 = vand.u32 2147483647, %v8193_v57  ;;  %v741_v3 = vsel %vm677_vm0, %v720_v10, 0.0 }
 0x229   : > { %6475 = vmatmul.mubr.msk.f32.gmra.mxu1 %vm931_vm1, %v8794_v35  ;;  %6523 = vmatprep.subr.mxu1 %v8748_v25 }
 0x22a   : > { %6524 = vmatpush3.msra.mxu1 %v8748_v25  ;;  %v3015_v43 = vpop.f32.mrf.mxu0  ;;  %6527 = vmatprep.mubr.msk.f32.mxu1 %vm931_vm1, %v8724_v59  ;;  %v698_v50 = vadd.f32 %v697_v56, %v696_v27  ;;  %v743_v54 = vsel %vm677_vm0, %v721_v40, 0.0  ;;  %v7327_v40 = vld [vmem:[#allocation6] sm:$0xff] }
 0x22b   : > { %6525 = vmatprep.subr.mxu1 %v8752_v55 }
 0x22c   : > { %6526 = vmatpush3.msra.mxu1 %v8752_v55  ;;  %v6570_v25 = vpop.f32.mrf.mxu0  ;;  %v700_v53 = vadd.f32 %v699_v1, %v698_v50  ;;  %v740_v55 = vadd.f32 %v739_v41, %v738_v33 }
 0x22d   : > { %6528 = vmatmul.mubr.msk.f32.vlgmr.msra.gmra.mxu1 %vm931_vm1, %v8732_v7  ;;  %6571 = vmatprep.subr.mxu1 %v6570_v25 }
 0x22e   : > { %v3025_v42 = vpop.f32.mrf.mxu0  ;;  %6572 = vmatpush3.msra.mxu1 %v6570_v25  ;;  %6530 = vmatprep.mubr.msk.f32.mxu1 %vm931_vm1, %v8735_v34  ;;  %v742_v62 = vadd.f32 %v741_v3, %v740_v55 }
 0x22f   : > { %6573 = vmatprep.subr.mxu1 %v3025_v42  ;;  %701 = vadd.xlane.f32.xlu0 %v700_v53  ;;  %v3654_v53 = vld [vmem:[#allocation13 + $0x28] sm:$0xff] }
 0x230   : > { %6574 = vmatpush3.msra.mxu1 %v3025_v42  ;;  %v8911_v49 = vpop.f32.mrf.mxu0  ;;  %v744_v57 = vadd.f32 %v743_v54, %v742_v62  ;;  %v7326_v42 = vld [vmem:[#allocation6 + $0x8] sm:$0xff]  ;;  %v3655_v62 = vld [vmem:[#allocation13 + $0x30] sm:$0xff] }
 0x231   : > { %6531 = vmatmul.mubr.msk.f32.gmra.mxu1 %vm931_vm1, %v8744_v38  ;;  %6575 = vmatprep.subr.mxu1 %v6567_v22 }
 0x232   : > { %6576 = vmatpush3.msra.mxu1 %v6567_v22  ;;  %v8916_v31 = vpop.f32.mrf.mxu0  ;;  %6533 = vmatprep.mubr.msk.f32.mxu1 %vm931_vm1, %v8746_v46 }
 0x233   : > { %6577 = vmatprep.subr.mxu1 %v3015_v43  ;;  %745 = vadd.xlane.f32.xlu0 %v744_v57  ;;  %v7330_v57 = vld [vmem:[%s8013_s10 + $0x10] sm:$0xff] }
 0x234   : > { %6578 = vmatpush3.msra.mxu1 %v3015_v43  ;;  %v8920_v47 = vpop.f32.mrf.mxu0 }
 0x235   : > { %6534 = vmatmul.mubr.msk.f32.gmra.mxu1 %vm931_vm1, %v8756_v60  ;;  %6579 = vmatprep.subr.mxu1 %v8862_v6 }
 0x236   : > { %6580 = vmatpush3.msra.mxu1 %v8862_v6  ;;  %v8926_v27 = vpop.f32.mrf.mxu0  ;;  %6536 = vmatprep.mubr.msk.f32.mxu1 %vm931_vm1, %v8758_v21 }
 0x237   : > { %6581 = vmatprep.subr.mxu1 %v8873_v2 }
 0x238   : > { %6582 = vmatpush3.msra.mxu1 %v8873_v2  ;;  %v6629_v22 = vpop.f32.mrf.mxu0 }
 0x239   : > { %6537 = vmatmul.mubr.msk.f32.gmra.mxu1 %vm931_vm1, %v8768_v9  ;;  %6583 = vmatprep.subr.mxu1 %v8841_v52 }
 0x23a   : > { %6584 = vmatpush3.msra.mxu1 %v8841_v52  ;;  %v3293_v43 = vpop.f32.mrf.mxu0  ;;  %6539 = vmatprep.mubr.msk.f32.mxu1 %vm931_vm1, %v8770_v36 }
 0x23b   : > { %6585 = vmatprep.subr.mxu1 %v8851_v45 }
 0x23c   : > { %6586 = vmatpush3.msra.mxu1 %v8851_v45  ;;  %v6632_v6 = vpop.f32.mrf.mxu0 }
 0x23d   : > { %6540 = vmatmul.mubr.msk.f32.gmra.mxu1 %vm931_vm1, %v8782_v44  ;;  %6587 = vmatprep.subr.mxu1 %v8826_v0 }
 0x23e   : > { %6588 = vmatpush3.msra.mxu1 %v8826_v0  ;;  %v3303_v2 = vpop.f32.mrf.mxu0  ;;  %6542 = vmatprep.mubr.msk.f32.mxu1 %vm931_vm1, %v8785_v26 }
 0x23f   : > { %6589 = vmatprep.subr.mxu1 %v8832_v58 }
 0x240   : > { %6590 = vmatpush3.msra.mxu1 %v8832_v58  ;;  %v6635_v52 = vpop.f32.mrf.mxu0 }
 0x241   : > { %6543 = vmatmul.mubr.msk.f32.gmra.mxu1 %vm931_vm1, %v8794_v35  ;;  %6591 = vmatprep.subr.mxu1 %v8812_v39 }
 0x242   : > { %6592 = vmatpush3.msra.mxu1 %v8812_v39  ;;  %v3313_v45 = vpop.f32.mrf.mxu0  ;;  %6595 = vmatprep.mubr.msk.f32.mxu1 %vm931_vm1, %v8724_v59 }
 0x243   : > { %6593 = vmatprep.subr.mxu1 %v8819_v14 }
 0x244   : > { %6594 = vmatpush3.msra.mxu1 %v8819_v14  ;;  %v6638_v0 = vpop.f32.mrf.mxu0 }
 0x245   : > { %6596 = vmatmul.mubr.msk.f32.vlgmr.msra.gmra.mxu1 %vm931_vm1, %v8732_v7  ;;  %6639 = vmatprep.subr.mxu1 %v6638_v0 }
 0x246   : > { %v3323_v58 = vpop.f32.mrf.mxu0  ;;  %6640 = vmatpush3.msra.mxu1 %v6638_v0  ;;  %6598 = vmatprep.mubr.msk.f32.mxu1 %vm931_vm1, %v8735_v34 }
 0x247   : > { %6641 = vmatprep.subr.mxu1 %v3323_v58 }
 0x248   : > { %6642 = vmatpush3.msra.mxu1 %v3323_v58  ;;  %v8960_v39 = vpop.f32.mrf.mxu0 }
 0x249   : > { %6599 = vmatmul.mubr.msk.f32.gmra.mxu1 %vm931_vm1, %v8744_v38  ;;  %6643 = vmatprep.subr.mxu1 %v6635_v52 }
 0x24a   : > { %6644 = vmatpush3.msra.mxu1 %v6635_v52  ;;  %v8964_v14 = vpop.f32.mrf.mxu0  ;;  %6601 = vmatprep.mubr.msk.f32.mxu1 %vm931_vm1, %v8746_v46 }
 0x24b   : > { %6645 = vmatprep.subr.mxu1 %v3313_v45 }
 0x24c   : > { %6646 = vmatpush3.msra.mxu1 %v3313_v45  ;;  %v8968_v32 = vpop.f32.mrf.mxu0  ;;  %v3657_v45 = vld [vmem:[#allocation13 + $0x40] sm:$0x3] }
 0x24d   : > { %6602 = vmatmul.mubr.msk.f32.gmra.mxu1 %vm931_vm1, %v8756_v60  ;;  %6647 = vmatprep.subr.mxu1 %v6632_v6 }
 0x24e   : > { %6648 = vmatpush3.msra.mxu1 %v6632_v6  ;;  %v8972_v61 = vpop.f32.mrf.mxu0  ;;  %6604 = vmatprep.mubr.msk.f32.mxu1 %vm931_vm1, %v8758_v21  ;;  %v7332_v6 = vld [vmem:[%s8013_s10 + $0x20] sm:$0xff] }
 0x24f   : > { %6649 = vmatprep.subr.mxu1 %v3303_v2 }
 0x250   : > { %6650 = vmatpush3.msra.mxu1 %v3303_v2  ;;  %v6697_v56 = vpop.f32.mrf.mxu0 }
 0x251   : > { %6605 = vmatmul.mubr.msk.f32.gmra.mxu1 %vm931_vm1, %v8768_v9  ;;  %6651 = vmatprep.subr.mxu1 %v6629_v22 }
 0x252   : > { %6652 = vmatpush3.msra.mxu1 %v6629_v22  ;;  %v3744_v51 = vpop.f32.mrf.mxu0  ;;  %6607 = vmatprep.mubr.msk.f32.mxu1 %vm931_vm1, %v8770_v36 }
 0x253   : > { %6653 = vmatprep.subr.mxu1 %v3293_v43 }
 0x254   : > { %6654 = vmatpush3.msra.mxu1 %v3293_v43  ;;  %v6700_v48 = vpop.f32.mrf.mxu0  ;;  %v7331_v43 = vld [vmem:[%s8013_s10 + $0x18] sm:$0xff] }
 0x255   : > { %6608 = vmatmul.mubr.msk.f32.gmra.mxu1 %vm931_vm1, %v8782_v44  ;;  %6655 = vmatprep.subr.mxu1 %v8920_v47 }
 0x256   : > { %6656 = vmatpush3.msra.mxu1 %v8920_v47  ;;  %v3754_v25 = vpop.f32.mrf.mxu0  ;;  %6610 = vmatprep.mubr.msk.f32.mxu1 %vm931_vm1, %v8785_v26 }
 0x257   : > { %6657 = vmatprep.subr.mxu1 %v8926_v27 }
 0x258   : > { %6658 = vmatpush3.msra.mxu1 %v8926_v27  ;;  %v6703_v50 = vpop.f32.mrf.mxu0  ;;  %v3656_v27 = vld [vmem:[#allocation13 + $0x38] sm:$0xff] }
 0x259   : > { %6611 = vmatmul.mubr.msk.f32.gmra.mxu1 %vm931_vm1, %v8794_v35  ;;  %6659 = vmatprep.subr.mxu1 %v8911_v49 }
 0x25a   : > { %6660 = vmatpush3.msra.mxu1 %v8911_v49  ;;  %v3764_v33 = vpop.f32.mrf.mxu0  ;;  %6663 = vmatprep.mubr.msk.f32.mxu1 %vm931_vm1, %v8724_v59  ;;  %v7328_v49 = vld [vmem:[%s8013_s10] sm:$0xff] }
 0x25b   : > { %6661 = vmatprep.subr.mxu1 %v8916_v31 }
 0x25c   : > { %6662 = vmatpush3.msra.mxu1 %v8916_v31  ;;  %v6706_v1 = vpop.f32.mrf.mxu0  ;;  %v7329_v31 = vld [vmem:[%s8013_s10 + $0x8] sm:$0xff] }
 0x25d   : > { %6664 = vmatmul.mubr.msk.f32.vlgmr.msra.gmra.mxu1 %vm931_vm1, %v8732_v7  ;;  %7066 = vmatprep.subr.mxu1 %v9939_v37  ;;  %v3649_v7 = vld [vmem:[#allocation13] sm:$0xff] }
 0x25e   : > { %6708 = vmatpush3.msra.mxu0 %v6706_v1  ;;  %v3774_v10 = vpop.f32.mrf.mxu0  ;;  %7078 = vmatpush3.msra.mxu1 %v6706_v1 }
 0x25f   : > { %6709 = vmatprep.subr.mxu0 %v9939_v37  ;;  %7067 = vmatprep.subr.mxu1 %v9939_v37 }
 0x260   : > { %6710 = vmatpush3.msra.mxu0 %v3774_v10  ;;  %6666 = vmatprep.mubr.msk.f32.mxu1 %vm931_vm1, %v8735_v34 }
 0x261   : > { %7079 = vmatpush3.msra.mxu1 %v3774_v10  ;;  %6711 = vmatprep.subr.mxu0 %v9939_v37  ;;  %v7335_v10 = vld [vmem:[%s8013_s10 + $0x38] sm:$0xff] }
 0x262   : > { %6667 = vmatmul.mubr.msk.f32.gmra.mxu1 %vm931_vm1, %v8744_v38  ;;  %7068 = vmatprep.subr.mxu1 %v9939_v37  ;;  %v3652_v38 = vld [vmem:[#allocation13 + $0x18] sm:$0xff] }
 0x263   : > { %6712 = vmatpush3.msra.mxu0 %v6703_v50  ;;  %7080 = vmatpush3.msra.mxu1 %v6703_v50 }
 0x264   : > { %6713 = vmatprep.subr.mxu0 %v9939_v37  ;;  %7069 = vmatprep.subr.mxu1 %v9939_v37 }
 0x265   : > { %6714 = vmatpush3.msra.mxu0 %v3764_v33  ;;  %6669 = vmatprep.mubr.msk.f32.mxu1 %vm931_vm1, %v8746_v46 }
 0x266   : > { %7081 = vmatpush3.msra.mxu1 %v3764_v33  ;;  %6715 = vmatprep.subr.mxu0 %v9939_v37 }
 0x267   : > { %6670 = vmatmul.mubr.msk.f32.gmra.mxu1 %vm931_vm1, %v8756_v60  ;;  %7070 = vmatprep.subr.mxu1 %v9939_v37  ;;  %v7324_v60 = vld [vmem:[#allocation6 + $0x18] sm:$0xff] }
 0x268   : > { %6716 = vmatpush3.msra.mxu0 %v6700_v48  ;;  %7082 = vmatpush3.msra.mxu1 %v6700_v48 }
 0x269   : > { %6717 = vmatprep.subr.mxu0 %v9939_v37  ;;  %7071 = vmatprep.subr.mxu1 %v9939_v37 }
 0x26a   : > { %6718 = vmatpush3.msra.mxu0 %v3754_v25  ;;  %6672 = vmatprep.mubr.msk.f32.mxu1 %vm931_vm1, %v8758_v21  ;;  %v3650_v21 = vld [vmem:[#allocation13 + $0x8] sm:$0xff] }
 0x26b   : > { %7083 = vmatpush3.msra.mxu1 %v3754_v25  ;;  %6719 = vmatprep.subr.mxu0 %v9939_v37 }
 0x26c   : > { %6673 = vmatmul.mubr.msk.f32.gmra.mxu1 %vm931_vm1, %v8768_v9  ;;  %7072 = vmatprep.subr.mxu1 %v9939_v37 }
 0x26d   : > { %6720 = vmatpush3.msra.mxu0 %v6697_v56  ;;  %7084 = vmatpush3.msra.mxu1 %v6697_v56 }
 0x26e   : > { %6721 = vmatprep.subr.mxu0 %v9939_v37  ;;  %7073 = vmatprep.subr.mxu1 %v9939_v37 }
 0x26f   : > { %6722 = vmatpush3.msra.mxu0 %v3744_v51  ;;  %6675 = vmatprep.mubr.msk.f32.mxu1 %vm931_vm1, %v8770_v36  ;;  %v7325_v36 = vld [vmem:[#allocation6 + $0x10] sm:$0xff] }
 0x270   : > { %7085 = vmatpush3.msra.mxu1 %v3744_v51  ;;  %6723 = vmatprep.subr.mxu0 %v9939_v37 }
 0x271   : > { %6676 = vmatmul.mubr.msk.f32.gmra.mxu1 %vm931_vm1, %v8782_v44  ;;  %7074 = vmatprep.subr.mxu1 %v9939_v37  ;;  %v3653_v44 = vld [vmem:[#allocation13 + $0x20] sm:$0xff] }
 0x272   : > { %6724 = vmatpush3.msra.mxu0 %v8968_v32  ;;  %7086 = vmatpush3.msra.mxu1 %v8968_v32  ;;  %v7334_v32 = vld [vmem:[%s8013_s10 + $0x30] sm:$0xff] }
 0x273   : > { %6725 = vmatprep.subr.mxu0 %v9939_v37  ;;  %7075 = vmatprep.subr.mxu1 %v9939_v37 }
 0x274   : > { %6726 = vmatpush3.msra.mxu0 %v8972_v61  ;;  %6678 = vmatprep.mubr.msk.f32.mxu1 %vm931_vm1, %v8785_v26 }
 0x275   : > { %7087 = vmatpush3.msra.mxu1 %v8972_v61  ;;  %6727 = vmatprep.subr.mxu0 %v9939_v37  ;;  %v9040_v59 = vpop.f32.mrf.mxu1 }
 0x276   : > { %6679 = vmatmul.mubr.msk.f32.gmra.mxu1 %vm931_vm1, %v8794_v35  ;;  %7076 = vmatprep.subr.mxu1 %v9939_v37  ;;  %v3651_v35 = vld [vmem:[#allocation13 + $0x10] sm:$0xff]  ;;  %v1094_v52 = vmul.f32 0.125, %v9040_v59 }
 0x277   : > { %6728 = vmatpush3.msra.mxu0 %v8960_v39  ;;  %7088 = vmatpush3.msra.mxu1 %v8960_v39  ;;  %v9047_v34 = vpop.f32.mrf.mxu1  ;;  %v7333_v39 = vld [vmem:[%s8013_s10 + $0x28] sm:$0xff] }
 0x278   : > { %6729 = vmatprep.subr.mxu0 %v9939_v37  ;;  %7077 = vmatprep.subr.mxu1 %v9939_v37  ;;  %v1093_v58 = vmul.f32 0.125, %v9047_v34  ;;  %v1420_v48 = vand.u32 2147483647, %v1094_v52  ;;  %v7336_v34 = vld [vmem:[%s8013_s10 + $0x40] sm:$0xff] }
 0x279   : > { %6730 = vmatpush3.msra.mxu0 %v8964_v14  ;;  %7089 = vmatpush3.msra.mxu1 %v8964_v14  ;;  %v9053_v46 = vpop.f32.mrf.mxu1 }
 0x27a   : > { %6732 = vmatmul.mubr.msk.f32.vlgmr.msra.gmra.mxu0 %vm931_vm1, %v3649_v7  ;;  %6740 = vmatprep.mubr.msk.f32.mxu1 %vm7733_vm3, %v9939_v37  ;;  %v1096_v25 = vmul.f32 0.125, %v9053_v46  ;;  %v1419_v33 = vand.u32 2147483647, %v1093_v58 }
 0x27b   : > { %6758 = vmatprep.subr.mxu0 %v7324_v60  ;;  %6741 = vmatmul.mubr.msk.f32.vlgmr.msra.gmra.mxu1 %vm931_vm1, %v3652_v38  ;;  %v9059_v9 = vpop.f32.mrf.mxu1 }
 0x27c   : > { %6759 = vmatpush3.msra.mxu0 %v7324_v60  ;;  %6835 = vmatprep.subr.mxu1 %v7324_v60  ;;  %v1095_v1 = vmul.f32 0.125, %v9059_v9 }
 0x27d   : > { %6734 = vmatprep.mubr.msk.f32.mxu0 %vm7733_vm3, %v9939_v37  ;;  %6760 = vmatprep.subr.mxu0 %v7325_v36  ;;  %v9063_v26 = vpop.f32.mrf.mxu1 }
 0x27e   : > { %6836 = vmatpush3.msra.mxu1 %v7324_v60  ;;  %6735 = vmatmul.mubr.msk.f32.gmra.mxu0 %vm931_vm1, %v3650_v21  ;;  %v1098_v9 = vmul.f32 0.125, %v9063_v26 }
 0x27f   : > { %6743 = vmatprep.mubr.msk.f32.mxu1 %vm7733_vm3, %v9939_v37  ;;  %6761 = vmatpush3.msra.mxu0 %v7325_v36  ;;  %v9068_v41 = vpop.f32.mrf.mxu1 }
 0x280   : > { %6744 = vmatmul.mubr.msk.f32.gmra.mxu1 %vm931_vm1, %v3653_v44  ;;  %6762 = vmatprep.subr.mxu0 %v7326_v42  ;;  %v1097_v44 = vmul.f32 0.125, %v9068_v41 }
 0x281   : > { %6737 = vmatprep.mubr.msk.f32.mxu0 %vm7733_vm3, %v9939_v37  ;;  %6763 = vmatpush3.msra.mxu0 %v7326_v42  ;;  %v9073_v55 = vpop.f32.mrf.mxu1 }
 0x282   : > { %6738 = vmatmul.mubr.msk.f32.gmra.mxu0 %vm931_vm1, %v3651_v35  ;;  %6746 = vmatprep.mubr.msk.f32.mxu1 %vm7733_vm3, %v9939_v37  ;;  %v1100_v52 = vmul.f32 0.125, %v9073_v55 }
 0x283   : > { %6837 = vmatprep.subr.mxu1 %v7325_v36  ;;  %6764 = vmatprep.subr.mxu0 %v7327_v40  ;;  %v9078_v3 = vpop.f32.mrf.mxu1 }
 0x284   : > { %6747 = vmatmul.mubr.msk.f32.gmra.mxu1 %vm931_vm1, %v3654_v53  ;;  %6765 = vmatpush3.msra.mxu0 %v7327_v40  ;;  %v1099_v58 = vmul.f32 0.125, %v9078_v3 }
 0x285   : > { %6838 = vmatpush3.msra.mxu1 %v7325_v36  ;;  %6766 = vmatprep.mubr.msk.f32.mxu0 %vm677_vm0, %v7328_v49  ;;  %v9083_v54 = vpop.f32.mrf.mxu1  ;;  %v1422_v36 = vand.u32 2147483647, %v1096_v25  ;;  %v1426_v25 = vand.u32 2147483647, %v1100_v52 }
 0x286   : > { %6749 = vmatprep.mubr.msk.f32.mxu1 %vm7733_vm3, %v9939_v37  ;;  %6767 = vmatmul.mubr.msk.f32.vlgmr.msra.gmra.mxu0 %vm677_vm0, %v7329_v31  ;;  %v7338_v31 = vld [vmem:[%s8013_s10 + $0x50] sm:$0xff] }
 0x287   : > { %6839 = vmatprep.subr.mxu1 %v7326_v42  ;;  %6769 = vmatprep.mubr.msk.f32.mxu0 %vm677_vm0, %v7330_v57  ;;  %v9091_v47 = vpop.f32.mrf.mxu1 }
 0x288   : > { %6750 = vmatmul.mubr.msk.f32.gmra.mxu1 %vm931_vm1, %v3655_v62  ;;  %6784 = vmatprep.subr.mxu0 %v9939_v37 }
 0x289   : > { %6840 = vmatpush3.msra.mxu1 %v7326_v42  ;;  %6752 = vmatprep.mubr.msk.f32.mxu1 %vm7733_vm3, %v9939_v37  ;;  %v9097_v22 = vpop.f32.mrf.mxu1  ;;  %v1421_v42 = vand.u32 2147483647, %v1095_v1 }
 0x28a   : > { %6770 = vmatmul.mubr.msk.f32.gmra.mxu0 %vm677_vm0, %v7331_v43  ;;  %6841 = vmatprep.subr.mxu1 %v7327_v40  ;;  %v1424_v43 = vand.u32 2147483647, %v1098_v9 }
 0x28b   : > { %6772 = vmatprep.mubr.msk.f32.mxu0 %vm677_vm0, %v7332_v6  ;;  %6842 = vmatpush3.msra.mxu1 %v7327_v40  ;;  %v9103_v2 = vpop.f32.mrf.mxu1  ;;  %v7337_v40 = vld [vmem:[%s8013_s10 + $0x48] sm:$0xff]  ;;  %v1423_v6 = vand.u32 2147483647, %v1097_v44 }
 0x28c   : > { %6753 = vmatmul.mubr.msk.f32.gmra.mxu1 %vm931_vm1, %v3656_v27  ;;  %6861 = vmatprep.subr.mxu1 %v9939_v37 }
 0x28d   : > { %6755 = vmatprep.mubr.msk.f32.mxu1 %vm7733_vm3, %v9939_v37  ;;  %v6257_v0 = vpop.f32.mrf.mxu1 }
 0x28e   : > { %6773 = vmatmul.mubr.msk.f32.gmra.mxu0 %vm677_vm0, %v7333_v39  ;;  %v1408_v14 = vmul.f32 0.125, %v6257_v0 }
 0x28f   : > { %6775 = vmatprep.mubr.msk.f32.mxu0 %vm677_vm0, %v7334_v32  ;;  %v1348_v61 = vpop.f32.mrf.mxu1 }
 0x290   : > { %6756 = vmatmul.mubr.msk.f32.gmra.mxu1 %vm931_vm1, %v3657_v45  ;;  %v1432_v56 = vand.u32 2147483647, %v1408_v14  ;;  %v1407_v51 = vmul.f32 0.125, %v1348_v61  ;;  %v7339_v14 = vld [vmem:[%s8013_s10 + $0x58] sm:$0xff]  ;;  %s623_s10 = scalar_lea.vmem %s10042_s8, %s5330_s6 }
 0x291   : > { %6843 = vmatprep.mubr.msk.f32.mxu1 %vm677_vm0, %v8341_v4  ;;  %v6260_v50 = vpop.f32.mrf.mxu1 }
 0x292   : > { %6776 = vmatmul.mubr.msk.f32.gmra.mxu0 %vm677_vm0, %v7335_v10  ;;  %v1431_v59 = vand.u32 2147483647, %v1407_v51  ;;  %v1410_v7 = vmul.f32 0.125, %v6260_v50  ;;  %v1444_v60 = vadd.f32 %v1432_v56, %v1420_v48  ;;  %v1102_v50 = vmul.f32 0.125, %v9083_v54 }
 0x293   : > { %6778 = vmatprep.mubr.msk.f32.mxu0 %vm677_vm0, %v7336_v34  ;;  %v1358_v38 = vpop.f32.mrf.mxu1 }
 0x294   : > { %6844 = vmatmul.mubr.msk.f32.vlgmr.msra.gmra.mxu1 %vm677_vm0, %v8347_v5  ;;  %v1443_v4 = vadd.f32 %v1431_v59, %v1419_v33  ;;  %v1434_v46 = vand.u32 2147483647, %v1410_v7  ;;  %v1409_v21 = vmul.f32 0.125, %v1358_v38  ;;  %v1456_v41 = vsel %vm677_vm0, %v1444_v60, 0.0 }
 0x295   : > { %6846 = vmatprep.mubr.msk.f32.mxu1 %vm677_vm0, %v8353_v8  ;;  %v6263_v35 = vpop.f32.mrf.mxu1  ;;  %v1101_v33 = vmul.f32 0.125, %v9091_v47  ;;  %v1425_v59 = vand.u32 2147483647, %v1099_v58 }
 0x296   : > { %v1455_v53 = vsel %vm677_vm0, %v1443_v4, 0.0  ;;  %6779 = vmatmul.mubr.msk.f32.gmra.mxu0 %vm677_vm0, %v7337_v40  ;;  %v1433_v5 = vand.u32 2147483647, %v1409_v21  ;;  %v1412_v49 = vmul.f32 0.125, %v6263_v35  ;;  %v1446_v62 = vadd.f32 %v1434_v46, %v1422_v36 }
 0x297   : > { %6781 = vmatprep.mubr.msk.f32.mxu0 %vm677_vm0, %v7338_v31  ;;  %v1368_v26 = vpop.f32.mrf.mxu1  ;;  %v1457_v45 = vadd.f32 %v1456_v41, %v1455_v53  ;;  %v1428_v36 = vand.u32 2147483647, %v1102_v50  ;;  %v1427_v9 = vand.u32 2147483647, %v1101_v33 }
 0x298   : > { %6847 = vmatmul.mubr.msk.f32.gmra.mxu1 %vm677_vm0, %v8359_v11  ;;  %v1445_v8 = vadd.f32 %v1433_v5, %v1421_v42  ;;  %v1436_v57 = vand.u32 2147483647, %v1412_v49  ;;  %v1411_v27 = vmul.f32 0.125, %v1368_v26  ;;  %v1460_v61 = vsel %vm677_vm0, %v1446_v62, 0.0 }
 0x299   : > { %6849 = vmatprep.mubr.msk.f32.mxu1 %vm677_vm0, %v8366_v12  ;;  %v6266_v0 = vpop.f32.mrf.mxu1  ;;  %v1103_v42 = vmul.f32 0.125, %v9103_v2 }
 0x29a   : > { %v1458_v39 = vsel %vm677_vm0, %v1445_v8, 0.0  ;;  %6782 = vmatmul.mubr.msk.f32.gmra.mxu0 %vm677_vm0, %v7339_v14  ;;  %v1435_v11 = vand.u32 2147483647, %v1411_v27  ;;  %v1414_v32 = vmul.f32 0.125, %v6266_v0  ;;  %v1448_v55 = vadd.f32 %v1436_v57, %v1424_v43 }
 0x29b   : > { %v1459_v56 = vadd.f32 %v1458_v39, %v1457_v45  ;;  %v1378_v51 = vpop.f32.mrf.mxu1  ;;  %6808 = vmatprep.mubr.msk.f32.mxu0 %vm7733_vm3, %v9939_v37  ;;  %v1429_v57 = vand.u32 2147483647, %v1103_v42 }
 0x29c   : > { %6850 = vmatmul.mubr.msk.f32.gmra.mxu1 %vm677_vm0, %v8374_v13  ;;  %v1447_v12 = vadd.f32 %v1435_v11, %v1423_v6  ;;  %v1438_v3 = vand.u32 2147483647, %v1414_v32  ;;  %v1413_v48 = vmul.f32 0.125, %v1378_v51  ;;  %v1464_v46 = vsel %vm677_vm0, %v1448_v55, 0.0 }
 0x29d   : > { %v1461_v1 = vadd.f32 %v1460_v61, %v1459_v56  ;;  %6852 = vmatprep.mubr.msk.f32.mxu1 %vm677_vm0, %v8381_v15  ;;  %v6269_v10 = vpop.f32.mrf.mxu1  ;;  %v1104_v15 = vmul.f32 0.125, %v9097_v22 }
 0x29e   : > { %v1462_v7 = vsel %vm677_vm0, %v1447_v12, 0.0  ;;  %v1437_v34 = vand.u32 2147483647, %v1413_v48  ;;  %v1416_v38 = vmul.f32 0.125, %v6269_v10  ;;  %v1450_v13 = vadd.f32 %v1438_v3, %v1426_v25 }
 0x29f   : > { %v1463_v60 = vadd.f32 %v1462_v7, %v1461_v1  ;;  %v1388_v4 = vpop.f32.mrf.mxu1  ;;  %v1430_v8 = vand.u32 2147483647, %v1104_v15 }
 0x2a0   : > { %6853 = vmatmul.mubr.msk.f32.gmra.mxu1 %vm677_vm0, %v8390_v16  ;;  %v1449_v54 = vadd.f32 %v1437_v34, %v1425_v59  ;;  %v1440_v47 = vand.u32 2147483647, %v1416_v38  ;;  %v1415_v21 = vmul.f32 0.125, %v1388_v4  ;;  %v1468_v16 = vsel %vm677_vm0, %v1450_v13, 0.0 }
 0x2a1   : > { %v1465_v44 = vadd.f32 %v1464_v46, %v1463_v60  ;;  %6855 = vmatprep.mubr.msk.f32.mxu1 %vm677_vm0, %v8397_v17  ;;  %v6272_v35 = vpop.f32.mrf.mxu1 }
 0x2a2   : > { %v1466_v53 = vsel %vm677_vm0, %v1449_v54, 0.0  ;;  %v1439_v40 = vand.u32 2147483647, %v1415_v21  ;;  %v1418_v5 = vmul.f32 0.125, %v6272_v35  ;;  %v1452_v31 = vadd.f32 %v1440_v47, %v1428_v36 }
 0x2a3   : > { %v1467_v49 = vadd.f32 %v1466_v53, %v1465_v44  ;;  %v1398_v62 = vpop.f32.mrf.mxu1 }
 0x2a4   : > { %6856 = vmatmul.mubr.msk.f32.gmra.mxu1 %vm677_vm0, %v8403_v18  ;;  %v1451_v22 = vadd.f32 %v1439_v40, %v1427_v9  ;;  %v1442_v26 = vand.u32 2147483647, %v1418_v5  ;;  %v1417_v41 = vmul.f32 0.125, %v1398_v62  ;;  %v1472_v39 = vsel %vm677_vm0, %v1452_v31, 0.0 }
 0x2a5   : > { %6858 = vmatprep.mubr.msk.f32.mxu1 %vm677_vm0, %v8409_v19  ;;  %v6325_v17 = vpop.f32.mrf.mxu1  ;;  %v1469_v2 = vadd.f32 %v1468_v16, %v1467_v49 }
 0x2a6   : > { %v1470_v27 = vsel %vm677_vm0, %v1451_v22, 0.0  ;;  %v1441_v43 = vand.u32 2147483647, %v1417_v41  ;;  %v1871_v6 = vmul.f32 %v6325_v17, %v6325_v17  ;;  %v1454_v58 = vadd.f32 %v1442_v26, %v1430_v8 }
 0x2a7   : > { %v1766_v52 = vpop.f32.mrf.mxu1  ;;  %v1471_v45 = vadd.f32 %v1470_v27, %v1469_v2 }
 0x2a8   : > { %6859 = vmatmul.mubr.msk.f32.gmra.mxu1 %vm677_vm0, %v8415_v20  ;;  %v1453_v18 = vadd.f32 %v1441_v43, %v1429_v57  ;;  %v1870_v0 = vmul.f32 %v1766_v52, %v1766_v52  ;;  %v1883_v19 = vsel %vm677_vm0, %v1871_v6, 0.0  ;;  %v1476_v12 = vsel %vm677_vm0, %v1454_v58, 0.0 }
 0x2a9   : > { %v6328_v14 = vpop.f32.mrf.mxu1  ;;  %v1473_v11 = vadd.f32 %v1472_v39, %v1471_v45  ;;  %6885 = vmatprep.mubr.msk.f32.mxu1 %vm7733_vm3, %v9939_v37 }
 0x2aa   : > { %v1882_v32 = vsel %vm677_vm0, %v1870_v0, 0.0  ;;  %v1474_v61 = vsel %vm677_vm0, %v1453_v18, 0.0  ;;  %v1873_v55 = vmul.f32 %v6328_v14, %v6328_v14 }
 0x2ab   : > { %v1776_v56 = vpop.f32.mrf.mxu1  ;;  %v1475_v51 = vadd.f32 %v1474_v61, %v1473_v11  ;;  %v1884_v3 = vadd.f32 %v1883_v19, %v1882_v32 }
 0x2ac   : > { %v1872_v20 = vmul.f32 %v1776_v56, %v1776_v56  ;;  %v1887_v10 = vsel %vm677_vm0, %v1873_v55, 0.0 }
 0x2ad   : > { %v6331_v48 = vpop.f32.mrf.mxu1  ;;  %v1477_v25 = vadd.f32 %v1476_v12, %v1475_v51 }
 0x2ae   : > { %v1885_v50 = vsel %vm677_vm0, %v1872_v20, 0.0  ;;  %v1875_v59 = vmul.f32 %v6331_v48, %v6331_v48 }
 0x2af   : > { %v1886_v33 = vadd.f32 %v1885_v50, %v1884_v3  ;;  %v1786_v1 = vpop.f32.mrf.mxu1  ;;  %1478 = vadd.xlane.f32.xlu1 %v1477_v25 }
 0x2b0   : > { %v1874_v7 = vmul.f32 %v1786_v1, %v1786_v1  ;;  %v1891_v46 = vsel %vm677_vm0, %v1875_v59, 0.0 }
 0x2b1   : > { %v1888_v34 = vadd.f32 %v1887_v10, %v1886_v33  ;;  %v6334_v38 = vpop.f32.mrf.mxu1 }
 0x2b2   : > { %v1889_v60 = vsel %vm677_vm0, %v1874_v7, 0.0  ;;  %v1877_v54 = vmul.f32 %v6334_v38, %v6334_v38 }
 0x2b3   : > { %v1890_v13 = vadd.f32 %v1889_v60, %v1888_v34  ;;  %v1796_v4 = vpop.f32.mrf.mxu1  ;;  %1861 = vadd.xlane.f32.xlu1 %v8662_v63 }
 0x2b4   : > { %v1876_v47 = vmul.f32 %v1796_v4, %v1796_v4  ;;  %v1895_v35 = vsel %vm677_vm0, %v1877_v54, 0.0 }
 0x2b5   : > { %v1892_v21 = vadd.f32 %v1891_v46, %v1890_v13  ;;  %v6337_v36 = vpop.f32.mrf.mxu1 }
 0x2b6   : > { %v1893_v9 = vsel %vm677_vm0, %v1876_v47, 0.0  ;;  %v1879_v42 = vmul.f32 %v6337_v36, %v6337_v36 }
 0x2b7   : > { %v1894_v15 = vadd.f32 %v1893_v9, %v1892_v21  ;;  %v1806_v44 = vpop.f32.mrf.mxu1 }
 0x2b8   : > { %v1878_v53 = vmul.f32 %v1806_v44, %v1806_v44  ;;  %v702_v16 = vpop.xlane.xlu0 %701  ;;  %v1899_v31 = vsel %vm677_vm0, %v1879_v42, 0.0 }
 0x2b9   : > { %v1896_v40 = vadd.f32 %v1895_v35, %v1894_v15  ;;  %v6340_v5 = vpop.f32.mrf.mxu1  ;;  %v703_v57 = vrot.slane %v702_v16, 4 }
 0x2ba   : > { %v1897_v49 = vsel %vm677_vm0, %v1878_v53, 0.0  ;;  %v1881_v22 = vmul.f32 %v6340_v5, %v6340_v5 }
 0x2bb   : > { %v1898_v63 = vadd.f32 %v1897_v49, %v1896_v40  ;;  %v1816_v62 = vpop.f32.mrf.mxu1  ;;  %v704_v45 = vadd.f32 %v703_v57, %v702_v16 }
 0x2bc   : > { %v1880_v26 = vmul.f32 %v1816_v62, %v1816_v62  ;;  %v746_v17 = vpop.xlane.xlu0 %745  ;;  %v1904_v52 = vsel %vm1903_vm4, %v1881_v22, 0.0 }
 0x2bd   : > { %v9187_v41 = vpop.f32.mrf.mxu1  ;;  %v1900_v8 = vadd.f32 %v1899_v31, %v1898_v63  ;;  %v747_v27 = vrot.slane %v746_v17, 4  ;;  %v705_v39 = vrot.slane %v704_v45, 2 }
 0x2be   : > { %v1901_v2 = vsel %vm677_vm0, %v1880_v26, 0.0 }
 0x2bf   : > { %v9190_v43 = vpop.f32.mrf.mxu1  ;;  %v1902_v6 = vadd.f32 %v1901_v2, %v1900_v8  ;;  %v748_v18 = vadd.f32 %v747_v27, %v746_v17  ;;  %v706_v19 = vadd.f32 %v705_v39, %v704_v45  ;;  %v2540_v2 = vmul.f32 %v9187_v41, %v9187_v41 }
 0x2c0   : > { %v2539_v27 = vmul.f32 %v9190_v43, %v9190_v43 }
 0x2c1   : > { %v6396_v0 = vpop.f32.mrf.mxu1  ;;  %v1905_v58 = vadd.f32 %v1904_v52, %v1902_v6  ;;  %v749_v14 = vrot.slane %v748_v18, 2  ;;  %v707_v56 = vrot.slane %v706_v19, 1 }
 0x2c2   : > { %v2542_v45 = vmul.f32 %v6396_v0, %v6396_v0 }
 0x2c3   : > { %v9192_v11 = vpop.f32.mrf.mxu1  ;;  %1906 = vadd.xlane.f32.xlu0 %v1905_v58  ;;  %v750_v32 = vadd.f32 %v749_v14, %v748_v18  ;;  %v708_v20 = vadd.f32 %v707_v56, %v706_v19 }
 0x2c4   : > { %v2541_v58 = vmul.f32 %v9192_v11, %v9192_v11 }
 0x2c5   : > { %v6399_v61 = vpop.f32.mrf.mxu1  ;;  %v751_v51 = vrot.slane %v750_v32, 1  ;;  %7093 = vpush %v708_v20 }
 0x2c6   : > { %v9256_v18 = vmul.f32 %v6399_v61, %v6399_v61 }
 0x2c7   : > { %v9194_v55 = vpop.f32.mrf.mxu1  ;;  %v752_v12 = vadd.f32 %v751_v51, %v750_v32 }
 0x2c8   : > { %v9268_v32 = vmul.f32 %v9194_v55, %v9194_v55 }
 0x2c9   : > { %v6402_v3 = vpop.f32.mrf.mxu1  ;;  %7095 = vpush %v752_v12 }
 0x2ca   : > { %v9263_v14 = vmul.f32 %v6402_v3, %v6402_v3 }
 0x2cb   : > { %v9196_v48 = vpop.f32.mrf.mxu1 }
 0x2cd   : > { %v6405_v25 = vpop.f32.mrf.mxu1 }
 0x2ce   : > { %v9270_v51 = vmul.f32 %v6405_v25, %v6405_v25 }
 0x2cf   : > { %v9198_v50 = vpop.f32.mrf.mxu1 }
 0x2d0   : > { %v9278_v12 = vmul.f32 %v9198_v50, %v9198_v50 }
 0x2d1   : > { %v6408_v33 = vpop.f32.mrf.mxu1 }
 0x2d3   : > { %v9200_v1 = vpop.f32.mrf.mxu1 }
 0x2d4   : > { %10004 = vst [vmem:[#allocation51_spill] sm:$0xff] %v9200_v1  ;;  %v9291_v28 = vmul.f32 %v9200_v1, %v9200_v1 }
 0x2d5   : > { %v6461_v10 = vpop.f32.mrf.mxu1 }
 0x2d6   : > { %v9203_v59 = vmul.f32 %v6461_v10, %v9187_v41  ;;  %v2552_v57 = vmul.f32 %v6461_v10, %v6461_v10 }
 0x2d7   : > { %v2480_v7 = vpop.f32.mrf.mxu1 }
 0x2d8   : > { %v2551_v52 = vmul.f32 %v2480_v7, %v2480_v7  ;;  %v9261_v39 = vmul.f32 %v2480_v7, %v9190_v43  ;;  %v3470_v19 = vmul.f32 2.0, %v9203_v59  ;;  %v3530_v43 = vadd.f32 %v2552_v57, %v2540_v2 }
 0x2d9   : > { %v6464_v34 = vpop.f32.mrf.mxu1 }
 0x2da   : > { %v9205_v38 = vmul.f32 %v6464_v34, %v6396_v0  ;;  %v2554_v41 = vmul.f32 %v6464_v34, %v6464_v34  ;;  %v9274_v0 = vmul.f32 %v9196_v48, %v9196_v48  ;;  %v9283_v34 = vmul.f32 %v6408_v33, %v6408_v33 }
 0x2db   : > { %v2490_v60 = vpop.f32.mrf.mxu1  ;;  %v3469_v30 = vmul.f32 2.0, %v9261_v39  ;;  %v9286_v29 = vadd.f32 0.0001, %v3470_v19 }
 0x2dc   : > { %10005 = vst [vmem:[#allocation52_spill] sm:$0xff] %v9205_v38  ;;  %v2553_v20 = vmul.f32 %v2490_v60, %v2490_v60  ;;  %v9281_v7 = vmul.f32 %v2490_v60, %v9192_v11 }
 0x2dd   : > { %v6467_v13 = vpop.f32.mrf.mxu1  ;;  %10008 = vst [vmem:[#allocation55_spill] sm:$0xff] %v9286_v29 }
 0x2de   : > { %v9207_v4 = vmul.f32 %v6467_v13, %v6399_v61  ;;  %v2556_v23 = vmul.f32 %v6467_v13, %v6467_v13  ;;  %v3531_v60 = vadd.f32 %v2553_v20, %v2541_v58 }
 0x2df   : > { %v9209_v46 = vpop.f32.mrf.mxu1 }
 0x2e0   : > { %v3474_v19 = vmul.f32 2.0, %v9207_v4  ;;  %v2555_v29 = vmul.f32 %v9209_v46, %v9209_v46 }
 0x2e1   : > { %v9211_v54 = vpop.f32.mrf.mxu1 }
 0x2e2   : > { %v9214_v47 = vmul.f32 %v9211_v54, %v6402_v3  ;;  %v3529_v3 = vadd.f32 %v2551_v52, %v2539_v27 }
 0x2e3   : > { %v9216_v21 = vpop.f32.mrf.mxu1 }
 0x2e5   : > { %v9218_v36 = vpop.f32.mrf.mxu1 }
 0x2e6   : > { %v9221_v9 = vmul.f32 %v9218_v36, %v6405_v25 }
 0x2e7   : > { %v9223_v15 = vpop.f32.mrf.mxu1 }
 0x2e8   : > { %10006 = vst [vmem:[#allocation53_spill] sm:$0xff] %v9221_v9  ;;  %v3541_v9 = vadd.f32 0.0001, %v3529_v3 }
 0x2e9   : > { %v9225_v44 = vpop.f32.mrf.mxu1 }
 0x2ea   : > { %v9228_v35 = vmul.f32 %v9225_v44, %v6408_v33  ;;  %v3542_v33 = vadd.f32 0.0001, %v3530_v43  ;;  %v3534_v43 = vadd.f32 %v2556_v23, %v9256_v18 }
 0x2eb   : > { %v9230_v42 = vpop.f32.mrf.mxu1 }
 0x2ec   : > { %10007 = vst [vmem:[#allocation54_spill] sm:$0xff] %v9228_v35 }
 0x2ed   : > { %v6529_v53 = vpop.f32.mrf.mxu1 }
 0x2ee   : > { %v2862_v25 = vsub.f32 %v6529_v53, %v2540_v2 }
 0x2ef   : > { %v2802_v40 = vpop.f32.mrf.mxu1 }
 0x2f0   : > { %v2861_v35 = vsub.f32 %v2802_v40, %v2539_v27 }
 0x2f1   : > { %v9232_v5 = vpop.f32.mrf.mxu1 }
 0x2f2   : > { %v2864_v13 = vsub.f32 %v9232_v5, %v2542_v45 }
 0x2f3   : > { %v9234_v16 = vpop.f32.mrf.mxu1 }
 0x2f5   : > { %v9236_v49 = vpop.f32.mrf.mxu1 }
 0x2f6   : > { %s7094_s30 = spop %7093 }
 0x2f7   : > { %v9238_v63 = vpop.f32.mrf.mxu1 }
 0x2f9   : > { %v9240_v62 = vpop.f32.mrf.mxu1 }
 0x2fa   : > { %s7096_s20 = spop %7095 }
 0x2fb   : > { %v9242_v31 = vpop.f32.mrf.mxu1 }
 0x2fd   : > { %v9244_v22 = vpop.f32.mrf.mxu1 }
 0x2ff   : > { %v9246_v26 = vpop.f32.mrf.mxu1 }
 0x301   : > { %v9248_v8 = vpop.f32.mrf.mxu1 }
 0x303   : > { %v9250_v17 = vpop.f32.mrf.mxu1 }
 0x305   : > { %v6597_v6 = vpop.f32.mrf.mxu1 }
 0x306   : > { %v3160_v61 = vsub.f32 %v6597_v6, %v2552_v57  ;;  %v3472_v6 = vmul.f32 2.0, %v9205_v38  ;;  %v3532_v57 = vadd.f32 %v2554_v41, %v2542_v45  ;;  %v9297_v38 = vadd.f32 0.0001, %v3469_v30 }
 0x307   : > { %v3100_v56 = vpop.f32.mrf.mxu1  ;;  %v2863_v30 = vsub.f32 %v9234_v16, %v2541_v58  ;;  %v2560_v16 = vmul.f32 %v9218_v36, %v9218_v36  ;;  %v2866_v58 = vsub.f32 %v9236_v49, %v9256_v18 }
 0x308   : > { %v3159_v37 = vsub.f32 %v3100_v56, %v2551_v52  ;;  %v3554_v11 = vadd.f32 %v3160_v61, %v2862_v25  ;;  %v3471_v52 = vmul.f32 2.0, %v9281_v7  ;;  %v9299_v1 = vadd.f32 0.0001, %v3472_v6 }
 0x309   : > { %v6600_v10 = vpop.f32.mrf.mxu1  ;;  %v3544_v61 = vadd.f32 0.0001, %v3532_v57  ;;  %v2557_v57 = vmul.f32 %v9216_v21, %v9216_v21 }
 0x30a   : > { %v3162_v53 = vsub.f32 %v6600_v10, %v2554_v41  ;;  %v3553_v56 = vadd.f32 %v3159_v37, %v2861_v35  ;;  %v9304_v41 = vmul.f32 %v9209_v46, %v9194_v55  ;;  %v3566_v3 = vadd.f32 0.0009, %v3554_v11 }
 0x30b   : > { %v3110_v24 = vpop.f32.mrf.mxu1  ;;  %v3543_v37 = vadd.f32 0.0001, %v3531_v60  ;;  %v2558_v35 = vmul.f32 %v9211_v54, %v9211_v54  ;;  %v9310_v6 = vadd.f32 0.0001, %v3471_v52  ;;  %v3533_v55 = vadd.f32 %v2555_v29, %v9268_v32 }
 0x30c   : > { %v3161_v40 = vsub.f32 %v3110_v24, %v2553_v20  ;;  %v3556_v10 = vadd.f32 %v3162_v53, %v2864_v13  ;;  %v9312_v24 = vadd.f32 0.0001, %v3474_v19  ;;  %v3565_v5 = vadd.f32 0.0009, %v3553_v56 }
 0x30d   : > { %v6603_v2 = vpop.f32.mrf.mxu1  ;;  %v3476_v46 = vmul.f32 2.0, %v9214_v47  ;;  %v3473_v54 = vmul.f32 2.0, %v9304_v41  ;;  %v3578_v60 = vmul.f32 %v3566_v3, %v3542_v33  ;;  %v9326_v56 = vmul.f32 %v9216_v21, %v9196_v48 }
 0x30e   : > { %10009 = vst [vmem:[#allocation56_spill] sm:$0xff] %v9312_v24  ;;  %v3164_v45 = vsub.f32 %v6603_v2, %v2556_v23  ;;  %v3555_v20 = vadd.f32 %v3161_v40, %v2863_v30  ;;  %v3546_v23 = vadd.f32 0.0001, %v3534_v43  ;;  %v3536_v2 = vadd.f32 %v2558_v35, %v9263_v14 }
 0x30f   : > { %v3120_v27 = vpop.f32.mrf.mxu1  ;;  %v3568_v52 = vadd.f32 0.0009, %v3556_v10  ;;  %v2865_v13 = vsub.f32 %v9238_v63, %v9268_v32  ;;  %v3577_v40 = vmul.f32 %v3565_v5, %v3541_v9  ;;  %v3545_v36 = vadd.f32 0.0001, %v3533_v55 }
 0x310   : > { %v3163_v53 = vsub.f32 %v3120_v27, %v2555_v29  ;;  %v3558_v30 = vadd.f32 %v3164_v45, %v2866_v58  ;;  %v9330_v24 = vadd.f32 0.0001, %v3476_v46  ;;  %v3567_v49 = vadd.f32 0.0009, %v3555_v20 }
 0x311   : > { %v6606_v25 = vpop.f32.mrf.mxu1  ;;  %v9332_v33 = vadd.f32 0.0001, %v3473_v54  ;;  %v3538_v27 = vadd.f32 %v2560_v16, %v9270_v51  ;;  %7264 = vrcp.f32 %v3578_v60  ;;  %v3535_v48 = vadd.f32 %v2557_v57, %v9274_v0 }
 0x312   : > { %v3166_v18 = vsub.f32 %v6606_v25, %v2558_v35  ;;  %v3557_v43 = vadd.f32 %v3163_v53, %v2865_v13  ;;  %v2559_v21 = vmul.f32 %v9223_v15, %v9223_v15  ;;  %v2868_v9 = vsub.f32 %v9240_v62, %v9263_v14 }
 0x313   : > { %v3130_v11 = vpop.f32.mrf.mxu1  ;;  %v3580_v63 = vmul.f32 %v3568_v52, %v3544_v61  ;;  %v3548_v10 = vadd.f32 0.0001, %v3536_v2  ;;  %7266 = vrcp.f32 %v3577_v40  ;;  %v3570_v35 = vadd.f32 0.0009, %v3558_v30 }
 0x314   : > { %v3165_v32 = vsub.f32 %v3130_v11, %v2557_v57  ;;  %v9341_v25 = vmul.f32 2.0, %v9326_v56  ;;  %v2562_v5 = vmul.f32 %v9225_v44, %v9225_v44  ;;  %v2867_v45 = vsub.f32 %v9242_v31, %v9274_v0 }
 0x315   : > { %v6609_v19 = vpop.f32.mrf.mxu1  ;;  %v3579_v55 = vmul.f32 %v3567_v49, %v3543_v37  ;;  %v3560_v46 = vadd.f32 %v3166_v18, %v2868_v9  ;;  %v9349_v62 = vmul.f32 %v9223_v15, %v9198_v50  ;;  %v3569_v14 = vadd.f32 0.0009, %v3557_v43  ;;  %v10011_v43 = vld [vmem:[#allocation55_spill] sm:$0xff] }
 0x316   : > { %v3547_v61 = vadd.f32 0.0001, %v3535_v48  ;;  %v3168_v57 = vsub.f32 %v6609_v19, %v2560_v16  ;;  %v3550_v11 = vadd.f32 0.0001, %v3538_v27  ;;  %v3537_v54 = vadd.f32 %v2559_v21, %v9278_v12 }
 0x317   : > { %v3140_v29 = vpop.f32.mrf.mxu1  ;;  %7268 = vrcp.f32 %v3580_v63  ;;  %v3559_v58 = vadd.f32 %v3165_v32, %v2867_v45  ;;  %v2870_v44 = vsub.f32 %v9244_v22, %v9270_v51  ;;  %v3582_v31 = vmul.f32 %v3570_v35, %v3546_v23 }
 0x318   : > { %v3167_v0 = vsub.f32 %v3140_v29, %v2559_v21  ;;  %v3540_v53 = vadd.f32 %v2562_v5, %v9283_v34  ;;  %v2869_v50 = vsub.f32 %v9246_v26, %v9278_v12  ;;  %7270 = vrcp.f32 %v3579_v55  ;;  %v10010_v29 = vld [vmem:[#allocation52_spill] sm:$0xff] }
 0x319   : > { %v6612_v3 = vpop.f32.mrf.mxu1  ;;  %v3572_v15 = vadd.f32 0.0009, %v3560_v46  ;;  %v3581_v2 = vmul.f32 %v3569_v14, %v3545_v36  ;;  %v3562_v52 = vadd.f32 %v3168_v57, %v2870_v44  ;;  %v2561_v22 = vmul.f32 %v9230_v42, %v9230_v42 }
 0x31a   : > { %v2872_v51 = vsub.f32 %v9248_v8, %v9283_v34  ;;  %v3170_v23 = vsub.f32 %v6612_v3, %v2562_v5  ;;  %7272 = vrcp.f32 %v3582_v31  ;;  %v3561_v40 = vadd.f32 %v3167_v0, %v2869_v50 }
 0x31b   : > { %v3150_v20 = vpop.f32.mrf.mxu1  ;;  %v2871_v36 = vsub.f32 %v9250_v17, %v9291_v28  ;;  %v3584_v49 = vmul.f32 %v3572_v15, %v3548_v10  ;;  %7274 = vrcp.f32 %v3581_v2  ;;  %v3574_v27 = vadd.f32 0.0009, %v3562_v52 }
 0x31c   : > { %v3169_v18 = vsub.f32 %v3150_v20, %v2561_v22  ;;  %v3564_v63 = vadd.f32 %v3170_v23, %v2872_v51  ;;  %v3549_v35 = vadd.f32 0.0001, %v3537_v54  ;;  %v3573_v5 = vadd.f32 0.0009, %v3561_v40  ;;  %v10012_v23 = vld [vmem:[#allocation56_spill] sm:$0xff] }
 0x31d   : > { %v6665_v60 = vpop.f32.mrf.mxu1  ;;  %7276 = vrcp.f32 %v3584_v49  ;;  %v3539_v57 = vadd.f32 %v2561_v22, %v9291_v28 }
 0x31e   : > { %v3458_v37 = vsub.f32 %v6665_v60, %v9203_v59  ;;  %v3571_v59 = vadd.f32 0.0009, %v3559_v58  ;;  %v7265_v34 = vpop.eup %7264  ;;  %v3563_v55 = vadd.f32 %v3169_v18, %v2871_v36  ;;  %v3586_v58 = vmul.f32 %v3574_v27, %v3550_v11 }
 0x31f   : > { %v3398_v16 = vpop.f32.mrf.mxu1  ;;  %v3576_v44 = vadd.f32 0.0009, %v3564_v63 }
 0x320   : > { %v3494_v19 = vmul.f32 2.0, %v3458_v37  ;;  %v3457_v13 = vsub.f32 %v3398_v16, %v9261_v39  ;;  %v3583_v9 = vmul.f32 %v3571_v59, %v3547_v61  ;;  %v7267_v10 = vpop.eup %7266  ;;  %v3585_v37 = vmul.f32 %v3573_v5, %v3549_v35 }
 0x321   : > { %v3575_v16 = vadd.f32 0.0009, %v3563_v55 }
 0x322   : > { %v3506_v30 = vadd.f32 0.0009, %v3494_v19  ;;  %v3493_v26 = vmul.f32 2.0, %v3457_v13  ;;  %v6668_v12 = vpop.f32.mrf.mxu1  ;;  %7278 = vrcp.f32 %v3583_v9 }
 0x323   : > { %v3460_v39 = vsub.f32 %v6668_v12, %v10010_v29  ;;  %7280 = vrcp.f32 %v3586_v58  ;;  %v10013_v29 = vld [vmem:[#allocation53_spill] sm:$0xff] }
 0x324   : > { %v3518_v48 = vmul.f32 %v3506_v30, %v10011_v43  ;;  %v3505_v21 = vadd.f32 0.0009, %v3493_v26  ;;  %v3408_v8 = vpop.f32.mrf.mxu1  ;;  %v7269_v0 = vpop.eup %7268  ;;  %7282 = vrcp.f32 %v3585_v37 }
 0x325   : > { %v3496_v32 = vmul.f32 2.0, %v3460_v39  ;;  %v3459_v3 = vsub.f32 %v3408_v8, %v9281_v7  ;;  %v7271_v52 = vpop.eup %7270  ;;  %v3478_v39 = vmul.f32 2.0, %v10013_v29 }
 0x326   : > { %v3592_v45 = vmul.f32 %v7265_v34, %v3518_v48  ;;  %v3517_v17 = vmul.f32 %v3505_v21, %v9297_v38  ;;  %v3552_v38 = vadd.f32 0.0001, %v3540_v53 }
 0x327   : > { %v3508_v46 = vadd.f32 0.0009, %v3496_v32  ;;  %v3495_v20 = vmul.f32 2.0, %v3459_v3  ;;  %v6671_v14 = vpop.f32.mrf.mxu1  ;;  %v7273_v12 = vpop.eup %7272  ;;  %v3487_v3 = vadd.f32 0.0001, %v9341_v25 }
 0x328   : > { %v3590_v60 = vmul.f32 %v7267_v10, %v3517_v17  ;;  %v3462_v61 = vsub.f32 %v6671_v14, %v9207_v4  ;;  %v3551_v4 = vadd.f32 0.0001, %v3539_v57  ;;  %v3588_v22 = vmul.f32 %v3576_v44, %v3552_v38  ;;  %v10014_v10 = vld [vmem:[#allocation51_spill] sm:$0xff]  ;;  %v10015_v44 = vld [vmem:[#allocation54_spill] sm:$0xff] }
 0x329   : > { %v3520_v7 = vmul.f32 %v3508_v46, %v9299_v1  ;;  %v3507_v54 = vadd.f32 0.0009, %v3495_v20  ;;  %v3418_v31 = vpop.f32.mrf.mxu1  ;;  %v3614_v51 = vsel %vm677_vm0, %v3592_v45, 0.0  ;;  %v2573_v55 = vmul.f32 %v9230_v42, %v10014_v10 }
 0x32a   : > { %v3498_v50 = vmul.f32 2.0, %v3462_v61  ;;  %v3461_v15 = vsub.f32 %v3418_v31, %v9304_v41  ;;  %v3613_v2 = vsel %vm677_vm0, %v3590_v60, 0.0  ;;  %7284 = vrcp.f32 %v3588_v22 }
 0x32b   : > { %v3596_v28 = vmul.f32 %v7269_v0, %v3520_v7  ;;  %v3519_v11 = vmul.f32 %v3507_v54, %v9310_v6  ;;  %v3615_v41 = vadd.f32 %v3614_v51, %v3613_v2  ;;  %v3587_v6 = vmul.f32 %v3575_v16, %v3551_v4 }
 0x32c   : > { %v3510_v19 = vadd.f32 0.0009, %v3498_v50  ;;  %v3497_v13 = vmul.f32 2.0, %v3461_v15  ;;  %v6674_v1 = vpop.f32.mrf.mxu1  ;;  %v3490_v57 = vadd.f32 0.0001, %v3478_v39  ;;  %v3480_v7 = vmul.f32 2.0, %v10015_v44 }
 0x32d   : > { %v3594_v53 = vmul.f32 %v7271_v52, %v3519_v11  ;;  %v3464_v59 = vsub.f32 %v6674_v1, %v9214_v47  ;;  %v7275_v47 = vpop.eup %7274  ;;  %v3618_v21 = vsel %vm677_vm0, %v3596_v28, 0.0  ;;  %7286 = vrcp.f32 %v3587_v6 }
 0x32e   : > { %v3522_v40 = vmul.f32 %v3510_v19, %v10012_v23  ;;  %v3509_v30 = vadd.f32 0.0009, %v3497_v13  ;;  %v3428_v26 = vpop.f32.mrf.mxu1  ;;  %v7277_v17 = vpop.eup %7276  ;;  %v3479_v15 = vmul.f32 2.0, %v2573_v55  ;;  %v3492_v1 = vadd.f32 0.0001, %v3480_v7 }
 0x32f   : > { %v3616_v36 = vsel %vm677_vm0, %v3594_v53, 0.0  ;;  %v3500_v49 = vmul.f32 2.0, %v3464_v59  ;;  %v3463_v18 = vsub.f32 %v3428_v26, %v9326_v56  ;;  %v3477_v56 = vmul.f32 2.0, %v9349_v62  ;;  %v7279_v61 = vpop.eup %7278 }
 0x330   : > { %v3617_v27 = vadd.f32 %v3616_v36, %v3615_v41  ;;  %v3600_v43 = vmul.f32 %v7273_v12, %v3522_v40  ;;  %v3521_v48 = vmul.f32 %v3509_v30, %v9332_v33  ;;  %v7281_v11 = vpop.eup %7280  ;;  %v3491_v6 = vadd.f32 0.0001, %v3479_v15 }
 0x331   : > { %v3512_v8 = vadd.f32 0.0009, %v3500_v49  ;;  %v3499_v34 = vmul.f32 2.0, %v3463_v18  ;;  %v6677_v9 = vpop.f32.mrf.mxu1  ;;  %v3489_v50 = vadd.f32 0.0001, %v3477_v56  ;;  %v7283_v41 = vpop.eup %7282 }
 0x332   : > { %v3598_v63 = vmul.f32 %v7275_v47, %v3521_v48  ;;  %v3619_v32 = vadd.f32 %v3618_v21, %v3617_v27  ;;  %v3466_v35 = vsub.f32 %v6677_v9, %v10013_v29 }
 0x333   : > { %v3524_v5 = vmul.f32 %v3512_v8, %v9330_v24  ;;  %v3511_v45 = vadd.f32 0.0009, %v3499_v34  ;;  %v3438_v33 = vpop.f32.mrf.mxu1  ;;  %v3622_v24 = vsel %vm677_vm0, %v3600_v43, 0.0 }
 0x334   : > { %v3620_v46 = vsel %vm677_vm0, %v3598_v63, 0.0  ;;  %v3502_v20 = vmul.f32 2.0, %v3466_v35  ;;  %v3465_v14 = vsub.f32 %v3438_v33, %v9349_v62 }
 0x335   : > { %v3621_v25 = vadd.f32 %v3620_v46, %v3619_v32  ;;  %v3604_v58 = vmul.f32 %v7277_v17, %v3524_v5  ;;  %v3523_v60 = vmul.f32 %v3511_v45, %v3487_v3 }
 0x336   : > { %v3514_v54 = vadd.f32 0.0009, %v3502_v20  ;;  %v3501_v31 = vmul.f32 2.0, %v3465_v14  ;;  %v6680_v0 = vpop.f32.mrf.mxu1 }
 0x337   : > { %v3602_v38 = vmul.f32 %v7279_v61, %v3523_v60  ;;  %v3623_v37 = vadd.f32 %v3622_v24, %v3621_v25  ;;  %v3468_v42 = vsub.f32 %v6680_v0, %v10015_v44  ;;  %v3626_v23 = vsel %vm677_vm0, %v3604_v58, 0.0  ;;  %v7285_v21 = vpop.eup %7284 }
 0x338   : > { %v3526_v16 = vmul.f32 %v3514_v54, %v3490_v57  ;;  %v3513_v62 = vadd.f32 0.0009, %v3501_v31  ;;  %v3448_v2 = vpop.f32.mrf.mxu1  ;;  %v1479_v28 = vpop.xlane.xlu1 %1478 }
 0x339   : > { %v3624_v52 = vsel %vm677_vm0, %v3602_v38, 0.0  ;;  %v3504_v4 = vmul.f32 2.0, %v3468_v42  ;;  %v3467_v19 = vsub.f32 %v3448_v2, %v2573_v55  ;;  %v1480_v13 = vrot.slane %v1479_v28, 4 }
 0x33a   : > { %v3625_v22 = vadd.f32 %v3624_v52, %v3623_v37  ;;  %v3608_v51 = vmul.f32 %v7281_v11, %v3526_v16  ;;  %v3525_v53 = vmul.f32 %v3513_v62, %v3489_v50  ;;  %v9395_v59 = vpop.f32.mrf.mxu0  ;;  %v7287_v3 = vpop.eup %7286 }
 0x33b   : > { %v3516_v40 = vadd.f32 0.0009, %v3504_v4  ;;  %v3503_v30 = vmul.f32 2.0, %v3467_v19  ;;  %v9398_v26 = vpop.f32.mrf.mxu1  ;;  %v1481_v12 = vadd.f32 %v1480_v13, %v1479_v28 }
 0x33c   : > { %v3606_v36 = vmul.f32 %v7283_v41, %v3525_v53  ;;  %v6733_v49 = vpop.f32.mrf.mxu0  ;;  %v1862_v18 = vpop.xlane.xlu1 %1861  ;;  %v3627_v29 = vadd.f32 %v3626_v23, %v3625_v22  ;;  %v3630_v10 = vsel %vm677_vm0, %v3608_v51, 0.0 }
 0x33d   : > { %v3528_v39 = vmul.f32 %v3516_v40, %v3492_v1  ;;  %v3515_v27 = vadd.f32 0.0009, %v3503_v30  ;;  %v6742_v43 = vpop.f32.mrf.mxu1  ;;  %v1482_v48 = vrot.slane %v1481_v12, 2  ;;  %v1863_v47 = vrot.slane %v1862_v18, 4 }
 0x33e   : > { %v3628_v8 = vsel %vm677_vm0, %v3606_v36, 0.0  ;;  %v9401_v34 = vpop.f32.mrf.mxu0  ;;  %v10016_v43 = vmov 0.0  }
 0x33f   : > { %v3527_v9 = vmul.f32 %v3515_v27, %v3491_v6  ;;  %v1864_v63 = vadd.f32 %v1863_v47, %v1862_v18  ;;  %v3612_v32 = vmul.f32 %v7285_v21, %v3528_v39  ;;  %v3629_v5 = vadd.f32 %v3628_v8, %v3627_v29 }
 0x340   : > { %v9403_v35 = vpop.f32.mrf.mxu1  ;;  %v6736_v56 = vpop.f32.mrf.mxu0  ;;  %v1483_v45 = vadd.f32 %v1482_v48, %v1481_v12 }
 0x341   : > { %v3610_v33 = vmul.f32 %v7287_v3, %v3527_v9  ;;  %v1865_v17 = vrot.slane %v1864_v63, 2  ;;  %v3631_v20 = vadd.f32 %v3630_v10, %v3629_v5  ;;  %v3634_v7 = vsel %vm677_vm0, %v3612_v32, 0.0  ;;  %v9448_v3 = vld [vmem:[#allocation13] sm:$0xff]  ;;  %v7341_v56 = vld [vmem:[#allocation6 + $0x18] sm:$0xff]  ;;  %v9456_v5 = vld [vmem:[#allocation13 + $0x8] sm:$0xff] }
 0x342   : > { %v6745_v55 = vpop.f32.mrf.mxu1  ;;  %v9406_v46 = vpop.f32.mrf.mxu0  ;;  %v1484_v14 = vrot.slane %v1483_v45, 1  ;;  %v9475_v10 = vld [vmem:[#allocation13 + $0x18] sm:$0xff] }
 0x343   : > { %v3632_v57 = vsel %vm677_vm0, %v3610_v33, 0.0  ;;  %v1866_v25 = vadd.f32 %v1865_v17, %v1864_v63  ;;  %v9465_v33 = vld [vmem:[#allocation13 + $0x10] sm:$0xff]  ;;  %v7345_v17 = vld [vmem:[#allocation6 + $0x8] sm:$0xff]  ;;  %v9486_v55 = vld [vmem:[#allocation13 + $0x20] sm:$0xff] }
 0x344   : > { %v9409_v58 = vpop.f32.mrf.mxu1  ;;  %v6739_v60 = vpop.f32.mrf.mxu0  ;;  %v3633_v61 = vadd.f32 %v3632_v57, %v3631_v20  ;;  %v1485_v44 = vadd.f32 %v1484_v14, %v1483_v45  ;;  %v7343_v45 = vld [vmem:[#allocation6 + $0x10] sm:$0xff]  ;;  %v7348_v20 = vld [vmem:[#allocation6] sm:$0xff]  ;;  %v9496_v14 = vld [vmem:[#allocation13 + $0x28] sm:$0xff] }
 0x345   : > { %v1867_v24 = vrot.slane %v1866_v25, 1  ;;  %v9506_v57 = vld [vmem:[#allocation13 + $0x30] sm:$0xff]  ;;  %v9528_v60 = vld [vmem:[#allocation13 + $0x40] sm:$0x3] }
 0x346   : > { %v6748_v54 = vpop.f32.mrf.mxu1  ;;  %v9412_v31 = vpop.f32.mrf.mxu0  ;;  %v3635_v0 = vadd.f32 %v3634_v7, %v3633_v61  ;;  %7097 = vpush %v1485_v44  ;;  %v10017_v61 = vld [vmem:[#allocation27_spill] sm:$0xff]  ;;  %v10018_v44 = vld [vmem:[#allocation28_spill] sm:$0xff]  ;;  %v10019_v7 = vld [vmem:[#allocation29_spill] sm:$0xff] }
 0x347   : > { %v1868_v38 = vadd.f32 %v1867_v24, %v1866_v25  ;;  %v9518_v25 = vld [vmem:[#allocation13 + $0x38] sm:$0xff]  ;;  %v10020_v24 = vld [vmem:[#allocation30_spill] sm:$0xff]  ;;  %v10021_v54 = vld [vmem:[#allocation31_spill] sm:$0xff] }
 0x348   : > { %v9414_v37 = vpop.f32.mrf.mxu1  ;;  %v9416_v42 = vpop.f32.mrf.mxu0  ;;  %3636 = vadd.xlane.f32.xlu1 %v3635_v0  ;;  %v10023_v0 = vld [vmem:[#allocation33_spill] sm:$0xff] }
 0x349   : > { %7099 = vpush %v1868_v38  ;;  %v10024_v38 = vld [vmem:[#allocation39_spill] sm:$0xff] }
 0x34a   : > { %v6751_v50 = vpop.f32.mrf.mxu1  ;;  %v6771_v15 = vpop.f32.mrf.mxu0 }
 0x34b   : > { %v10026_v50 = vld [vmem:[#allocation35_spill] sm:$0xff] }
 0x34c   : > { %v9418_v16 = vpop.f32.mrf.mxu1  ;;  %v3996_v62 = vpop.f32.mrf.mxu0 }
 0x34d   : > { %v1907_v2 = vpop.xlane.xlu0 %1906 }
 0x34e   : > { %v6754_v28 = vpop.f32.mrf.mxu1  ;;  %v6774_v11 = vpop.f32.mrf.mxu0  ;;  %v1908_v52 = vrot.slane %v1907_v2, 4 }
 0x34f   : > { %v10030_v28 = vld [vmem:[#allocation37_spill] sm:$0xff] }
 0x350   : > { %v9420_v4 = vpop.f32.mrf.mxu1  ;;  %v4006_v19 = vpop.f32.mrf.mxu0  ;;  %v1909_v13 = vadd.f32 %v1908_v52, %v1907_v2  ;;  %v10029_v2 = vld [vmem:[#allocation36_spill] sm:$0xff]  ;;  %v10032_v52 = vld [vmem:[#allocation43_spill] sm:$0xff] }
 0x352   : > { %v6757_v1 = vpop.f32.mrf.mxu1  ;;  %v6777_v22 = vpop.f32.mrf.mxu0  ;;  %v1910_v51 = vrot.slane %v1909_v13, 2 }
 0x353   : > { %v10035_v1 = vld [vmem:[#allocation45_spill] sm:$0xff] }
 0x354   : > { %v9422_v53 = vpop.f32.mrf.mxu1  ;;  %v4016_v41 = vpop.f32.mrf.mxu0  ;;  %v1911_v23 = vadd.f32 %v1910_v51, %v1909_v13  ;;  %v10034_v13 = vld [vmem:[#allocation44_spill] sm:$0xff]  ;;  %v10037_v51 = vld [vmem:[#allocation47_spill] sm:$0xff] }
 0x356   : > { %v9424_v40 = vpop.f32.mrf.mxu1  ;;  %v6780_v30 = vpop.f32.mrf.mxu0  ;;  %v1912_v12 = vrot.slane %v1911_v23, 1 }
 0x358   : > { %v9426_v6 = vpop.f32.mrf.mxu1  ;;  %v4026_v36 = vpop.f32.mrf.mxu0  ;;  %v1913_v49 = vadd.f32 %v1912_v12, %v1911_v23  ;;  %v10040_v23 = vld [vmem:[#allocation50_spill] sm:$0xff] }
 0x35a   : > { %v9428_v18 = vpop.f32.mrf.mxu1  ;;  %v6783_v29 = vpop.f32.mrf.mxu0  ;;  %7101 = vpush %v1913_v49 }
 0x35b   : > { %6785 = vmatpush3.msra.mxu0 %v6783_v29 }
 0x35c   : > { %v6851_v39 = vpop.f32.mrf.mxu1  ;;  %v4036_v27 = vpop.f32.mrf.mxu0  ;;  %6786 = vmatprep.subr.mxu0 %v10016_v43 }
 0x35d   : > { %6787 = vmatpush3.msra.mxu0 %v4036_v27 }
 0x35e   : > { %v4268_v48 = vpop.f32.mrf.mxu1  ;;  %6788 = vmatprep.subr.mxu0 %v10016_v43 }
 0x35f   : > { %6789 = vmatpush3.msra.mxu0 %v6780_v30 }
 0x360   : > { %v6854_v47 = vpop.f32.mrf.mxu1  ;;  %6790 = vmatprep.subr.mxu0 %v10016_v43 }
 0x361   : > { %6791 = vmatpush3.msra.mxu0 %v4026_v36 }
 0x362   : > { %v4278_v21 = vpop.f32.mrf.mxu1  ;;  %6792 = vmatprep.subr.mxu0 %v10016_v43 }
 0x363   : > { %6793 = vmatpush3.msra.mxu0 %v6777_v22  ;;  %v10036_v22 = vld [vmem:[#allocation46_spill] sm:$0xff] }
 0x364   : > { %v6857_v8 = vpop.f32.mrf.mxu1  ;;  %6794 = vmatprep.subr.mxu0 %v10016_v43 }
 0x365   : > { %6795 = vmatpush3.msra.mxu0 %v4016_v41  ;;  %v10039_v41 = vld [vmem:[#allocation49_spill] sm:$0xff] }
 0x366   : > { %v4288_v9 = vpop.f32.mrf.mxu1  ;;  %6796 = vmatprep.subr.mxu0 %v10016_v43 }
 0x367   : > { %6797 = vmatpush3.msra.mxu0 %v6774_v11  ;;  %v10031_v11 = vld [vmem:[#allocation42_spill] sm:$0xff] }
 0x368   : > { %v6860_v63 = vpop.f32.mrf.mxu1  ;;  %6798 = vmatprep.subr.mxu0 %v10016_v43 }
 0x369   : > { %6862 = vmatpush3.msra.mxu1 %v6860_v63  ;;  %6799 = vmatpush3.msra.mxu0 %v4006_v19  ;;  %v10033_v19 = vld [vmem:[#allocation38_spill] sm:$0xff] }
 0x36a   : > { %v4298_v32 = vpop.f32.mrf.mxu1  ;;  %6863 = vmatprep.subr.mxu1 %v10016_v43  ;;  %6800 = vmatprep.subr.mxu0 %v10016_v43 }
 0x36b   : > { %6864 = vmatpush3.msra.mxu1 %v4298_v32  ;;  %6801 = vmatpush3.msra.mxu0 %v6771_v15  ;;  %v10027_v15 = vld [vmem:[#allocation40_spill] sm:$0xff] }
 0x36c   : > { %6865 = vmatprep.subr.mxu1 %v10016_v43  ;;  %6802 = vmatprep.subr.mxu0 %v10016_v43 }
 0x36d   : > { %6866 = vmatpush3.msra.mxu1 %v6857_v8  ;;  %6803 = vmatpush3.msra.mxu0 %v3996_v62  ;;  %v10028_v62 = vld [vmem:[#allocation41_spill] sm:$0xff] }
 0x36e   : > { %6867 = vmatprep.subr.mxu1 %v10016_v43  ;;  %6804 = vmatprep.subr.mxu0 %v10016_v43 }
 0x36f   : > { %6868 = vmatpush3.msra.mxu1 %v4288_v9  ;;  %6805 = vmatpush3.msra.mxu0 %v9412_v31  ;;  %v10022_v31 = vld [vmem:[#allocation32_spill] sm:$0xff] }
 0x370   : > { %6869 = vmatprep.subr.mxu1 %v10016_v43  ;;  %6806 = vmatprep.subr.mxu0 %v10016_v43 }
 0x371   : > { %6870 = vmatpush3.msra.mxu1 %v6854_v47  ;;  %6807 = vmatpush3.msra.mxu0 %v9416_v42  ;;  %v10025_v42 = vld [vmem:[#allocation34_spill] sm:$0xff] }
 0x372   : > { %6871 = vmatprep.subr.mxu1 %v10016_v43  ;;  %6809 = vmatmul.mubr.msk.f32.vlgmr.msra.gmra.mxu0 %vm931_vm1, %v9448_v3 }
 0x373   : > { %6872 = vmatpush3.msra.mxu1 %v4278_v21  ;;  %6912 = vmatprep.subr.mxu0 %v7341_v56 }
 0x374   : > { %6873 = vmatprep.subr.mxu1 %v10016_v43  ;;  %6913 = vmatpush3.msra.mxu0 %v7341_v56 }
 0x375   : > { %6874 = vmatpush3.msra.mxu1 %v6851_v39  ;;  %6811 = vmatprep.mubr.msk.f32.mxu0 %vm7733_vm3, %v10016_v43 }
 0x376   : > { %6875 = vmatprep.subr.mxu1 %v10016_v43  ;;  %6812 = vmatmul.mubr.msk.f32.gmra.mxu0 %vm931_vm1, %v9456_v5 }
 0x377   : > { %6876 = vmatpush3.msra.mxu1 %v4268_v48  ;;  %6814 = vmatprep.mubr.msk.f32.mxu0 %vm7733_vm3, %v10016_v43  ;;  %s7098_s24 = spop %7097 }
 0x378   : > { %6877 = vmatprep.subr.mxu1 %v10016_v43  ;;  %6914 = vmatprep.subr.mxu0 %v7343_v45 }
 0x379   : > { %6878 = vmatpush3.msra.mxu1 %v9426_v6  ;;  %6915 = vmatpush3.msra.mxu0 %v7343_v45 }
 0x37a   : > { %6879 = vmatprep.subr.mxu1 %v10016_v43  ;;  %6815 = vmatmul.mubr.msk.f32.gmra.mxu0 %vm931_vm1, %v9465_v33  ;;  %s7100_s12 = spop %7099 }
 0x37b   : > { %6880 = vmatpush3.msra.mxu1 %v9428_v18  ;;  %6817 = vmatprep.mubr.msk.f32.mxu0 %vm7733_vm3, %v10016_v43 }
 0x37c   : > { %6881 = vmatprep.subr.mxu1 %v10016_v43  ;;  %6916 = vmatprep.subr.mxu0 %v7345_v17 }
 0x37d   : > { %6882 = vmatpush3.msra.mxu1 %v9422_v53  ;;  %6917 = vmatpush3.msra.mxu0 %v7345_v17  ;;  %v10038_v53 = vld [vmem:[#allocation48_spill] sm:$0xff] }
 0x37e   : > { %6883 = vmatprep.subr.mxu1 %v10016_v43  ;;  %6818 = vmatmul.mubr.msk.f32.gmra.mxu0 %vm931_vm1, %v9475_v10 }
 0x37f   : > { %6884 = vmatpush3.msra.mxu1 %v9424_v40  ;;  %6820 = vmatprep.mubr.msk.f32.mxu0 %vm7733_vm3, %v10016_v43 }
 0x380   : > { %6886 = vmatmul.mubr.msk.f32.vlgmr.msra.gmra.mxu1 %vm931_vm1, %v9448_v3  ;;  %6989 = vmatprep.subr.mxu1 %v7341_v56 }
 0x381   : > { %6990 = vmatpush3.msra.mxu1 %v7341_v56  ;;  %6888 = vmatprep.mubr.msk.f32.mxu1 %vm7733_vm3, %v10016_v43 }
 0x382   : > { %6821 = vmatmul.mubr.msk.f32.gmra.mxu0 %vm931_vm1, %v9486_v55  ;;  %6991 = vmatprep.subr.mxu1 %v7343_v45 }
 0x383   : > { %6823 = vmatprep.mubr.msk.f32.mxu0 %vm7733_vm3, %v10016_v43  ;;  %6992 = vmatpush3.msra.mxu1 %v7343_v45 }
 0x384   : > { %6889 = vmatmul.mubr.msk.f32.gmra.mxu1 %vm931_vm1, %v9456_v5  ;;  %6918 = vmatprep.subr.mxu0 %v7348_v20 }
 0x385   : > { %6891 = vmatprep.mubr.msk.f32.mxu1 %vm7733_vm3, %v10016_v43  ;;  %6919 = vmatpush3.msra.mxu0 %v7348_v20 }
 0x386   : > { %6824 = vmatmul.mubr.msk.f32.gmra.mxu0 %vm931_vm1, %v9496_v14  ;;  %6993 = vmatprep.subr.mxu1 %v7345_v17 }
 0x387   : > { %6826 = vmatprep.mubr.msk.f32.mxu0 %vm7733_vm3, %v10016_v43  ;;  %6994 = vmatpush3.msra.mxu1 %v7345_v17 }
 0x388   : > { %6892 = vmatmul.mubr.msk.f32.gmra.mxu1 %vm931_vm1, %v9465_v33  ;;  %6995 = vmatprep.subr.mxu1 %v7348_v20 }
 0x389   : > { %6894 = vmatprep.mubr.msk.f32.mxu1 %vm7733_vm3, %v10016_v43  ;;  %6996 = vmatpush3.msra.mxu1 %v7348_v20 }
 0x38a   : > { %6827 = vmatmul.mubr.msk.f32.gmra.mxu0 %vm931_vm1, %v9506_v57  ;;  %6938 = vmatprep.subr.mxu0 %v10016_v43 }
 0x38b   : > { %6829 = vmatprep.mubr.msk.f32.mxu0 %vm7733_vm3, %v10016_v43  ;;  %7015 = vmatprep.subr.mxu1 %v10016_v43  ;;  %s7102_s13 = spop %7101 }
 0x38c   : > { %6895 = vmatmul.mubr.msk.f32.gmra.mxu1 %vm931_vm1, %v9475_v10 }
 0x38d   : > { %6897 = vmatprep.mubr.msk.f32.mxu1 %vm7733_vm3, %v10016_v43 }
 0x38e   : > { %6830 = vmatmul.mubr.msk.f32.gmra.mxu0 %vm931_vm1, %v9518_v25 }
 0x38f   : > { %6832 = vmatprep.mubr.msk.f32.mxu0 %vm7733_vm3, %v10016_v43 }
 0x390   : > { %6898 = vmatmul.mubr.msk.f32.gmra.mxu1 %vm931_vm1, %v9486_v55 }
 0x391   : > { %6900 = vmatprep.mubr.msk.f32.mxu1 %vm7733_vm3, %v10016_v43 }
 0x392   : > { %6833 = vmatmul.mubr.msk.f32.gmra.mxu0 %vm931_vm1, %v9528_v60 }
 0x393   : > { %6920 = vmatprep.mubr.msk.f32.mxu0 %vm677_vm0, %v10017_v61 }
 0x394   : > { %6901 = vmatmul.mubr.msk.f32.gmra.mxu1 %vm931_vm1, %v9496_v14 }
 0x395   : > { %6903 = vmatprep.mubr.msk.f32.mxu1 %vm7733_vm3, %v10016_v43 }
 0x396   : > { %6921 = vmatmul.mubr.msk.f32.vlgmr.msra.gmra.mxu0 %vm677_vm0, %v10018_v44 }
 0x397   : > { %6923 = vmatprep.mubr.msk.f32.mxu0 %vm677_vm0, %v10019_v7 }
 0x398   : > { %6904 = vmatmul.mubr.msk.f32.gmra.mxu1 %vm931_vm1, %v9506_v57 }
 0x399   : > { %6906 = vmatprep.mubr.msk.f32.mxu1 %vm7733_vm3, %v10016_v43 }
 0x39a   : > { %6924 = vmatmul.mubr.msk.f32.gmra.mxu0 %vm677_vm0, %v10020_v24 }
 0x39b   : > { %6926 = vmatprep.mubr.msk.f32.mxu0 %vm677_vm0, %v10021_v54 }
 0x39c   : > { %6907 = vmatmul.mubr.msk.f32.gmra.mxu1 %vm931_vm1, %v9518_v25 }
 0x39d   : > { %6909 = vmatprep.mubr.msk.f32.mxu1 %vm7733_vm3, %v10016_v43 }
 0x39e   : > { %6927 = vmatmul.mubr.msk.f32.gmra.mxu0 %vm677_vm0, %v10022_v31 }
 0x39f   : > { %6929 = vmatprep.mubr.msk.f32.mxu0 %vm677_vm0, %v10023_v0 }
 0x3a0   : > { %6910 = vmatmul.mubr.msk.f32.gmra.mxu1 %vm931_vm1, %v9528_v60 }
 0x3a1   : > { %6997 = vmatprep.mubr.msk.f32.mxu1 %vm677_vm0, %v10024_v38 }
 0x3a2   : > { %6930 = vmatmul.mubr.msk.f32.gmra.mxu0 %vm677_vm0, %v10025_v42 }
 0x3a3   : > { %6932 = vmatprep.mubr.msk.f32.mxu0 %vm677_vm0, %v10026_v50 }
 0x3a4   : > { %6998 = vmatmul.mubr.msk.f32.vlgmr.msra.gmra.mxu1 %vm677_vm0, %v10027_v15 }
 0x3a5   : > { %7000 = vmatprep.mubr.msk.f32.mxu1 %vm677_vm0, %v10028_v62 }
 0x3a6   : > { %6933 = vmatmul.mubr.msk.f32.gmra.mxu0 %vm677_vm0, %v10029_v2 }
 0x3a7   : > { %6935 = vmatprep.mubr.msk.f32.mxu0 %vm677_vm0, %v10030_v28 }
 0x3a8   : > { %7001 = vmatmul.mubr.msk.f32.gmra.mxu1 %vm677_vm0, %v10031_v11 }
 0x3a9   : > { %7003 = vmatprep.mubr.msk.f32.mxu1 %vm677_vm0, %v10032_v52 }
 0x3aa   : > { %6936 = vmatmul.mubr.msk.f32.gmra.mxu0 %vm677_vm0, %v10033_v19 }
 0x3ab   : > { %6962 = vmatprep.mubr.msk.f32.mxu0 %vm7733_vm3, %v10016_v43 }
 0x3ac   : > { %7004 = vmatmul.mubr.msk.f32.gmra.mxu1 %vm677_vm0, %v10034_v13 }
 0x3ad   : > { %7006 = vmatprep.mubr.msk.f32.mxu1 %vm677_vm0, %v10035_v1 }
 0x3b0   : > { %7007 = vmatmul.mubr.msk.f32.gmra.mxu1 %vm677_vm0, %v10036_v22 }
 0x3b1   : > { %7009 = vmatprep.mubr.msk.f32.mxu1 %vm677_vm0, %v10037_v51 }
 0x3b4   : > { %7010 = vmatmul.mubr.msk.f32.gmra.mxu1 %vm677_vm0, %v10038_v53 }
 0x3b5   : > { %7012 = vmatprep.mubr.msk.f32.mxu1 %vm677_vm0, %v10039_v41 }
 0x3b8   : > { %7013 = vmatmul.mubr.msk.f32.gmra.mxu1 %vm677_vm0, %v10040_v23 }
 0x3b9   : > { %7039 = vmatprep.mubr.msk.f32.mxu1 %vm7733_vm3, %v10016_v43 }
 0x3d1   : > { %v3637_v40 = vpop.xlane.xlu1 %3636 }
 0x3d2   : > { %v3638_v30 = vrot.slane %v3637_v40, 4 }
 0x3d4   : > { %v3639_v12 = vadd.f32 %v3638_v30, %v3637_v40 }
 0x3d6   : > { %v3640_v6 = vrot.slane %v3639_v12, 2 }
 0x3d8   : > { %v3641_v36 = vadd.f32 %v3640_v6, %v3639_v12 }
 0x3da   : > { %v3642_v49 = vrot.slane %v3641_v36, 1 }
 0x3dc   : > { %v3643_v18 = vadd.f32 %v3642_v49, %v3641_v36 }
 0x3de   : > { %7103 = vpush %v3643_v18 }
 0x40f   : > { %s7104_s0 = spop %7103 }
 0x432   : > { %v9598_v29 = vpop.f32.mrf.mxu0 }
 0x434   : > { %v6810_v39 = vpop.f32.mrf.mxu0 }
 0x436   : > { %v9600_v27 = vpop.f32.mrf.mxu0 }
 0x438   : > { %v6813_v48 = vpop.f32.mrf.mxu0 }
 0x43a   : > { %v9602_v47 = vpop.f32.mrf.mxu0 }
 0x43c   : > { %v6816_v21 = vpop.f32.mrf.mxu0 }
 0x43e   : > { %v9604_v8 = vpop.f32.mrf.mxu0 }
 0x440   : > { %v9606_v9 = vpop.f32.mrf.mxu1  ;;  %v6819_v63 = vpop.f32.mrf.mxu0 }
 0x442   : > { %v6887_v32 = vpop.f32.mrf.mxu1  ;;  %v9608_v56 = vpop.f32.mrf.mxu0 }
 0x444   : > { %v9610_v45 = vpop.f32.mrf.mxu1  ;;  %v6822_v17 = vpop.f32.mrf.mxu0 }
 0x446   : > { %v6890_v20 = vpop.f32.mrf.mxu1  ;;  %v9612_v61 = vpop.f32.mrf.mxu0 }
 0x448   : > { %v9614_v44 = vpop.f32.mrf.mxu1  ;;  %v6825_v7 = vpop.f32.mrf.mxu0 }
 0x44a   : > { %v6893_v24 = vpop.f32.mrf.mxu1  ;;  %v9616_v54 = vpop.f32.mrf.mxu0 }
 0x44c   : > { %v9618_v31 = vpop.f32.mrf.mxu1  ;;  %v6828_v0 = vpop.f32.mrf.mxu0 }
 0x44e   : > { %v6896_v38 = vpop.f32.mrf.mxu1  ;;  %v9620_v42 = vpop.f32.mrf.mxu0 }
 0x450   : > { %v9622_v50 = vpop.f32.mrf.mxu1  ;;  %v6831_v15 = vpop.f32.mrf.mxu0 }
 0x452   : > { %v6899_v62 = vpop.f32.mrf.mxu1  ;;  %v9624_v2 = vpop.f32.mrf.mxu0 }
 0x454   : > { %v9626_v28 = vpop.f32.mrf.mxu1  ;;  %v6834_v11 = vpop.f32.mrf.mxu0 }
 0x456   : > { %v6902_v52 = vpop.f32.mrf.mxu1  ;;  %v6922_v19 = vpop.f32.mrf.mxu0 }
 0x458   : > { %v9628_v13 = vpop.f32.mrf.mxu1  ;;  %v4492_v1 = vpop.f32.mrf.mxu0 }
 0x45a   : > { %v6905_v22 = vpop.f32.mrf.mxu1  ;;  %v6925_v51 = vpop.f32.mrf.mxu0 }
 0x45b   : > { %v4167_v22 = vmul.f32 %v9604_v8, %v9604_v8 }
 0x45c   : > { %v9630_v53 = vpop.f32.mrf.mxu1  ;;  %v4502_v41 = vpop.f32.mrf.mxu0 }
 0x45e   : > { %v6908_v23 = vpop.f32.mrf.mxu1  ;;  %v6928_v40 = vpop.f32.mrf.mxu0 }
 0x460   : > { %v9632_v30 = vpop.f32.mrf.mxu1  ;;  %v4512_v12 = vpop.f32.mrf.mxu0 }
 0x462   : > { %v6911_v6 = vpop.f32.mrf.mxu1  ;;  %v6931_v36 = vpop.f32.mrf.mxu0 }
 0x464   : > { %v9634_v49 = vpop.f32.mrf.mxu1  ;;  %v4522_v18 = vpop.f32.mrf.mxu0 }
 0x466   : > { %v9636_v39 = vpop.f32.mrf.mxu1  ;;  %v6934_v48 = vpop.f32.mrf.mxu0 }
 0x468   : > { %v7002_v21 = vpop.f32.mrf.mxu1  ;;  %v4532_v63 = vpop.f32.mrf.mxu0 }
 0x46a   : > { %v4746_v32 = vpop.f32.mrf.mxu1  ;;  %v6937_v17 = vpop.f32.mrf.mxu0 }
 0x46b   : > { %6939 = vmatpush3.msra.mxu0 %v6937_v17  ;;  %v9772_v17 = vmul.f32 %v9418_v16, %v9418_v16 }
 0x46c   : > { %v7005_v20 = vpop.f32.mrf.mxu1  ;;  %v4542_v7 = vpop.f32.mrf.mxu0  ;;  %6940 = vmatprep.subr.mxu0 %v10016_v43 }
 0x46d   : > { %6941 = vmatpush3.msra.mxu0 %v4542_v7 }
 0x46e   : > { %v4756_v24 = vpop.f32.mrf.mxu1  ;;  %6942 = vmatprep.subr.mxu0 %v10016_v43 }
 0x46f   : > { %6943 = vmatpush3.msra.mxu0 %v6934_v48  ;;  %v9756_v48 = vmul.f32 %v9409_v58, %v9409_v58 }
 0x470   : > { %v7008_v0 = vpop.f32.mrf.mxu1  ;;  %6944 = vmatprep.subr.mxu0 %v10016_v43 }
 0x471   : > { %6945 = vmatpush3.msra.mxu0 %v4532_v63 }
 0x472   : > { %v4766_v38 = vpop.f32.mrf.mxu1  ;;  %6946 = vmatprep.subr.mxu0 %v10016_v43 }
 0x473   : > { %6947 = vmatpush3.msra.mxu0 %v6931_v36 }
 0x474   : > { %v7011_v15 = vpop.f32.mrf.mxu1  ;;  %6948 = vmatprep.subr.mxu0 %v10016_v43 }
 0x475   : > { %6949 = vmatpush3.msra.mxu0 %v4522_v18 }
 0x476   : > { %v4776_v62 = vpop.f32.mrf.mxu1  ;;  %6950 = vmatprep.subr.mxu0 %v10016_v43 }
 0x477   : > { %6951 = vmatpush3.msra.mxu0 %v6928_v40  ;;  %v4158_v40 = vmul.f32 %v9398_v26, %v9398_v26 }
 0x478   : > { %v7014_v11 = vpop.f32.mrf.mxu1  ;;  %6952 = vmatprep.subr.mxu0 %v10016_v43 }
 0x479   : > { %7016 = vmatpush3.msra.mxu1 %v7014_v11  ;;  %6953 = vmatpush3.msra.mxu0 %v4512_v12  ;;  %v9749_v12 = vmul.f32 %v9403_v35, %v9403_v35  ;;  %v4989_v63 = vadd.f32 %v4167_v22, %v4158_v40  ;;  %v9792_v11 = vmul.f32 %v9420_v4, %v9420_v4 }
 0x47a   : > { %v4786_v52 = vpop.f32.mrf.mxu1  ;;  %7017 = vmatprep.subr.mxu1 %v10016_v43  ;;  %6954 = vmatprep.subr.mxu0 %v10016_v43 }
 0x47b   : > { %7018 = vmatpush3.msra.mxu1 %v4786_v52  ;;  %6955 = vmatpush3.msra.mxu0 %v6925_v51 }
 0x47c   : > { %7019 = vmatprep.subr.mxu1 %v10016_v43  ;;  %6956 = vmatprep.subr.mxu0 %v10016_v43 }
 0x47d   : > { %7020 = vmatpush3.msra.mxu1 %v7011_v15  ;;  %6957 = vmatpush3.msra.mxu0 %v4502_v41  ;;  %v4157_v41 = vmul.f32 %v9406_v46, %v9406_v46  ;;  %v4998_v15 = vadd.f32 0.0001, %v4989_v63 }
 0x47e   : > { %7021 = vmatprep.subr.mxu1 %v10016_v43  ;;  %6958 = vmatprep.subr.mxu0 %v10016_v43 }
 0x47f   : > { %7022 = vmatpush3.msra.mxu1 %v4776_v62  ;;  %6959 = vmatpush3.msra.mxu0 %v6922_v19  ;;  %v9784_v62 = vmul.f32 %v9608_v56, %v9403_v35  ;;  %v9799_v35 = vmul.f32 %v9616_v54, %v9616_v54 }
 0x480   : > { %7023 = vmatprep.subr.mxu1 %v10016_v43  ;;  %6960 = vmatprep.subr.mxu0 %v10016_v43 }
 0x481   : > { %7024 = vmatpush3.msra.mxu1 %v7008_v0  ;;  %6961 = vmatpush3.msra.mxu0 %v4492_v1  ;;  %v4419_v0 = vsub.f32 %v9614_v44, %v4157_v41 }
 0x482   : > { %7025 = vmatprep.subr.mxu1 %v10016_v43  ;;  %6963 = vmatmul.mubr.msk.f32.vlgmr.msra.gmra.mxu0 %vm931_vm1, %v9448_v3 }
 0x483   : > { %7026 = vmatpush3.msra.mxu1 %v4766_v38  ;;  %6965 = vmatprep.mubr.msk.f32.mxu0 %vm7733_vm3, %v10016_v43 }
 0x484   : > { %7027 = vmatprep.subr.mxu1 %v10016_v43 }
 0x485   : > { %7028 = vmatpush3.msra.mxu1 %v7005_v20 }
 0x486   : > { %7029 = vmatprep.subr.mxu1 %v10016_v43  ;;  %6966 = vmatmul.mubr.msk.f32.gmra.mxu0 %vm931_vm1, %v9456_v5 }
 0x487   : > { %7030 = vmatpush3.msra.mxu1 %v4756_v24  ;;  %6968 = vmatprep.mubr.msk.f32.mxu0 %vm7733_vm3, %v10016_v43 }
 0x488   : > { %7031 = vmatprep.subr.mxu1 %v10016_v43 }
 0x489   : > { %7032 = vmatpush3.msra.mxu1 %v7002_v21  ;;  %v9760_v21 = vmul.f32 %v9600_v27, %v9401_v34 }
 0x48a   : > { %7033 = vmatprep.subr.mxu1 %v10016_v43  ;;  %6969 = vmatmul.mubr.msk.f32.gmra.mxu0 %vm931_vm1, %v9465_v33 }
 0x48b   : > { %7034 = vmatpush3.msra.mxu1 %v4746_v32  ;;  %6971 = vmatprep.mubr.msk.f32.mxu0 %vm7733_vm3, %v10016_v43  ;;  %v4969_v38 = vmul.f32 2.0, %v9760_v21 }
 0x48c   : > { %7035 = vmatprep.subr.mxu1 %v10016_v43 }
 0x48d   : > { %7036 = vmatpush3.msra.mxu1 %v9634_v49 }
 0x48e   : > { %7037 = vmatprep.subr.mxu1 %v10016_v43  ;;  %6972 = vmatmul.mubr.msk.f32.gmra.mxu0 %vm931_vm1, %v9475_v10 }
 0x48f   : > { %7038 = vmatpush3.msra.mxu1 %v9636_v39  ;;  %6974 = vmatprep.mubr.msk.f32.mxu0 %vm7733_vm3, %v10016_v43 }
 0x490   : > { %7040 = vmatmul.mubr.msk.f32.vlgmr.msra.gmra.mxu1 %vm931_vm1, %v9448_v3  ;;  %v4164_v3 = vmul.f32 %v9598_v29, %v9598_v29 }
 0x491   : > { %7042 = vmatprep.mubr.msk.f32.mxu1 %vm7733_vm3, %v10016_v43 }
 0x492   : > { %6975 = vmatmul.mubr.msk.f32.gmra.mxu0 %vm931_vm1, %v9486_v55 }
 0x493   : > { %6977 = vmatprep.mubr.msk.f32.mxu0 %vm7733_vm3, %v10016_v43 }
 0x494   : > { %7043 = vmatmul.mubr.msk.f32.gmra.mxu1 %vm931_vm1, %v9456_v5  ;;  %v4155_v5 = vmul.f32 %v9395_v59, %v9395_v59 }
 0x495   : > { %7045 = vmatprep.mubr.msk.f32.mxu1 %vm7733_vm3, %v10016_v43 }
 0x496   : > { %6978 = vmatmul.mubr.msk.f32.gmra.mxu0 %vm931_vm1, %v9496_v14 }
 0x497   : > { %6980 = vmatprep.mubr.msk.f32.mxu0 %vm7733_vm3, %v10016_v43 }
 0x498   : > { %7046 = vmatmul.mubr.msk.f32.gmra.mxu1 %vm931_vm1, %v9465_v33  ;;  %v4986_v33 = vadd.f32 %v4164_v3, %v4155_v5 }
 0x499   : > { %7048 = vmatprep.mubr.msk.f32.mxu1 %vm7733_vm3, %v10016_v43 }
 0x49a   : > { %6981 = vmatmul.mubr.msk.f32.gmra.mxu0 %vm931_vm1, %v9506_v57 }
 0x49b   : > { %6983 = vmatprep.mubr.msk.f32.mxu0 %vm7733_vm3, %v10016_v43 }
 0x49c   : > { %7049 = vmatmul.mubr.msk.f32.gmra.mxu1 %vm931_vm1, %v9475_v10  ;;  %v4165_v10 = vmul.f32 %v9600_v27, %v9600_v27  ;;  %v4168_v27 = vmul.f32 %v9608_v56, %v9608_v56 }
 0x49d   : > { %7051 = vmatprep.mubr.msk.f32.mxu1 %vm7733_vm3, %v10016_v43 }
 0x49e   : > { %6984 = vmatmul.mubr.msk.f32.gmra.mxu0 %vm931_vm1, %v9518_v25 }
 0x49f   : > { %6986 = vmatprep.mubr.msk.f32.mxu0 %vm7733_vm3, %v10016_v43 }
 0x4a0   : > { %7052 = vmatmul.mubr.msk.f32.gmra.mxu1 %vm931_vm1, %v9486_v55  ;;  %v4156_v55 = vmul.f32 %v9401_v34, %v9401_v34  ;;  %v9776_v34 = vmul.f32 %v9604_v8, %v9398_v26  ;;  %v9788_v26 = vmul.f32 %v9612_v61, %v9612_v61 }
 0x4a1   : > { %7054 = vmatprep.mubr.msk.f32.mxu1 %vm7733_vm3, %v10016_v43 }
 0x4a2   : > { %6987 = vmatmul.mubr.msk.f32.gmra.mxu0 %vm931_vm1, %v9528_v60  ;;  %v4418_v49 = vsub.f32 %v9610_v45, %v4156_v55 }
 0x4a4   : > { %7055 = vmatmul.mubr.msk.f32.gmra.mxu1 %vm931_vm1, %v9496_v14  ;;  %v4995_v14 = vadd.f32 0.0001, %v4986_v33  ;;  %v4990_v33 = vadd.f32 %v4168_v27, %v9749_v12 }
 0x4a5   : > { %7057 = vmatprep.mubr.msk.f32.mxu1 %vm7733_vm3, %v10016_v43 }
 0x4a6   : > { %7288 = vrcp.f32 %v4995_v14 }
 0x4a8   : > { %7058 = vmatmul.mubr.msk.f32.gmra.mxu1 %vm931_vm1, %v9506_v57  ;;  %v4987_v57 = vadd.f32 %v4165_v10, %v4156_v55 }
 0x4a9   : > { %7060 = vmatprep.mubr.msk.f32.mxu1 %vm7733_vm3, %v10016_v43 }
 0x4aa   : > { %v4996_v1 = vadd.f32 0.0001, %v4987_v57  ;;  %v4978_v57 = vadd.f32 0.0001, %v4969_v38 }
 0x4ac   : > { %7061 = vmatmul.mubr.msk.f32.gmra.mxu1 %vm931_vm1, %v9518_v25  ;;  %7290 = vrcp.f32 %v4996_v1 }
 0x4ad   : > { %7063 = vmatprep.mubr.msk.f32.mxu1 %vm7733_vm3, %v10016_v43  ;;  %v4166_v43 = vmul.f32 %v9602_v47, %v9602_v47 }
 0x4af   : > { %v4988_v36 = vadd.f32 %v4166_v43, %v4157_v41 }
 0x4b0   : > { %7064 = vmatmul.mubr.msk.f32.gmra.mxu1 %vm931_vm1, %v9528_v60  ;;  %v4417_v60 = vsub.f32 %v9606_v9, %v4155_v5  ;;  %v4173_v9 = vmul.f32 %v9598_v29, %v9395_v59  ;;  %v9764_v59 = vmul.f32 %v9414_v37, %v9414_v37  ;;  %v9768_v29 = vmul.f32 %v9602_v47, %v9406_v46 }
 0x4b1   : > { %v4997_v24 = vadd.f32 0.0001, %v4988_v36  ;;  %v4971_v5 = vmul.f32 2.0, %v9776_v34 }
 0x4b2   : > { %v4968_v20 = vmul.f32 2.0, %v4173_v9  ;;  %v4970_v44 = vmul.f32 2.0, %v9768_v29 }
 0x4b3   : > { %v7289_v1 = vpop.eup %7288 }
 0x542   : > { %v4617_v25 = vpop.f32.mrf.mxu0 }
 0x543   : > { %v4661_v19 = vsub.f32 %v4617_v25, %v4164_v3  ;;  %v4977_v3 = vadd.f32 0.0001, %v4968_v20  ;;  %v4972_v25 = vmul.f32 2.0, %v9784_v62  ;;  %v9821_v20 = vmul.f32 %v9612_v61, %v9409_v58 }
 0x544   : > { %v6964_v51 = vpop.f32.mrf.mxu0 }
 0x545   : > { %v4932_v23 = vadd.f32 %v4661_v19, %v4417_v60  ;;  %v9805_v51 = vadd.f32 0.0001, %v4970_v44 }
 0x546   : > { %v4622_v6 = vpop.f32.mrf.mxu0 }
 0x547   : > { %v4941_v18 = vadd.f32 0.0009, %v4932_v23  ;;  %v4662_v39 = vsub.f32 %v4622_v6, %v4165_v10  ;;  %v4420_v10 = vsub.f32 %v9618_v31, %v4158_v40  ;;  %v9807_v6 = vadd.f32 0.0001, %v4971_v5 }
 0x548   : > { %v6967_v32 = vpop.f32.mrf.mxu0  ;;  %v4999_v31 = vadd.f32 0.0001, %v4990_v33  ;;  %v9813_v40 = vmul.f32 %v9620_v42, %v9620_v42 }
 0x549   : > { %7292 = vrcp.f32 %v4941_v18  ;;  %v4933_v45 = vadd.f32 %v4662_v39, %v4418_v49  ;;  %v4421_v18 = vsub.f32 %v9622_v50, %v9749_v12 }
 0x54a   : > { %v4627_v7 = vpop.f32.mrf.mxu0 }
 0x54b   : > { %v4942_v46 = vadd.f32 0.0009, %v4933_v45  ;;  %v4663_v47 = vsub.f32 %v4627_v7, %v4166_v43  ;;  %v4991_v43 = vadd.f32 %v9788_v26, %v9756_v48  ;;  %v5005_v45 = vmul.f32 %v7289_v1, %v4977_v3 }
 0x54c   : > { %v6970_v8 = vpop.f32.mrf.mxu0 }
 0x54d   : > { %7294 = vrcp.f32 %v4942_v46  ;;  %v4934_v52 = vadd.f32 %v4663_v47, %v4419_v0  ;;  %v5000_v7 = vadd.f32 0.0001, %v4991_v43  ;;  %v7291_v46 = vpop.eup %7290  ;;  %v9828_v8 = vmul.f32 %v9624_v2, %v9624_v2 }
 0x54e   : > { %v4632_v56 = vpop.f32.mrf.mxu0  ;;  %7296 = vrcp.f32 %v4997_v24  ;;  %v5007_v33 = vmul.f32 %v7291_v46, %v4978_v57 }
 0x54f   : > { %v4943_v55 = vadd.f32 0.0009, %v4934_v52  ;;  %v4664_v14 = vsub.f32 %v4632_v56, %v4167_v22  ;;  %7298 = vrcp.f32 %v4998_v15  ;;  %v4992_v22 = vadd.f32 %v9799_v35, %v9764_v59 }
 0x550   : > { %v4861_v60 = vpop.f32.mrf.mxu1  ;;  %v6973_v19 = vpop.f32.mrf.mxu0  ;;  %v4422_v56 = vsub.f32 %v9626_v28, %v9756_v48  ;;  %v4423_v28 = vsub.f32 %v9628_v13, %v9764_v59 }
 0x551   : > { %7300 = vrcp.f32 %v4943_v55  ;;  %v4935_v41 = vadd.f32 %v4664_v14, %v4420_v10  ;;  %v4905_v23 = vsub.f32 %v4861_v60, %v4173_v9  ;;  %v9817_v9 = vadd.f32 0.0001, %v4972_v25 }
 0x552   : > { %v7041_v36 = vpop.f32.mrf.mxu1  ;;  %v4637_v49 = vpop.f32.mrf.mxu0  ;;  %v5001_v12 = vadd.f32 0.0001, %v4992_v22  ;;  %v4424_v22 = vsub.f32 %v9630_v53, %v9772_v17 }
 0x553   : > { %v4944_v39 = vadd.f32 0.0009, %v4935_v41  ;;  %v4914_v63 = vmul.f32 2.0, %v4905_v23  ;;  %v4665_v32 = vsub.f32 %v4637_v49, %v4168_v27  ;;  %v4993_v27 = vadd.f32 %v9813_v40, %v9772_v17 }
 0x554   : > { %v4866_v24 = vpop.f32.mrf.mxu1  ;;  %v6976_v0 = vpop.f32.mrf.mxu0  ;;  %v4994_v41 = vadd.f32 %v9828_v8, %v9792_v11 }
 0x555   : > { %7302 = vrcp.f32 %v4944_v39  ;;  %v4923_v47 = vadd.f32 0.0009, %v4914_v63  ;;  %v4936_v38 = vadd.f32 %v4665_v32, %v4421_v18  ;;  %v4906_v15 = vsub.f32 %v4866_v24, %v9760_v21 }
 0x556   : > { %v7293_v50 = vpop.eup %7292  ;;  %7304 = vrcp.f32 %v4999_v31  ;;  %v7044_v58 = vpop.f32.mrf.mxu1  ;;  %v9832_v21 = vmul.f32 2.0, %v9821_v20  ;;  %v5002_v60 = vadd.f32 0.0001, %v4993_v27 }
 0x557   : > { %v4642_v61 = vpop.f32.mrf.mxu0  ;;  %v4951_v44 = vmul.f32 %v7293_v50, %v4923_v47  ;;  %v4945_v52 = vadd.f32 0.0009, %v4936_v38  ;;  %v4915_v3 = vmul.f32 2.0, %v4906_v15  ;;  %7306 = vrcp.f32 %v5000_v7 }
 0x558   : > { %v4666_v5 = vsub.f32 %v4642_v61, %v9788_v26  ;;  %v4871_v10 = vpop.f32.mrf.mxu1 }
 0x559   : > { %v6979_v55 = vpop.f32.mrf.mxu0  ;;  %v5022_v14 = vmul.f32 %v5005_v45, %v4951_v44  ;;  %7308 = vrcp.f32 %v4945_v52  ;;  %v4924_v25 = vadd.f32 0.0009, %v4915_v3  ;;  %v4907_v26 = vsub.f32 %v4871_v10, %v9768_v29 }
 0x55a   : > { %v7295_v43 = vpop.eup %7294  ;;  %7310 = vrcp.f32 %v5001_v12  ;;  %v4937_v19 = vadd.f32 %v4666_v5, %v4422_v56  ;;  %v7047_v57 = vpop.f32.mrf.mxu1  ;;  %v5059_v36 = vsel %vm5031_vm5, %v4951_v44, 0.0 }
 0x55b   : > { %v4647_v1 = vpop.f32.mrf.mxu0  ;;  %v4953_v48 = vmul.f32 %v7295_v43, %v4924_v25  ;;  %v7297_v31 = vpop.eup %7296  ;;  %v4916_v18 = vmul.f32 2.0, %v4907_v26  ;;  %v4425_v26 = vsub.f32 %v9632_v30, %v9792_v11 }
 0x55c   : > { %v4667_v23 = vsub.f32 %v4647_v1, %v9799_v35  ;;  %v4946_v49 = vadd.f32 0.0009, %v4937_v19  ;;  %v4876_v29 = vpop.f32.mrf.mxu1  ;;  %v7299_v63 = vpop.eup %7298  ;;  %v5032_v35 = vsel %vm5031_vm5, %v5022_v14, 0.0  ;;  %v5009_v50 = vmul.f32 %v7297_v31, %v9805_v51 }
 0x55d   : > { %v6982_v39 = vpop.f32.mrf.mxu0  ;;  %v5023_v32 = vmul.f32 %v5007_v33, %v4953_v48  ;;  %v5060_v45 = vsel %vm5031_vm5, %v4953_v48, 0.0  ;;  %v4908_v13 = vsub.f32 %v4876_v29, %v9776_v34  ;;  %v4925_v0 = vadd.f32 0.0009, %v4916_v18 }
 0x55e   : > { %v4938_v7 = vadd.f32 %v4667_v23, %v4423_v28  ;;  %v7301_v59 = vpop.eup %7300  ;;  %v5061_v24 = vadd.f32 %v5060_v45, %v5059_v36  ;;  %7312 = vrcp.f32 %v4946_v49  ;;  %v7050_v53 = vpop.f32.mrf.mxu1  ;;  %v5011_v12 = vmul.f32 %v7299_v63, %v9807_v6 }
 0x55f   : > { %v4652_v17 = vpop.f32.mrf.mxu0  ;;  %v5033_v46 = vsel %vm5031_vm5, %v5023_v32, 0.0  ;;  %v4917_v38 = vmul.f32 2.0, %v4908_v13  ;;  %v4955_v34 = vmul.f32 %v7301_v59, %v4925_v0  ;;  %v5003_v33 = vadd.f32 0.0001, %v4994_v41 }
 0x560   : > { %v4947_v47 = vadd.f32 0.0009, %v4938_v7  ;;  %v4668_v15 = vsub.f32 %v4652_v17, %v9813_v40  ;;  %v5034_v27 = vadd.f32 %v5033_v46, %v5032_v35  ;;  %v4881_v58 = vpop.f32.mrf.mxu1  ;;  %v4179_v19 = vmul.f32 %v9616_v54, %v9414_v37 }
 0x561   : > { %v6985_v61 = vpop.f32.mrf.mxu0  ;;  %v4926_v44 = vadd.f32 0.0009, %v4917_v38  ;;  %v4909_v3 = vsub.f32 %v4881_v58, %v9784_v62  ;;  %v5024_v56 = vmul.f32 %v5009_v50, %v4955_v34  ;;  %v5062_v10 = vsel %vm5031_vm5, %v4955_v34, 0.0 }
 0x562   : > { %7314 = vrcp.f32 %v4947_v47  ;;  %v4939_v52 = vadd.f32 %v4668_v15, %v4424_v22  ;;  %v7303_v5 = vpop.eup %7302  ;;  %v7053_v40 = vpop.f32.mrf.mxu1  ;;  %v5063_v14 = vadd.f32 %v5062_v10, %v5061_v24  ;;  %v4982_v7 = vadd.f32 0.0001, %v9832_v21 }
 0x563   : > { %7316 = vrcp.f32 %v5002_v60  ;;  %v4657_v55 = vpop.f32.mrf.mxu0  ;;  %v7305_v51 = vpop.eup %7304  ;;  %v4957_v6 = vmul.f32 %v7303_v5, %v4926_v44  ;;  %v4918_v43 = vmul.f32 2.0, %v4909_v3  ;;  %v5035_v62 = vsel %vm5031_vm5, %v5024_v56, 0.0 }
 0x564   : > { %v4948_v25 = vadd.f32 0.0009, %v4939_v52  ;;  %v4669_v60 = vsub.f32 %v4657_v55, %v9828_v8  ;;  %v4886_v57 = vpop.f32.mrf.mxu1  ;;  %v7307_v41 = vpop.eup %7306  ;;  %v5036_v28 = vadd.f32 %v5035_v62, %v5034_v27  ;;  %v5013_v11 = vmul.f32 %v7305_v51, %v9817_v9 }
 0x565   : > { %v6988_v1 = vpop.f32.mrf.mxu0  ;;  %v5025_v48 = vmul.f32 %v5011_v12, %v4957_v6  ;;  %v5064_v23 = vsel %vm5031_vm5, %v4957_v6, 0.0  ;;  %v4927_v36 = vadd.f32 0.0009, %v4918_v43  ;;  %v4910_v37 = vsub.f32 %v4886_v57, %v9821_v20 }
 0x566   : > { %7318 = vrcp.f32 %v4948_v25  ;;  %v7309_v31 = vpop.eup %7308  ;;  %v5065_v22 = vadd.f32 %v5064_v23, %v5063_v14  ;;  %v4940_v49 = vadd.f32 %v4669_v60, %v4425_v26  ;;  %v7056_v54 = vpop.f32.mrf.mxu1  ;;  %v4180_v8 = vmul.f32 %v9620_v42, %v9418_v16 }
 0x567   : > { %v7311_v30 = vpop.eup %7310  ;;  %7320 = vrcp.f32 %v5003_v33  ;;  %v5037_v18 = vsel %vm5031_vm5, %v5025_v48, 0.0  ;;  %v4959_v39 = vmul.f32 %v7309_v31, %v4927_v36  ;;  %v4919_v32 = vmul.f32 2.0, %v4910_v37 }
 0x568   : > { %v5038_v29 = vadd.f32 %v5037_v18, %v5036_v28  ;;  %v4949_v63 = vadd.f32 0.0009, %v4940_v49  ;;  %v4891_v45 = vpop.f32.mrf.mxu1  ;;  %v4974_v13 = vmul.f32 2.0, %v4179_v19  ;;  %v5015_v53 = vmul.f32 %v7307_v41, %v4982_v7 }
 0x569   : > { %v4911_v59 = vsub.f32 %v4891_v45, %v4179_v19  ;;  %v5026_v20 = vmul.f32 %v5013_v11, %v4959_v39  ;;  %v5066_v35 = vsel %vm5031_vm5, %v4959_v39, 0.0  ;;  %v4928_v9 = vadd.f32 0.0009, %v4919_v32 }
 0x56a   : > { %7322 = vrcp.f32 %v4949_v63  ;;  %v7059_v24 = vpop.f32.mrf.mxu1  ;;  %v5067_v16 = vadd.f32 %v5066_v35, %v5065_v22  ;;  %v4975_v17 = vmul.f32 2.0, %v4180_v8  ;;  %v4983_v15 = vadd.f32 0.0001, %v4974_v13 }
 0x56b   : > { %v7313_v0 = vpop.eup %7312  ;;  %v4920_v42 = vmul.f32 2.0, %v4911_v59  ;;  %v5039_v46 = vsel %vm5031_vm5, %v5026_v20, 0.0  ;;  %v4181_v34 = vmul.f32 %v9624_v2, %v9420_v4 }
 0x56c   : > { %v4961_v47 = vmul.f32 %v7313_v0, %v4928_v9  ;;  %v4896_v38 = vpop.f32.mrf.mxu1  ;;  %v5040_v50 = vadd.f32 %v5039_v46, %v5038_v29  ;;  %v5017_v3 = vmul.f32 %v7311_v30, %v4983_v15  ;;  %v4984_v10 = vadd.f32 0.0001, %v4975_v17 }
 0x56d   : > { %v4929_v21 = vadd.f32 0.0009, %v4920_v42  ;;  %v4912_v12 = vsub.f32 %v4896_v38, %v4180_v8  ;;  %v4976_v4 = vmul.f32 2.0, %v4181_v34  ;;  %v5085_v46 = vlaneseq }
 0x56e   : > { %v5027_v58 = vmul.f32 %v5015_v53, %v4961_v47  ;;  %v5068_v61 = vsel %vm5031_vm5, %v4961_v47, 0.0  ;;  %v7062_v44 = vpop.f32.mrf.mxu1  ;;  %v5088_v38 = vstv %s7094_s30  ;;  %v5092_v15 = vstv %s7096_s20 }
 0x56f   : > { %v7315_v27 = vpop.eup %7314  ;;  %v5069_v5 = vadd.f32 %v5068_v61, %v5067_v16  ;;  %v4921_v56 = vmul.f32 2.0, %v4912_v12  ;;  %v4985_v22 = vadd.f32 0.0001, %v4976_v4  ;;  %v5086_v47 = vand.u32 127, %v5085_v46 }
 0x570   : > { %v7317_v52 = vpop.eup %7316  ;;  %v4963_v33 = vmul.f32 %v7315_v27, %v4929_v21  ;;  %v5041_v40 = vsel %vm5031_vm5, %v5027_v58, 0.0  ;;  %v4901_v55 = vpop.f32.mrf.mxu1  ;;  %v5096_v12 = vstv %s7098_s24 }
 0x571   : > { %v4930_v6 = vadd.f32 0.0009, %v4921_v56  ;;  %v4913_v25 = vsub.f32 %v4901_v55, %v4181_v34  ;;  %v5042_v26 = vadd.f32 %v5041_v40, %v5040_v50  ;;  %v5019_v62 = vmul.f32 %v7317_v52, %v4984_v10 }
 0x572   : > { %v5028_v51 = vmul.f32 %v5017_v3, %v4963_v33  ;;  %v5070_v14 = vsel %vm5031_vm5, %v4963_v33, 0.0  ;;  %v7065_v2 = vpop.f32.mrf.mxu1  ;;  %vm5087_vm7 = vcmp.eq.s32.totalorder %v5086_v47, 0  ;;  %vm5091_vm8 = vcmp.eq.s32.totalorder %v5086_v47, 1 }
 0x573   : > { %v7319_v43 = vpop.eup %7318  ;;  %v5071_v19 = vadd.f32 %v5070_v14, %v5069_v5  ;;  %v4922_v57 = vmul.f32 2.0, %v4913_v25  ;;  %v5089_v50 = vsel %vm5087_vm7, %v5088_v38, 0.0  ;;  %v5093_v21 = vsel %vm5091_vm8, %v5092_v15, 0.0 }
 0x574   : > { %v4965_v60 = vmul.f32 %v7319_v43, %v4930_v6  ;;  %v5043_v1 = vsel %vm5031_vm5, %v5028_v51, 0.0  ;;  %v7321_v41 = vpop.eup %7320  ;;  %vm5095_vm9 = vcmp.eq.s32.totalorder %v5086_v47, 2  ;;  %v5094_v27 = vadd.f32 %v5093_v21, %v5089_v50 }
 0x575   : > { %v5044_v28 = vadd.f32 %v5043_v1, %v5042_v26  ;;  %v4931_v23 = vadd.f32 0.0009, %v4922_v57  ;;  %v5021_v54 = vmul.f32 %v7321_v41, %v4985_v22  ;;  %vm5099_vm10 = vcmp.eq.s32.totalorder %v5086_v47, 3 }
 0x576   : > { %v5029_v48 = vmul.f32 %v5019_v62, %v4965_v60  ;;  %v5072_v31 = vsel %vm5031_vm5, %v4965_v60, 0.0  ;;  %v5100_v34 = vstv %s7102_s13  ;;  %v5097_v58 = vsel %vm5095_vm9, %v5096_v12, 0.0 }
 0x577   : > { %v5073_v36 = vadd.f32 %v5072_v31, %v5071_v19  ;;  %v7323_v49 = vpop.eup %7322  ;;  %v5101_v61 = vsel %vm5099_vm10, %v5100_v34, 0.0  ;;  %v5098_v44 = vadd.f32 %v5097_v58, %v5094_v27  ;;  %vm5103_vm11 = vcmp.eq.s32.totalorder %v5086_v47, 4 }
 0x578   : > { %v5045_v37 = vsel %vm5031_vm5, %v5029_v48, 0.0  ;;  %v4967_v30 = vmul.f32 %v7323_v49, %v4931_v23  ;;  %v5104_v52 = vstv %s7100_s12  ;;  %vm5107_vm12 = vcmp.eq.s32.totalorder %v5086_v47, 5 }
 0x579   : > { %v5046_v11 = vadd.f32 %v5045_v37, %v5044_v28  ;;  %v5102_v3 = vadd.f32 %v5101_v61, %v5098_v44  ;;  %v5108_v5 = vstv %s7104_s0  ;;  %v5105_v33 = vsel %vm5103_vm11, %v5104_v52, 0.0 }
 0x57a   : > { %v5074_v8 = vsel %vm5047_vm6, %v4967_v30, 0.0  ;;  %v5030_v18 = vmul.f32 %v5021_v54, %v4967_v30  ;;  %v5109_v56 = vsel %vm5107_vm12, %v5108_v5, 0.0  ;;  %vm5111_vm13 = vcmp.eq.s32.totalorder %v5086_v47, 6 }
 0x57b   : > { %v5075_v29 = vadd.f32 %v5074_v8, %v5073_v36  ;;  %v5106_v10 = vadd.f32 %v5105_v33, %v5102_v3  ;;  %vm5115_vm14 = vcmp.eq.s32.totalorder %v5086_v47, 7 }
 0x57c   : > { %v5048_v39 = vsel %vm5047_vm6, %v5030_v18, 0.0 }
 0x57d   : > { %5076 = vadd.xlane.f32.xlu1 %v5075_v29  ;;  %v5049_v63 = vadd.f32 %v5048_v39, %v5046_v11  ;;  %v5110_v40 = vadd.f32 %v5109_v56, %v5106_v10 }
 0x57f   : > { %5050 = vadd.xlane.f32.xlu0 %v5049_v63 }
 0x606   : > { %v5077_v32 = vpop.xlane.xlu1 %5076 }
 0x607   : > { %v5078_v45 = vrot.slane %v5077_v32, 4 }
 0x608   : > { %v5051_v7 = vpop.xlane.xlu0 %5050 }
 0x609   : > { %v5079_v13 = vadd.f32 %v5078_v45, %v5077_v32  ;;  %v5052_v59 = vrot.slane %v5051_v7, 4 }
 0x60b   : > { %v5080_v20 = vrot.slane %v5079_v13, 2  ;;  %v5053_v35 = vadd.f32 %v5052_v59, %v5051_v7 }
 0x60d   : > { %v5081_v9 = vadd.f32 %v5080_v20, %v5079_v13  ;;  %v5054_v24 = vrot.slane %v5053_v35, 2 }
 0x60f   : > { %v5055_v0 = vadd.f32 %v5054_v24, %v5053_v35  ;;  %v5082_v16 = vrot.slane %v5081_v9, 1 }
 0x611   : > { %v5056_v42 = vrot.slane %v5055_v0, 1  ;;  %v5083_v17 = vadd.f32 %v5082_v16, %v5081_v9 }
 0x613   : > { %v5057_v53 = vadd.f32 %v5056_v42, %v5055_v0 }
 0x615   : > { %7105 = vpush %v5057_v53 }
 0x616   : > { %7107 = vpush %v5083_v17 }
 0x646   : > { %s7106_s4 = spop %7105 }
 0x647   : > { %v5112_v55 = vstv %s7106_s4  ;;  %s7108_s5 = spop %7107 }
 0x648   : > { %v5113_v51 = vsel %vm5111_vm13, %v5112_v55, 0.0  ;;  %v5116_v14 = vstv %s7108_s5 }
 0x649   : > { %v5114_v6 = vadd.f32 %v5113_v51, %v5110_v40  ;;  %v5117_v25 = vsel %vm5115_vm14, %v5116_v14, 0.0 }
 0x64b   : > { %v5118_v43 = vadd.f32 %v5117_v25, %v5114_v6 }
 0x64d   : > { %5121 = vst [vmem:[%s623_s10] sm:$0xff] %v5118_v43 }
 0x64e PF: > { %s32_s26 = sadd.s32 1, %s7717_s26   ;;  %s10043_s21 = smov %s7701_s22 }
 0x64f   : > { %p29_p3 = scmp.ge.s32.totalorder %s32_s26, 4   ;;  %s10044_s22 = smov %s7705_s23 }
 0x650   : > { %s10045_s23 = smov %s7967_s18  ;;  %s10046_s24 = smov %s7713_s25 }
 0x651   : > { %s10047_s25 = smov %s10049_s14  ;;  %31 = sbr.rel (!%p29_p3) target bundleno = 21 (0x15), region = 161 }
 0x656   :  { %5141 = vsyncpa [#allocation3], 1 }
 0x657   :  { %5143 = vsyncpa [#allocation3 + $0x1], 1 }
 0x658   :  { %5144 = vsyncpa [#allocation5], 1 }
 0x659   :  { %5146 = vsyncpa [#allocation5 + $0x1], 1 }
 0x65a   :  { %5147 = vsyncpa [#allocation8], 1 }
 0x65b   :  { %5148 = vsyncpa [#allocation11], 1 }
 0x65c   :  { %5149 = vsyncpa [#allocation14], 1 }
 0x65d   :  { %5150 = vsyncpa [#allocation17], 1 }

</bundles_post_ra>
